<compile_context>
chip_gen: v7x
topology: tpu7x:2x2x1
jax: 0.10.0
libtpu: 0.0.40
codegen_flags: <defaults>
</compile_context>

<pallas_src>
import math
import numpy as np
import jax
import jax.numpy as jnp
from jax.experimental import pallas as pl
from jax.experimental.pallas import tpu as pltpu

# ---------------- small config, consistent with the module's asserts ----------
BS = 2
NVARS = 3            # enc_in
SEQ_LEN = 16         # context_window
PRED_LEN = 8         # target_window
LABEL_LEN = 4
PATCH_LEN = 4
STRIDE = 4           # stride == patch_len (asserted in the module)
D_MODEL = 32
N_HEADS = 4
HEAD_DIM = D_MODEL // N_HEADS
D_FF = 64
IN_PATCH = SEQ_LEN // PATCH_LEN     # 4
OUT_PATCH = PRED_LEN // PATCH_LEN   # 2
REVIN_EPS = 1e-5
LN_EPS = 1e-5
LANES = 128
NEG_INF = -1e30
SCALE = 1.0 / math.sqrt(HEAD_DIM)


# ---------------- weight slab packing ------------------------------------------
def _block_mask(lq, lk, s_blk, causal):
    """Additive mask for the heads-in-sublanes score matrix.

    Rows/cols are head-major, then sequence-major, then position.  Valid iff
    same head AND same sequence AND (if causal) key_pos <= query_pos.
    """
    rq = N_HEADS * s_blk * lq
    rk = N_HEADS * s_blk * lk
    i = np.arange(rq)
    j = np.arange(rk)
    same_head = (i // (s_blk * lq))[:, None] == (j // (s_blk * lk))[None, :]
    same_seq = ((i % (s_blk * lq)) // lq)[:, None] == ((j % (s_blk * lk)) // lk)[None, :]
    ok = same_head & same_seq
    if causal:
        ok &= (j % lk)[None, :] <= (i % lq)[:, None]
    return np.where(ok, 0.0, NEG_INF).astype(np.float32)


def pack_params(params, s_blk):
    """Pack every weight/bias/constant into one (rows, 128) f32 slab.

    Returns (layout, slab) where layout[name] = (row_start, n_rows, n_cols).
    """
    r_enc = s_blk * IN_PATCH
    r_dec = s_blk * OUT_PATCH

    entries = []

    def add(name, arr):
        arr = np.asarray(arr, np.float32)
        assert arr.ndim == 2 and arr.shape[1] <= LANES, (name, arr.shape)
        entries.append((name, arr))

    add("enc_emb_w", params["enc_emb_w"])
    add("dec_emb_w", params["dec_emb_w"])
    # positional tables tiled once per sequence in the block (row-stacked layout)
    add("pe_enc", np.tile(np.asarray(params["pe_enc"]), (s_blk, 1)))
    add("pe_dec", np.tile(np.asarray(params["pe_dec"]), (s_blk, 1)))

    for name in (
            "d1_sa_wqkv", "d1_sa_bqkv", "d1_sa_wo", "d1_sa_bo", "d1_ln1",
            "d1_ffn_w1", "d1_ffn_b1", "d1_ffn_w2", "d1_ffn_b2", "d1_ln2",
            "d2_sa_wqkv", "d2_sa_bqkv", "d2_sa_wo", "d2_sa_bo", "d2_ln1",
            "d2_ca_wq", "d2_ca_bq", "d2_ca_wkv", "d2_ca_bkv", "d2_ca_wo", "d2_ca_bo", "d2_ln2",
            "d2_ffn_w1", "d2_ffn_b1", "d2_ffn_w2", "d2_ffn_b2", "d2_ln3",
            "final_ln", "proj_w", "proj_b"):
        add(name, params[name])

    # RevIN per-sequence mean/var broadcast over rows (1/SEQ_LEN within a sequence)
    seq_of_row = np.arange(r_enc) // IN_PATCH
    avg = (seq_of_row[:, None] == seq_of_row[None, :]).astype(np.float32) / SEQ_LEN
    add("revin_avg", avg)
    # selector: output row -> representative encoder row of its sequence
    sel = np.zeros((r_dec, r_enc), np.float32)
    sel[np.arange(r_dec), (np.arange(r_dec) // OUT_PATCH) * IN_PATCH] = 1.0
    add("revin_sel", sel)

    # attention masks (hoisted, built once offline)
    add("mask_self_enc", _block_mask(IN_PATCH, IN_PATCH, s_blk, causal=True))
    add("mask_self_dec", _block_mask(OUT_PATCH, OUT_PATCH, s_blk, causal=True))
    add("mask_cross", _block_mask(OUT_PATCH, IN_PATCH, s_blk, causal=False))

    layout = {}
    rows = []
    row = 0
    for name, arr in entries:
        h, w = arr.shape
        layout[name] = (row, h, w)
        padded = np.zeros((h, LANES), np.float32)
        padded[:, :w] = arr
        rows.append(padded)
        row += h
    slab = jnp.asarray(np.concatenate(rows, axis=0))
    return layout, slab


# ---------------- the single fused kernel --------------------------------------
def make_kernel(s_blk, layout):
    f32 = jnp.float32

    def kernel(xe_ref, xd_ref, w_ref, o_ref):
        def W(name):  # static slice of the weight slab (zero-cost view + load)
            r0, nr, nc = layout[name]
            return w_ref[r0:r0 + nr, 0:nc]

        def layernorm(x, name):               # rows of W(name): [gamma; beta]
            ln = W(name)
            g, b = ln[0:1, :], ln[1:2, :]
            mu = jnp.mean(x, axis=-1, keepdims=True)
            var = jnp.mean((x - mu) ** 2, axis=-1, keepdims=True)
            return (x - mu) * jax.lax.rsqrt(var + LN_EPS) * g + b

        def split_heads(x):                   # (R, D) -> (NH*R, HD), head-major rows
            return jnp.concatenate(
                [x[:, h * HEAD_DIM:(h + 1) * HEAD_DIM] for h in range(N_HEADS)], axis=0)

        def merge_heads(x, r):                # (NH*R, HD) -> (R, D)
            return jnp.concatenate(
                [x[h * r:(h + 1) * r, :] for h in range(N_HEADS)], axis=-1)

        def attention(q, k, v, mask, wo, bo):
            r_q = q.shape[0]
            qh, kh, vh = split_heads(q), split_heads(k), split_heads(v)
            s = jax.lax.dot_general(qh, kh, (((1,), (1,)), ((), ())),
                                    preferred_element_type=f32) * SCALE + mask
            m = jnp.max(s, axis=-1, keepdims=True)
            p = jnp.exp(s - m)
            p = p * pl.reciprocal(jnp.sum(p, axis=-1, keepdims=True), approx=True)
            oh = jnp.dot(p, vh, preferred_element_type=f32)
            return jnp.dot(merge_heads(oh, r_q), wo, preferred_element_type=f32) + bo

        def self_attn(x, prefix, mask_name):
            qkv = jnp.dot(x, W(prefix + "_wqkv"), preferred_element_type=f32) + W(prefix + "_bqkv")
            q = qkv[:, 0:D_MODEL]
            k = qkv[:, D_MODEL:2 * D_MODEL]
            v = qkv[:, 2 * D_MODEL:3 * D_MODEL]
            return attention(q, k, v, W(mask_name), W(prefix + "_wo"), W(prefix + "_bo"))

        def cross_attn(x, cross):
            q = jnp.dot(x, W("d2_ca_wq"), preferred_element_type=f32) + W("d2_ca_bq")
            kv = jnp.dot(cross, W("d2_ca_wkv"), preferred_element_type=f32) + W("d2_ca_bkv")
            k = kv[:, 0:D_MODEL]
            v = kv[:, D_MODEL:2 * D_MODEL]
            return attention(q, k, v, W("mask_cross"), W("d2_ca_wo"), W("d2_ca_bo"))

        def ffn(x, prefix):
            y = jnp.dot(x, W(prefix + "_w1"), preferred_element_type=f32) + W(prefix + "_b1")
            # TODO(synk): PyTorch F.gelu is erf-exact; tanh approximation used here.
            y = jax.nn.gelu(y, approximate=True)
            return jnp.dot(y, W(prefix + "_w2"), preferred_element_type=f32) + W(prefix + "_b2")

        xe = xe_ref[0]   # (s_blk*IN_PATCH,  3*PATCH_LEN)  columns: [x_{l-1} | x_l | x_{l+1}]
        xd = xd_ref[0]   # (s_blk*OUT_PATCH, 3*PATCH_LEN)

        # ---- RevIN 'norm' (affine=False, subtract_last=False), per sequence ----
        x_mid = xe[:, PATCH_LEN:2 * PATCH_LEN]            # the seq_len values of each channel
        avg = W("revin_avg")
        mean_rows = jnp.sum(jnp.dot(avg, x_mid, preferred_element_type=f32),
                            axis=-1, keepdims=True)        # per-row broadcast of its seq mean
        cen = x_mid - mean_rows
        var_rows = jnp.sum(jnp.dot(avg, cen * cen, preferred_element_type=f32),
                           axis=-1, keepdims=True)          # biased var (matches RevIN)
        std_rows = jnp.sqrt(var_rows + REVIN_EPS)
        xe_n = (xe - mean_rows) * jax.lax.rsqrt(var_rows + REVIN_EPS)

        # per-output-row stats for the denorm (selector matmul -> (r_dec, 2))
        stats_out = jnp.dot(W("revin_sel"),
                            jnp.concatenate([mean_rows, std_rows], axis=-1),
                            preferred_element_type=f32)
        mean_out = stats_out[:, 0:1]
        std_out = stats_out[:, 1:2]

        # ---- DataEmbedding: TokenEmbedding (circular k=3 conv as one matmul) + PE ----
        enc = jnp.dot(xe_n, W("enc_emb_w"), preferred_element_type=f32) + W("pe_enc")
        dec = jnp.dot(xd, W("dec_emb_w"), preferred_element_type=f32) + W("pe_dec")

        # ---- decoder1: DecoderLayer_wo_CrossAttn, then shared final LayerNorm ----
        x1 = layernorm(enc + self_attn(enc, "d1_sa", "mask_self_enc"), "d1_ln1")
        x1 = layernorm(x1 + ffn(x1, "d1_ffn"), "d1_ln2")
        enc_out = layernorm(x1, "final_ln")

        # ---- decoder2: causal self-attn + cross-attn + FFN, final norm + projection ----
        x2 = layernorm(dec + self_attn(dec, "d2_sa", "mask_self_dec"), "d2_ln1")
        x2 = layernorm(x2 + cross_attn(x2, enc_out), "d2_ln2")
        x2 = layernorm(x2 + ffn(x2, "d2_ffn"), "d2_ln3")
        x2 = layernorm(x2, "final_ln")

        out = jnp.dot(x2, W("proj_w"), preferred_element_type=f32) + W("proj_b")

        # ---- RevIN 'denorm' + single lane-dense store ----
        o_ref[0] = (out * std_out + mean_out).astype(o_ref.dtype)

    return kernel


def make_model_forward(n_blocks, s_blk, layout, slab_shape):
    r_enc = s_blk * IN_PATCH
    r_dec = s_blk * OUT_PATCH
    kernel = make_kernel(s_blk, layout)

    def fused(xe_blocks, xd_blocks, slab):
        return pl.pallas_call(
            kernel,
            out_shape=jax.ShapeDtypeStruct((n_blocks, r_dec, PATCH_LEN), jnp.float32),
            grid=(n_blocks,),
            in_specs=[
                pl.BlockSpec((1, r_enc, 3 * PATCH_LEN), lambda i: (i, 0, 0)),
                pl.BlockSpec((1, r_dec, 3 * PATCH_LEN), lambda i: (i, 0, 0)),
                # constant index map -> the whole weight slab is DMA'd into VMEM once
                pl.BlockSpec(slab_shape, lambda i: (0, 0)),
            ],
            out_specs=pl.BlockSpec((1, r_dec, PATCH_LEN), lambda i: (i, 0, 0)),
            compiler_params=pltpu.CompilerParams(dimension_semantics=("parallel",)),
        )(xe_blocks, xd_blocks, slab)

    def cat3(x):
        # per-sequence circular 3-tap layout [x_{l-1} | x_l | x_{l+1}] (wrapper glue;
        # an in-kernel roll over the row-stacked layout would wrap across sequences)
        return jnp.concatenate([jnp.roll(x, 1, axis=1), x, jnp.roll(x, -1, axis=1)], axis=-1)

    @jax.jit
    def forward(slab, x_enc, x_mark_enc, x_dec, x_mark_dec):
        # x_mark_enc / x_mark_dec are unused (DataEmbedding called with one arg).
        bs, _, nvars = x_enc.shape
        x_dec = x_dec[:, -PRED_LEN:, :]

        # channel independence + patching (stride == patch_len -> unfold is a reshape)
        xe = x_enc.transpose(0, 2, 1).reshape(bs * nvars, IN_PATCH, PATCH_LEN)
        xd = x_dec.transpose(0, 2, 1).reshape(bs * nvars, OUT_PATCH, PATCH_LEN)

        xe_blocks = cat3(xe).reshape(n_blocks, r_enc, 3 * PATCH_LEN)
        xd_blocks = cat3(xd).reshape(n_blocks, r_dec, 3 * PATCH_LEN)

        out = fused(xe_blocks, xd_blocks, slab)              # (nb, r_dec, PATCH_LEN)
        out = out.reshape(bs, nvars, PRED_LEN)
        return out.transpose(0, 2, 1)                         # (bs, pred_len, nvars)

    return forward


# ---------------- embeddings / parameter init ----------------------------------
def positional_embedding(length, d_model):
    pos = np.arange(length, dtype=np.float32)[:, None]
    div = np.exp(np.arange(0, d_model, 2, dtype=np.float32) * -(math.log(10000.0) / d_model))
    pe = np.zeros((length, d_model), dtype=np.float32)
    pe[:, 0::2] = np.sin(pos * div)
    pe[:, 1::2] = np.cos(pos * div)
    return jnp.asarray(pe)


def init_params(key):
    keys = iter(jax.random.split(key, 64))

    def nrm(shape, scale=0.02):
        return scale * jax.random.normal(next(keys), shape, jnp.float32)

    def zeros(shape):
        return jnp.zeros(shape, jnp.float32)

    def ln():
        return jnp.concatenate([jnp.ones((1, D_MODEL), jnp.float32),
                                jnp.zeros((1, D_MODEL), jnp.float32)], axis=0)

    def conv_as_matmul():
        # TokenEmbedding Conv1d(patch_len -> d_model, k=3, circular, no bias) packed
        # as a (3*patch_len, d_model) matmul acting on [x_{l-1} | x_l | x_{l+1}].
        w = nrm((D_MODEL, PATCH_LEN, 3))
        return jnp.concatenate([w[:, :, 0].T, w[:, :, 1].T, w[:, :, 2].T], axis=0)

    p = {}
    p["enc_emb_w"] = conv_as_matmul()
    p["dec_emb_w"] = conv_as_matmul()
    p["pe_enc"] = positional_embedding(IN_PATCH, D_MODEL)
    p["pe_dec"] = positional_embedding(OUT_PATCH, D_MODEL)

    def add_self_attn(prefix):
        wq, wk, wv = nrm((D_MODEL, D_MODEL)), nrm((D_MODEL, D_MODEL)), nrm((D_MODEL, D_MODEL))
        p[prefix + "_wqkv"] = jnp.concatenate([wq, wk, wv], axis=1)
        p[prefix + "_bqkv"] = zeros((1, 3 * D_MODEL))
        p[prefix + "_wo"] = nrm((D_MODEL, D_MODEL))
        p[prefix + "_bo"] = zeros((1, D_MODEL))

    def add_ffn(prefix):
        p[prefix + "_w1"] = nrm((D_MODEL, D_FF)); p[prefix + "_b1"] = zeros((1, D_FF))
        p[prefix + "_w2"] = nrm((D_FF, D_MODEL)); p[prefix + "_b2"] = zeros((1, D_MODEL))

    add_self_attn("d1_sa"); p["d1_ln1"] = ln()
    add_ffn("d1_ffn");      p["d1_ln2"] = ln()

    add_self_attn("d2_sa"); p["d2_ln1"] = ln()
    p["d2_ca_wq"] = nrm((D_MODEL, D_MODEL)); p["d2_ca_bq"] = zeros((1, D_MODEL))
    wk, wv = nrm((D_MODEL, D_MODEL)), nrm((D_MODEL, D_MODEL))
    p["d2_ca_wkv"] = jnp.concatenate([wk, wv], axis=1)
    p["d2_ca_bkv"] = zeros((1, 2 * D_MODEL))
    p["d2_ca_wo"] = nrm((D_MODEL, D_MODEL)); p["d2_ca_bo"] = zeros((1, D_MODEL))
    p["d2_ln2"] = ln()
    add_ffn("d2_ffn");      p["d2_ln3"] = ln()

    p["final_ln"] = ln()
    p["proj_w"] = nrm((D_MODEL, PATCH_LEN))
    p["proj_b"] = zeros((1, PATCH_LEN))
    return p


def pick_num_blocks(n_seq):
    """2 grid steps on 2-TensorCore chips (v7x / megacore), 1 otherwise."""
    try:
        kind = jax.devices()[0].device_kind.lower()
    except Exception:
        kind = ""
    if n_seq % 2 == 0 and any(t in kind for t in ("v7", "v4", "v5p")):
        return 2
    return 1


if __name__ == "__main__":
    key = jax.random.PRNGKey(0)
    kp, k1, k2, k3, k4 = jax.random.split(key, 5)
    params = init_params(kp)

    n_seq = BS * NVARS
    n_blocks = pick_num_blocks(n_seq)
    s_blk = n_seq // n_blocks
    layout, slab = pack_params(params, s_blk)
    forward = make_model_forward(n_blocks, s_blk, layout, slab.shape)

    x_enc = jax.random.normal(k1, (BS, SEQ_LEN, NVARS), jnp.float32)
    x_mark_enc = jax.random.normal(k2, (BS, SEQ_LEN, 4), jnp.float32)        # unused by forward
    x_dec = jax.random.normal(k3, (BS, LABEL_LEN + PRED_LEN, NVARS), jnp.float32)
    x_mark_dec = jax.random.normal(k4, (BS, LABEL_LEN + PRED_LEN, 4), jnp.float32)  # unused

    out = forward(slab, x_enc, x_mark_enc, x_dec, x_mark_dec)
    out = jax.block_until_ready(out)
    assert out.shape == (BS, PRED_LEN, NVARS)
    assert bool(jnp.all(jnp.isfinite(out)))
    print("KERNEL_OK")
</pallas_src>

<mosaic_0001>
module attributes {stable_mosaic.version = 11 : i64} {
  func.func @kernel(%arg0: i32, %arg1: memref<1x24x12xf32, #tpu.memory_space<vmem>>, %arg2: memref<1x12x12xf32, #tpu.memory_space<vmem>>, %arg3: memref<760x128xf32, #tpu.memory_space<vmem>>, %arg4: memref<1x12x4xf32, #tpu.memory_space<vmem>>) attributes {dimension_semantics = [#tpu.dimension_semantics<parallel>], iteration_bounds = array<i64: 1>, scalar_prefetch = 0 : i64, scratch_operands = 0 : i64, tpu.core_type = #tpu.core_type<tc>, window_params = [{transform_indices = @transform_0, window_bounds = array<i64: 1, 24, 12>}, {transform_indices = @transform_1, window_bounds = array<i64: 1, 12, 12>}, {pipeline_mode = #tpu.pipeline_mode<synchronous>, transform_indices = @transform_2, window_bounds = array<i64: 760, 128>}, {transform_indices = @transform_3, window_bounds = array<i64: 1, 12, 4>}]} {
    %c0 = arith.constant 0 : index
    %c0_0 = arith.constant 0 : index
    %c0_1 = arith.constant 0 : index
    %0 = vector.load %arg1[%c0, %c0_0, %c0_1] : memref<1x24x12xf32, #tpu.memory_space<vmem>>, vector<1x24x12xf32>
    %1 = vector.shape_cast %0 : vector<1x24x12xf32> to vector<24x12xf32>
    %c0_2 = arith.constant 0 : index
    %c0_3 = arith.constant 0 : index
    %c0_4 = arith.constant 0 : index
    %2 = vector.load %arg2[%c0_2, %c0_3, %c0_4] : memref<1x12x12xf32, #tpu.memory_space<vmem>>, vector<1x12x12xf32>
    %3 = vector.shape_cast %2 : vector<1x12x12xf32> to vector<12x12xf32>
    %4 = vector.extract_strided_slice %1 {offsets = [0, 4], sizes = [24, 4], strides = [1, 1]} : vector<24x12xf32> to vector<24x4xf32>
    %c532 = arith.constant 532 : index
    %c0_5 = arith.constant 0 : index
    %5 = vector.load %arg3[%c532, %c0_5] : memref<760x128xf32, #tpu.memory_space<vmem>>, vector<24x24xf32>
    %cst = arith.constant dense<0.000000e+00> : vector<24x4xf32>
    %6 = tpu.matmul %5, %4, %cst {dimension_numbers = #tpu.dot_dimension_numbers<[1], [0], [0], [1], [0, 0, 1, 1], [], []>} : vector<24x24xf32>, vector<24x4xf32>, vector<24x4xf32> -> vector<24x4xf32>
    %cst_6 = arith.constant dense<0.000000e+00> : vector<24xf32>
    %7 = vector.multi_reduction <add>, %6, %cst_6 [1] : vector<24x4xf32> to vector<24xf32>
    %8 = vector.shape_cast %7 : vector<24xf32> to vector<24x1xf32>
    %9 = vector.broadcast %8 : vector<24x1xf32> to vector<24x4xf32>
    %10 = arith.subf %4, %9 : vector<24x4xf32>
    %11 = arith.mulf %10, %10 : vector<24x4xf32>
    %cst_7 = arith.constant dense<0.000000e+00> : vector<24x4xf32>
    %12 = tpu.matmul %5, %11, %cst_7 {dimension_numbers = #tpu.dot_dimension_numbers<[1], [0], [0], [1], [0, 0, 1, 1], [], []>} : vector<24x24xf32>, vector<24x4xf32>, vector<24x4xf32> -> vector<24x4xf32>
    %cst_8 = arith.constant dense<0.000000e+00> : vector<24xf32>
    %13 = vector.multi_reduction <add>, %12, %cst_8 [1] : vector<24x4xf32> to vector<24xf32>
    %14 = vector.shape_cast %13 : vector<24xf32> to vector<24x1xf32>
    %cst_9 = arith.constant 9.99999974E-6 : f32
    %15 = vector.broadcast %cst_9 : f32 to vector<24x1xf32>
    %16 = arith.addf %14, %15 : vector<24x1xf32>
    %17 = math.sqrt %16 : vector<24x1xf32>
    %18 = vector.broadcast %8 : vector<24x1xf32> to vector<24x12xf32>
    %19 = arith.subf %1, %18 : vector<24x12xf32>
    %cst_10 = arith.constant 9.99999974E-6 : f32
    %20 = vector.broadcast %cst_10 : f32 to vector<24x1xf32>
    %21 = arith.addf %14, %20 : vector<24x1xf32>
    %22 = math.rsqrt %21 : vector<24x1xf32>
    %23 = vector.broadcast %22 : vector<24x1xf32> to vector<24x12xf32>
    %24 = arith.mulf %19, %23 : vector<24x12xf32>
    %c556 = arith.constant 556 : index
    %c0_11 = arith.constant 0 : index
    %25 = vector.load %arg3[%c556, %c0_11] : memref<760x128xf32, #tpu.memory_space<vmem>>, vector<12x24xf32>
    %26 = tpu.concatenate %8, %17 in 1 : vector<24x1xf32>, vector<24x1xf32> -> vector<24x2xf32>
    %cst_12 = arith.constant dense<0.000000e+00> : vector<12x2xf32>
    %27 = tpu.matmul %25, %26, %cst_12 {dimension_numbers = #tpu.dot_dimension_numbers<[1], [0], [0], [1], [0, 0, 1, 1], [], []>} : vector<12x24xf32>, vector<24x2xf32>, vector<12x2xf32> -> vector<12x2xf32>
    %28 = vector.extract_strided_slice %27 {offsets = [0, 0], sizes = [12, 1], strides = [1, 1]} : vector<12x2xf32> to vector<12x1xf32>
    %29 = vector.extract_strided_slice %27 {offsets = [0, 1], sizes = [12, 1], strides = [1, 1]} : vector<12x2xf32> to vector<12x1xf32>
    %c0_13 = arith.constant 0 : index
    %c0_14 = arith.constant 0 : index
    %30 = vector.load %arg3[%c0_13, %c0_14] : memref<760x128xf32, #tpu.memory_space<vmem>>, vector<12x32xf32>
    %cst_15 = arith.constant dense<0.000000e+00> : vector<24x32xf32>
    %31 = tpu.matmul %24, %30, %cst_15 {dimension_numbers = #tpu.dot_dimension_numbers<[1], [0], [0], [1], [0, 0, 1, 1], [], []>} : vector<24x12xf32>, vector<12x32xf32>, vector<24x32xf32> -> vector<24x32xf32>
    %c24 = arith.constant 24 : index
    %c0_16 = arith.constant 0 : index
    %32 = vector.load %arg3[%c24, %c0_16] : memref<760x128xf32, #tpu.memory_space<vmem>>, vector<24x32xf32>
    %33 = arith.addf %31, %32 : vector<24x32xf32>
    %c12 = arith.constant 12 : index
    %c0_17 = arith.constant 0 : index
    %34 = vector.load %arg3[%c12, %c0_17] : memref<760x128xf32, #tpu.memory_space<vmem>>, vector<12x32xf32>
    %cst_18 = arith.constant dense<0.000000e+00> : vector<12x32xf32>
    %35 = tpu.matmul %3, %34, %cst_18 {dimension_numbers = #tpu.dot_dimension_numbers<[1], [0], [0], [1], [0, 0, 1, 1], [], []>} : vector<12x12xf32>, vector<12x32xf32>, vector<12x32xf32> -> vector<12x32xf32>
    %c48 = arith.constant 48 : index
    %c0_19 = arith.constant 0 : index
    %36 = vector.load %arg3[%c48, %c0_19] : memref<760x128xf32, #tpu.memory_space<vmem>>, vector<12x32xf32>
    %37 = arith.addf %35, %36 : vector<12x32xf32>
    %c60 = arith.constant 60 : index
    %c0_20 = arith.constant 0 : index
    %38 = vector.load %arg3[%c60, %c0_20] : memref<760x128xf32, #tpu.memory_space<vmem>>, vector<32x96xf32>
    %cst_21 = arith.constant dense<0.000000e+00> : vector<24x96xf32>
    %39 = tpu.matmul %33, %38, %cst_21 {dimension_numbers = #tpu.dot_dimension_numbers<[1], [0], [0], [1], [0, 0, 1, 1], [], []>} : vector<24x32xf32>, vector<32x96xf32>, vector<24x96xf32> -> vector<24x96xf32>
    %c92 = arith.constant 92 : index
    %c0_22 = arith.constant 0 : index
    %40 = vector.load %arg3[%c92, %c0_22] : memref<760x128xf32, #tpu.memory_space<vmem>>, vector<1x96xf32>
    %41 = vector.broadcast %40 : vector<1x96xf32> to vector<24x96xf32>
    %42 = arith.addf %39, %41 : vector<24x96xf32>
    %43 = vector.extract_strided_slice %42 {offsets = [0, 0], sizes = [24, 32], strides = [1, 1]} : vector<24x96xf32> to vector<24x32xf32>
    %44 = vector.extract_strided_slice %42 {offsets = [0, 32], sizes = [24, 32], strides = [1, 1]} : vector<24x96xf32> to vector<24x32xf32>
    %45 = vector.extract_strided_slice %42 {offsets = [0, 64], sizes = [24, 32], strides = [1, 1]} : vector<24x96xf32> to vector<24x32xf32>
    %c568 = arith.constant 568 : index
    %c0_23 = arith.constant 0 : index
    %46 = vector.load %arg3[%c568, %c0_23] : memref<760x128xf32, #tpu.memory_space<vmem>>, vector<96x96xf32>
    %c93 = arith.constant 93 : index
    %c0_24 = arith.constant 0 : index
    %47 = vector.load %arg3[%c93, %c0_24] : memref<760x128xf32, #tpu.memory_space<vmem>>, vector<32x32xf32>
    %c125 = arith.constant 125 : index
    %c0_25 = arith.constant 0 : index
    %48 = vector.load %arg3[%c125, %c0_25] : memref<760x128xf32, #tpu.memory_space<vmem>>, vector<1x32xf32>
    %49 = vector.extract_strided_slice %43 {offsets = [0, 0], sizes = [24, 8], strides = [1, 1]} : vector<24x32xf32> to vector<24x8xf32>
    %50 = vector.extract_strided_slice %43 {offsets = [0, 8], sizes = [24, 8], strides = [1, 1]} : vector<24x32xf32> to vector<24x8xf32>
    %51 = vector.extract_strided_slice %43 {offsets = [0, 16], sizes = [24, 8], strides = [1, 1]} : vector<24x32xf32> to vector<24x8xf32>
    %52 = vector.extract_strided_slice %43 {offsets = [0, 24], sizes = [24, 8], strides = [1, 1]} : vector<24x32xf32> to vector<24x8xf32>
    %53 = tpu.concatenate %49, %50, %51, %52 in 0 : vector<24x8xf32>, vector<24x8xf32>, vector<24x8xf32>, vector<24x8xf32> -> vector<96x8xf32>
    %54 = vector.extract_strided_slice %44 {offsets = [0, 0], sizes = [24, 8], strides = [1, 1]} : vector<24x32xf32> to vector<24x8xf32>
    %55 = vector.extract_strided_slice %44 {offsets = [0, 8], sizes = [24, 8], strides = [1, 1]} : vector<24x32xf32> to vector<24x8xf32>
    %56 = vector.extract_strided_slice %44 {offsets = [0, 16], sizes = [24, 8], strides = [1, 1]} : vector<24x32xf32> to vector<24x8xf32>
    %57 = vector.extract_strided_slice %44 {offsets = [0, 24], sizes = [24, 8], strides = [1, 1]} : vector<24x32xf32> to vector<24x8xf32>
    %58 = tpu.concatenate %54, %55, %56, %57 in 0 : vector<24x8xf32>, vector<24x8xf32>, vector<24x8xf32>, vector<24x8xf32> -> vector<96x8xf32>
    %59 = vector.extract_strided_slice %45 {offsets = [0, 0], sizes = [24, 8], strides = [1, 1]} : vector<24x32xf32> to vector<24x8xf32>
    %60 = vector.extract_strided_slice %45 {offsets = [0, 8], sizes = [24, 8], strides = [1, 1]} : vector<24x32xf32> to vector<24x8xf32>
    %61 = vector.extract_strided_slice %45 {offsets = [0, 16], sizes = [24, 8], strides = [1, 1]} : vector<24x32xf32> to vector<24x8xf32>
    %62 = vector.extract_strided_slice %45 {offsets = [0, 24], sizes = [24, 8], strides = [1, 1]} : vector<24x32xf32> to vector<24x8xf32>
    %63 = tpu.concatenate %59, %60, %61, %62 in 0 : vector<24x8xf32>, vector<24x8xf32>, vector<24x8xf32>, vector<24x8xf32> -> vector<96x8xf32>
    %cst_26 = arith.constant dense<0.000000e+00> : vector<96x96xf32>
    %64 = tpu.matmul %53, %58, %cst_26 {dimension_numbers = #tpu.dot_dimension_numbers<[1], [1], [0], [0], [0, 0, 1, 0], [], []>} : vector<96x8xf32>, vector<96x8xf32>, vector<96x96xf32> -> vector<96x96xf32>
    %cst_27 = arith.constant 0.353553385 : f32
    %65 = vector.broadcast %cst_27 : f32 to vector<96x96xf32>
    %66 = arith.mulf %64, %65 : vector<96x96xf32>
    %67 = arith.addf %66, %46 : vector<96x96xf32>
    %cst_28 = arith.constant dense<0xFF800000> : vector<96xf32>
    %68 = vector.multi_reduction <maximumf>, %67, %cst_28 [1] : vector<96x96xf32> to vector<96xf32>
    %69 = vector.shape_cast %68 : vector<96xf32> to vector<96x1xf32>
    %70 = vector.broadcast %69 : vector<96x1xf32> to vector<96x96xf32>
    %71 = arith.subf %67, %70 : vector<96x96xf32>
    %72 = math.exp %71 : vector<96x96xf32>
    %cst_29 = arith.constant dense<0.000000e+00> : vector<96xf32>
    %73 = vector.multi_reduction <add>, %72, %cst_29 [1] : vector<96x96xf32> to vector<96xf32>
    %74 = vector.shape_cast %73 : vector<96xf32> to vector<96x1xf32>
    %75 = tpu.reciprocal %74 {approx = true} : vector<96x1xf32> -> vector<96x1xf32>
    %76 = vector.broadcast %75 : vector<96x1xf32> to vector<96x96xf32>
    %77 = arith.mulf %72, %76 : vector<96x96xf32>
    %cst_30 = arith.constant dense<0.000000e+00> : vector<96x8xf32>
    %78 = tpu.matmul %77, %63, %cst_30 {dimension_numbers = #tpu.dot_dimension_numbers<[1], [0], [0], [1], [0, 0, 1, 1], [], []>} : vector<96x96xf32>, vector<96x8xf32>, vector<96x8xf32> -> vector<96x8xf32>
    %79 = vector.extract_strided_slice %78 {offsets = [0, 0], sizes = [24, 8], strides = [1, 1]} : vector<96x8xf32> to vector<24x8xf32>
    %80 = vector.extract_strided_slice %78 {offsets = [24, 0], sizes = [24, 8], strides = [1, 1]} : vector<96x8xf32> to vector<24x8xf32>
    %81 = vector.extract_strided_slice %78 {offsets = [48, 0], sizes = [24, 8], strides = [1, 1]} : vector<96x8xf32> to vector<24x8xf32>
    %82 = vector.extract_strided_slice %78 {offsets = [72, 0], sizes = [24, 8], strides = [1, 1]} : vector<96x8xf32> to vector<24x8xf32>
    %83 = tpu.concatenate %79, %80, %81, %82 in 1 : vector<24x8xf32>, vector<24x8xf32>, vector<24x8xf32>, vector<24x8xf32> -> vector<24x32xf32>
    %cst_31 = arith.constant dense<0.000000e+00> : vector<24x32xf32>
    %84 = tpu.matmul %83, %47, %cst_31 {dimension_numbers = #tpu.dot_dimension_numbers<[1], [0], [0], [1], [0, 0, 1, 1], [], []>} : vector<24x32xf32>, vector<32x32xf32>, vector<24x32xf32> -> vector<24x32xf32>
    %85 = vector.broadcast %48 : vector<1x32xf32> to vector<24x32xf32>
    %86 = arith.addf %84, %85 : vector<24x32xf32>
    %87 = arith.addf %33, %86 : vector<24x32xf32>
    %c126 = arith.constant 126 : index
    %c0_32 = arith.constant 0 : index
    %88 = vector.load %arg3[%c126, %c0_32] : memref<760x128xf32, #tpu.memory_space<vmem>>, vector<2x32xf32>
    %89 = vector.extract_strided_slice %88 {offsets = [0, 0], sizes = [1, 32], strides = [1, 1]} : vector<2x32xf32> to vector<1x32xf32>
    %90 = vector.extract_strided_slice %88 {offsets = [1, 0], sizes = [1, 32], strides = [1, 1]} : vector<2x32xf32> to vector<1x32xf32>
    %cst_33 = arith.constant dense<0.000000e+00> : vector<24xf32>
    %91 = vector.multi_reduction <add>, %87, %cst_33 [1] : vector<24x32xf32> to vector<24xf32>
    %92 = vector.shape_cast %91 : vector<24xf32> to vector<24x1xf32>
    %cst_34 = arith.constant 3.200000e+01 : f32
    %93 = vector.broadcast %cst_34 : f32 to vector<24x1xf32>
    %94 = arith.divf %92, %93 : vector<24x1xf32>
    %95 = vector.broadcast %94 : vector<24x1xf32> to vector<24x32xf32>
    %96 = arith.subf %87, %95 : vector<24x32xf32>
    %97 = arith.mulf %96, %96 : vector<24x32xf32>
    %cst_35 = arith.constant dense<0.000000e+00> : vector<24xf32>
    %98 = vector.multi_reduction <add>, %97, %cst_35 [1] : vector<24x32xf32> to vector<24xf32>
    %99 = vector.shape_cast %98 : vector<24xf32> to vector<24x1xf32>
    %cst_36 = arith.constant 3.200000e+01 : f32
    %100 = vector.broadcast %cst_36 : f32 to vector<24x1xf32>
    %101 = arith.divf %99, %100 : vector<24x1xf32>
    %102 = vector.broadcast %94 : vector<24x1xf32> to vector<24x32xf32>
    %103 = arith.subf %87, %102 : vector<24x32xf32>
    %cst_37 = arith.constant 9.99999974E-6 : f32
    %104 = vector.broadcast %cst_37 : f32 to vector<24x1xf32>
    %105 = arith.addf %101, %104 : vector<24x1xf32>
    %106 = math.rsqrt %105 : vector<24x1xf32>
    %107 = vector.broadcast %106 : vector<24x1xf32> to vector<24x32xf32>
    %108 = arith.mulf %103, %107 : vector<24x32xf32>
    %109 = vector.broadcast %89 : vector<1x32xf32> to vector<24x32xf32>
    %110 = arith.mulf %108, %109 : vector<24x32xf32>
    %111 = vector.broadcast %90 : vector<1x32xf32> to vector<24x32xf32>
    %112 = arith.addf %110, %111 : vector<24x32xf32>
    %c128 = arith.constant 128 : index
    %c0_38 = arith.constant 0 : index
    %113 = vector.load %arg3[%c128, %c0_38] : memref<760x128xf32, #tpu.memory_space<vmem>>, vector<32x64xf32>
    %cst_39 = arith.constant dense<0.000000e+00> : vector<24x64xf32>
    %114 = tpu.matmul %112, %113, %cst_39 {dimension_numbers = #tpu.dot_dimension_numbers<[1], [0], [0], [1], [0, 0, 1, 1], [], []>} : vector<24x32xf32>, vector<32x64xf32>, vector<24x64xf32> -> vector<24x64xf32>
    %c160 = arith.constant 160 : index
    %c0_40 = arith.constant 0 : index
    %115 = vector.load %arg3[%c160, %c0_40] : memref<760x128xf32, #tpu.memory_space<vmem>>, vector<1x64xf32>
    %116 = vector.broadcast %115 : vector<1x64xf32> to vector<24x64xf32>
    %117 = arith.addf %114, %116 : vector<24x64xf32>
    %118 = arith.mulf %117, %117 : vector<24x64xf32>
    %119 = arith.mulf %117, %118 : vector<24x64xf32>
    %cst_41 = arith.constant 4.471500e-02 : f32
    %120 = vector.broadcast %cst_41 : f32 to vector<24x64xf32>
    %121 = arith.mulf %120, %119 : vector<24x64xf32>
    %122 = arith.addf %117, %121 : vector<24x64xf32>
    %cst_42 = arith.constant 0.797884583 : f32
    %123 = vector.broadcast %cst_42 : f32 to vector<24x64xf32>
    %124 = arith.mulf %123, %122 : vector<24x64xf32>
    %125 = math.tanh %124 : vector<24x64xf32>
    %cst_43 = arith.constant 1.000000e+00 : f32
    %126 = vector.broadcast %cst_43 : f32 to vector<24x64xf32>
    %127 = arith.addf %126, %125 : vector<24x64xf32>
    %cst_44 = arith.constant 5.000000e-01 : f32
    %128 = vector.broadcast %cst_44 : f32 to vector<24x64xf32>
    %129 = arith.mulf %128, %127 : vector<24x64xf32>
    %130 = arith.mulf %117, %129 : vector<24x64xf32>
    %c161 = arith.constant 161 : index
    %c0_45 = arith.constant 0 : index
    %131 = vector.load %arg3[%c161, %c0_45] : memref<760x128xf32, #tpu.memory_space<vmem>>, vector<64x32xf32>
    %cst_46 = arith.constant dense<0.000000e+00> : vector<24x32xf32>
    %132 = tpu.matmul %130, %131, %cst_46 {dimension_numbers = #tpu.dot_dimension_numbers<[1], [0], [0], [1], [0, 0, 1, 1], [], []>} : vector<24x64xf32>, vector<64x32xf32>, vector<24x32xf32> -> vector<24x32xf32>
    %c225 = arith.constant 225 : index
    %c0_47 = arith.constant 0 : index
    %133 = vector.load %arg3[%c225, %c0_47] : memref<760x128xf32, #tpu.memory_space<vmem>>, vector<1x32xf32>
    %134 = vector.broadcast %133 : vector<1x32xf32> to vector<24x32xf32>
    %135 = arith.addf %132, %134 : vector<24x32xf32>
    %136 = arith.addf %112, %135 : vector<24x32xf32>
    %c226 = arith.constant 226 : index
    %c0_48 = arith.constant 0 : index
    %137 = vector.load %arg3[%c226, %c0_48] : memref<760x128xf32, #tpu.memory_space<vmem>>, vector<2x32xf32>
    %138 = vector.extract_strided_slice %137 {offsets = [0, 0], sizes = [1, 32], strides = [1, 1]} : vector<2x32xf32> to vector<1x32xf32>
    %139 = vector.extract_strided_slice %137 {offsets = [1, 0], sizes = [1, 32], strides = [1, 1]} : vector<2x32xf32> to vector<1x32xf32>
    %cst_49 = arith.constant dense<0.000000e+00> : vector<24xf32>
    %140 = vector.multi_reduction <add>, %136, %cst_49 [1] : vector<24x32xf32> to vector<24xf32>
    %141 = vector.shape_cast %140 : vector<24xf32> to vector<24x1xf32>
    %cst_50 = arith.constant 3.200000e+01 : f32
    %142 = vector.broadcast %cst_50 : f32 to vector<24x1xf32>
    %143 = arith.divf %141, %142 : vector<24x1xf32>
    %144 = vector.broadcast %143 : vector<24x1xf32> to vector<24x32xf32>
    %145 = arith.subf %136, %144 : vector<24x32xf32>
    %146 = arith.mulf %145, %145 : vector<24x32xf32>
    %cst_51 = arith.constant dense<0.000000e+00> : vector<24xf32>
    %147 = vector.multi_reduction <add>, %146, %cst_51 [1] : vector<24x32xf32> to vector<24xf32>
    %148 = vector.shape_cast %147 : vector<24xf32> to vector<24x1xf32>
    %cst_52 = arith.constant 3.200000e+01 : f32
    %149 = vector.broadcast %cst_52 : f32 to vector<24x1xf32>
    %150 = arith.divf %148, %149 : vector<24x1xf32>
    %151 = vector.broadcast %143 : vector<24x1xf32> to vector<24x32xf32>
    %152 = arith.subf %136, %151 : vector<24x32xf32>
    %cst_53 = arith.constant 9.99999974E-6 : f32
    %153 = vector.broadcast %cst_53 : f32 to vector<24x1xf32>
    %154 = arith.addf %150, %153 : vector<24x1xf32>
    %155 = math.rsqrt %154 : vector<24x1xf32>
    %156 = vector.broadcast %155 : vector<24x1xf32> to vector<24x32xf32>
    %157 = arith.mulf %152, %156 : vector<24x32xf32>
    %158 = vector.broadcast %138 : vector<1x32xf32> to vector<24x32xf32>
    %159 = arith.mulf %157, %158 : vector<24x32xf32>
    %160 = vector.broadcast %139 : vector<1x32xf32> to vector<24x32xf32>
    %161 = arith.addf %159, %160 : vector<24x32xf32>
    %c497 = arith.constant 497 : index
    %c0_54 = arith.constant 0 : index
    %162 = vector.load %arg3[%c497, %c0_54] : memref<760x128xf32, #tpu.memory_space<vmem>>, vector<2x32xf32>
    %163 = vector.extract_strided_slice %162 {offsets = [0, 0], sizes = [1, 32], strides = [1, 1]} : vector<2x32xf32> to vector<1x32xf32>
    %164 = vector.extract_strided_slice %162 {offsets = [1, 0], sizes = [1, 32], strides = [1, 1]} : vector<2x32xf32> to vector<1x32xf32>
    %cst_55 = arith.constant dense<0.000000e+00> : vector<24xf32>
    %165 = vector.multi_reduction <add>, %161, %cst_55 [1] : vector<24x32xf32> to vector<24xf32>
    %166 = vector.shape_cast %165 : vector<24xf32> to vector<24x1xf32>
    %cst_56 = arith.constant 3.200000e+01 : f32
    %167 = vector.broadcast %cst_56 : f32 to vector<24x1xf32>
    %168 = arith.divf %166, %167 : vector<24x1xf32>
    %169 = vector.broadcast %168 : vector<24x1xf32> to vector<24x32xf32>
    %170 = arith.subf %161, %169 : vector<24x32xf32>
    %171 = arith.mulf %170, %170 : vector<24x32xf32>
    %cst_57 = arith.constant dense<0.000000e+00> : vector<24xf32>
    %172 = vector.multi_reduction <add>, %171, %cst_57 [1] : vector<24x32xf32> to vector<24xf32>
    %173 = vector.shape_cast %172 : vector<24xf32> to vector<24x1xf32>
    %cst_58 = arith.constant 3.200000e+01 : f32
    %174 = vector.broadcast %cst_58 : f32 to vector<24x1xf32>
    %175 = arith.divf %173, %174 : vector<24x1xf32>
    %176 = vector.broadcast %168 : vector<24x1xf32> to vector<24x32xf32>
    %177 = arith.subf %161, %176 : vector<24x32xf32>
    %cst_59 = arith.constant 9.99999974E-6 : f32
    %178 = vector.broadcast %cst_59 : f32 to vector<24x1xf32>
    %179 = arith.addf %175, %178 : vector<24x1xf32>
    %180 = math.rsqrt %179 : vector<24x1xf32>
    %181 = vector.broadcast %180 : vector<24x1xf32> to vector<24x32xf32>
    %182 = arith.mulf %177, %181 : vector<24x32xf32>
    %183 = vector.broadcast %163 : vector<1x32xf32> to vector<24x32xf32>
    %184 = arith.mulf %182, %183 : vector<24x32xf32>
    %185 = vector.broadcast %164 : vector<1x32xf32> to vector<24x32xf32>
    %186 = arith.addf %184, %185 : vector<24x32xf32>
    %c228 = arith.constant 228 : index
    %c0_60 = arith.constant 0 : index
    %187 = vector.load %arg3[%c228, %c0_60] : memref<760x128xf32, #tpu.memory_space<vmem>>, vector<32x96xf32>
    %cst_61 = arith.constant dense<0.000000e+00> : vector<12x96xf32>
    %188 = tpu.matmul %37, %187, %cst_61 {dimension_numbers = #tpu.dot_dimension_numbers<[1], [0], [0], [1], [0, 0, 1, 1], [], []>} : vector<12x32xf32>, vector<32x96xf32>, vector<12x96xf32> -> vector<12x96xf32>
    %c260 = arith.constant 260 : index
    %c0_62 = arith.constant 0 : index
    %189 = vector.load %arg3[%c260, %c0_62] : memref<760x128xf32, #tpu.memory_space<vmem>>, vector<1x96xf32>
    %190 = vector.broadcast %189 : vector<1x96xf32> to vector<12x96xf32>
    %191 = arith.addf %188, %190 : vector<12x96xf32>
    %192 = vector.extract_strided_slice %191 {offsets = [0, 0], sizes = [12, 32], strides = [1, 1]} : vector<12x96xf32> to vector<12x32xf32>
    %193 = vector.extract_strided_slice %191 {offsets = [0, 32], sizes = [12, 32], strides = [1, 1]} : vector<12x96xf32> to vector<12x32xf32>
    %194 = vector.extract_strided_slice %191 {offsets = [0, 64], sizes = [12, 32], strides = [1, 1]} : vector<12x96xf32> to vector<12x32xf32>
    %c664 = arith.constant 664 : index
    %c0_63 = arith.constant 0 : index
    %195 = vector.load %arg3[%c664, %c0_63] : memref<760x128xf32, #tpu.memory_space<vmem>>, vector<48x48xf32>
    %c261 = arith.constant 261 : index
    %c0_64 = arith.constant 0 : index
    %196 = vector.load %arg3[%c261, %c0_64] : memref<760x128xf32, #tpu.memory_space<vmem>>, vector<32x32xf32>
    %c293 = arith.constant 293 : index
    %c0_65 = arith.constant 0 : index
    %197 = vector.load %arg3[%c293, %c0_65] : memref<760x128xf32, #tpu.memory_space<vmem>>, vector<1x32xf32>
    %198 = vector.extract_strided_slice %192 {offsets = [0, 0], sizes = [12, 8], strides = [1, 1]} : vector<12x32xf32> to vector<12x8xf32>
    %199 = vector.extract_strided_slice %192 {offsets = [0, 8], sizes = [12, 8], strides = [1, 1]} : vector<12x32xf32> to vector<12x8xf32>
    %200 = vector.extract_strided_slice %192 {offsets = [0, 16], sizes = [12, 8], strides = [1, 1]} : vector<12x32xf32> to vector<12x8xf32>
    %201 = vector.extract_strided_slice %192 {offsets = [0, 24], sizes = [12, 8], strides = [1, 1]} : vector<12x32xf32> to vector<12x8xf32>
    %202 = tpu.concatenate %198, %199, %200, %201 in 0 : vector<12x8xf32>, vector<12x8xf32>, vector<12x8xf32>, vector<12x8xf32> -> vector<48x8xf32>
    %203 = vector.extract_strided_slice %193 {offsets = [0, 0], sizes = [12, 8], strides = [1, 1]} : vector<12x32xf32> to vector<12x8xf32>
    %204 = vector.extract_strided_slice %193 {offsets = [0, 8], sizes = [12, 8], strides = [1, 1]} : vector<12x32xf32> to vector<12x8xf32>
    %205 = vector.extract_strided_slice %193 {offsets = [0, 16], sizes = [12, 8], strides = [1, 1]} : vector<12x32xf32> to vector<12x8xf32>
    %206 = vector.extract_strided_slice %193 {offsets = [0, 24], sizes = [12, 8], strides = [1, 1]} : vector<12x32xf32> to vector<12x8xf32>
    %207 = tpu.concatenate %203, %204, %205, %206 in 0 : vector<12x8xf32>, vector<12x8xf32>, vector<12x8xf32>, vector<12x8xf32> -> vector<48x8xf32>
    %208 = vector.extract_strided_slice %194 {offsets = [0, 0], sizes = [12, 8], strides = [1, 1]} : vector<12x32xf32> to vector<12x8xf32>
    %209 = vector.extract_strided_slice %194 {offsets = [0, 8], sizes = [12, 8], strides = [1, 1]} : vector<12x32xf32> to vector<12x8xf32>
    %210 = vector.extract_strided_slice %194 {offsets = [0, 16], sizes = [12, 8], strides = [1, 1]} : vector<12x32xf32> to vector<12x8xf32>
    %211 = vector.extract_strided_slice %194 {offsets = [0, 24], sizes = [12, 8], strides = [1, 1]} : vector<12x32xf32> to vector<12x8xf32>
    %212 = tpu.concatenate %208, %209, %210, %211 in 0 : vector<12x8xf32>, vector<12x8xf32>, vector<12x8xf32>, vector<12x8xf32> -> vector<48x8xf32>
    %cst_66 = arith.constant dense<0.000000e+00> : vector<48x48xf32>
    %213 = tpu.matmul %202, %207, %cst_66 {dimension_numbers = #tpu.dot_dimension_numbers<[1], [1], [0], [0], [0, 0, 1, 0], [], []>} : vector<48x8xf32>, vector<48x8xf32>, vector<48x48xf32> -> vector<48x48xf32>
    %cst_67 = arith.constant 0.353553385 : f32
    %214 = vector.broadcast %cst_67 : f32 to vector<48x48xf32>
    %215 = arith.mulf %213, %214 : vector<48x48xf32>
    %216 = arith.addf %215, %195 : vector<48x48xf32>
    %cst_68 = arith.constant dense<0xFF800000> : vector<48xf32>
    %217 = vector.multi_reduction <maximumf>, %216, %cst_68 [1] : vector<48x48xf32> to vector<48xf32>
    %218 = vector.shape_cast %217 : vector<48xf32> to vector<48x1xf32>
    %219 = vector.broadcast %218 : vector<48x1xf32> to vector<48x48xf32>
    %220 = arith.subf %216, %219 : vector<48x48xf32>
    %221 = math.exp %220 : vector<48x48xf32>
    %cst_69 = arith.constant dense<0.000000e+00> : vector<48xf32>
    %222 = vector.multi_reduction <add>, %221, %cst_69 [1] : vector<48x48xf32> to vector<48xf32>
    %223 = vector.shape_cast %222 : vector<48xf32> to vector<48x1xf32>
    %224 = tpu.reciprocal %223 {approx = true} : vector<48x1xf32> -> vector<48x1xf32>
    %225 = vector.broadcast %224 : vector<48x1xf32> to vector<48x48xf32>
    %226 = arith.mulf %221, %225 : vector<48x48xf32>
    %cst_70 = arith.constant dense<0.000000e+00> : vector<48x8xf32>
    %227 = tpu.matmul %226, %212, %cst_70 {dimension_numbers = #tpu.dot_dimension_numbers<[1], [0], [0], [1], [0, 0, 1, 1], [], []>} : vector<48x48xf32>, vector<48x8xf32>, vector<48x8xf32> -> vector<48x8xf32>
    %228 = vector.extract_strided_slice %227 {offsets = [0, 0], sizes = [12, 8], strides = [1, 1]} : vector<48x8xf32> to vector<12x8xf32>
    %229 = vector.extract_strided_slice %227 {offsets = [12, 0], sizes = [12, 8], strides = [1, 1]} : vector<48x8xf32> to vector<12x8xf32>
    %230 = vector.extract_strided_slice %227 {offsets = [24, 0], sizes = [12, 8], strides = [1, 1]} : vector<48x8xf32> to vector<12x8xf32>
    %231 = vector.extract_strided_slice %227 {offsets = [36, 0], sizes = [12, 8], strides = [1, 1]} : vector<48x8xf32> to vector<12x8xf32>
    %232 = tpu.concatenate %228, %229, %230, %231 in 1 : vector<12x8xf32>, vector<12x8xf32>, vector<12x8xf32>, vector<12x8xf32> -> vector<12x32xf32>
    %cst_71 = arith.constant dense<0.000000e+00> : vector<12x32xf32>
    %233 = tpu.matmul %232, %196, %cst_71 {dimension_numbers = #tpu.dot_dimension_numbers<[1], [0], [0], [1], [0, 0, 1, 1], [], []>} : vector<12x32xf32>, vector<32x32xf32>, vector<12x32xf32> -> vector<12x32xf32>
    %234 = vector.broadcast %197 : vector<1x32xf32> to vector<12x32xf32>
    %235 = arith.addf %233, %234 : vector<12x32xf32>
    %236 = arith.addf %37, %235 : vector<12x32xf32>
    %c294 = arith.constant 294 : index
    %c0_72 = arith.constant 0 : index
    %237 = vector.load %arg3[%c294, %c0_72] : memref<760x128xf32, #tpu.memory_space<vmem>>, vector<2x32xf32>
    %238 = vector.extract_strided_slice %237 {offsets = [0, 0], sizes = [1, 32], strides = [1, 1]} : vector<2x32xf32> to vector<1x32xf32>
    %239 = vector.extract_strided_slice %237 {offsets = [1, 0], sizes = [1, 32], strides = [1, 1]} : vector<2x32xf32> to vector<1x32xf32>
    %cst_73 = arith.constant dense<0.000000e+00> : vector<12xf32>
    %240 = vector.multi_reduction <add>, %236, %cst_73 [1] : vector<12x32xf32> to vector<12xf32>
    %241 = vector.shape_cast %240 : vector<12xf32> to vector<12x1xf32>
    %cst_74 = arith.constant 3.200000e+01 : f32
    %242 = vector.broadcast %cst_74 : f32 to vector<12x1xf32>
    %243 = arith.divf %241, %242 : vector<12x1xf32>
    %244 = vector.broadcast %243 : vector<12x1xf32> to vector<12x32xf32>
    %245 = arith.subf %236, %244 : vector<12x32xf32>
    %246 = arith.mulf %245, %245 : vector<12x32xf32>
    %cst_75 = arith.constant dense<0.000000e+00> : vector<12xf32>
    %247 = vector.multi_reduction <add>, %246, %cst_75 [1] : vector<12x32xf32> to vector<12xf32>
    %248 = vector.shape_cast %247 : vector<12xf32> to vector<12x1xf32>
    %cst_76 = arith.constant 3.200000e+01 : f32
    %249 = vector.broadcast %cst_76 : f32 to vector<12x1xf32>
    %250 = arith.divf %248, %249 : vector<12x1xf32>
    %251 = vector.broadcast %243 : vector<12x1xf32> to vector<12x32xf32>
    %252 = arith.subf %236, %251 : vector<12x32xf32>
    %cst_77 = arith.constant 9.99999974E-6 : f32
    %253 = vector.broadcast %cst_77 : f32 to vector<12x1xf32>
    %254 = arith.addf %250, %253 : vector<12x1xf32>
    %255 = math.rsqrt %254 : vector<12x1xf32>
    %256 = vector.broadcast %255 : vector<12x1xf32> to vector<12x32xf32>
    %257 = arith.mulf %252, %256 : vector<12x32xf32>
    %258 = vector.broadcast %238 : vector<1x32xf32> to vector<12x32xf32>
    %259 = arith.mulf %257, %258 : vector<12x32xf32>
    %260 = vector.broadcast %239 : vector<1x32xf32> to vector<12x32xf32>
    %261 = arith.addf %259, %260 : vector<12x32xf32>
    %c296 = arith.constant 296 : index
    %c0_78 = arith.constant 0 : index
    %262 = vector.load %arg3[%c296, %c0_78] : memref<760x128xf32, #tpu.memory_space<vmem>>, vector<32x32xf32>
    %cst_79 = arith.constant dense<0.000000e+00> : vector<12x32xf32>
    %263 = tpu.matmul %261, %262, %cst_79 {dimension_numbers = #tpu.dot_dimension_numbers<[1], [0], [0], [1], [0, 0, 1, 1], [], []>} : vector<12x32xf32>, vector<32x32xf32>, vector<12x32xf32> -> vector<12x32xf32>
    %c328 = arith.constant 328 : index
    %c0_80 = arith.constant 0 : index
    %264 = vector.load %arg3[%c328, %c0_80] : memref<760x128xf32, #tpu.memory_space<vmem>>, vector<1x32xf32>
    %265 = vector.broadcast %264 : vector<1x32xf32> to vector<12x32xf32>
    %266 = arith.addf %263, %265 : vector<12x32xf32>
    %c329 = arith.constant 329 : index
    %c0_81 = arith.constant 0 : index
    %267 = vector.load %arg3[%c329, %c0_81] : memref<760x128xf32, #tpu.memory_space<vmem>>, vector<32x64xf32>
    %cst_82 = arith.constant dense<0.000000e+00> : vector<24x64xf32>
    %268 = tpu.matmul %186, %267, %cst_82 {dimension_numbers = #tpu.dot_dimension_numbers<[1], [0], [0], [1], [0, 0, 1, 1], [], []>} : vector<24x32xf32>, vector<32x64xf32>, vector<24x64xf32> -> vector<24x64xf32>
    %c361 = arith.constant 361 : index
    %c0_83 = arith.constant 0 : index
    %269 = vector.load %arg3[%c361, %c0_83] : memref<760x128xf32, #tpu.memory_space<vmem>>, vector<1x64xf32>
    %270 = vector.broadcast %269 : vector<1x64xf32> to vector<24x64xf32>
    %271 = arith.addf %268, %270 : vector<24x64xf32>
    %272 = vector.extract_strided_slice %271 {offsets = [0, 0], sizes = [24, 32], strides = [1, 1]} : vector<24x64xf32> to vector<24x32xf32>
    %273 = vector.extract_strided_slice %271 {offsets = [0, 32], sizes = [24, 32], strides = [1, 1]} : vector<24x64xf32> to vector<24x32xf32>
    %c712 = arith.constant 712 : index
    %c0_84 = arith.constant 0 : index
    %274 = vector.load %arg3[%c712, %c0_84] : memref<760x128xf32, #tpu.memory_space<vmem>>, vector<48x96xf32>
    %c362 = arith.constant 362 : index
    %c0_85 = arith.constant 0 : index
    %275 = vector.load %arg3[%c362, %c0_85] : memref<760x128xf32, #tpu.memory_space<vmem>>, vector<32x32xf32>
    %c394 = arith.constant 394 : index
    %c0_86 = arith.constant 0 : index
    %276 = vector.load %arg3[%c394, %c0_86] : memref<760x128xf32, #tpu.memory_space<vmem>>, vector<1x32xf32>
    %277 = vector.extract_strided_slice %266 {offsets = [0, 0], sizes = [12, 8], strides = [1, 1]} : vector<12x32xf32> to vector<12x8xf32>
    %278 = vector.extract_strided_slice %266 {offsets = [0, 8], sizes = [12, 8], strides = [1, 1]} : vector<12x32xf32> to vector<12x8xf32>
    %279 = vector.extract_strided_slice %266 {offsets = [0, 16], sizes = [12, 8], strides = [1, 1]} : vector<12x32xf32> to vector<12x8xf32>
    %280 = vector.extract_strided_slice %266 {offsets = [0, 24], sizes = [12, 8], strides = [1, 1]} : vector<12x32xf32> to vector<12x8xf32>
    %281 = tpu.concatenate %277, %278, %279, %280 in 0 : vector<12x8xf32>, vector<12x8xf32>, vector<12x8xf32>, vector<12x8xf32> -> vector<48x8xf32>
    %282 = vector.extract_strided_slice %272 {offsets = [0, 0], sizes = [24, 8], strides = [1, 1]} : vector<24x32xf32> to vector<24x8xf32>
    %283 = vector.extract_strided_slice %272 {offsets = [0, 8], sizes = [24, 8], strides = [1, 1]} : vector<24x32xf32> to vector<24x8xf32>
    %284 = vector.extract_strided_slice %272 {offsets = [0, 16], sizes = [24, 8], strides = [1, 1]} : vector<24x32xf32> to vector<24x8xf32>
    %285 = vector.extract_strided_slice %272 {offsets = [0, 24], sizes = [24, 8], strides = [1, 1]} : vector<24x32xf32> to vector<24x8xf32>
    %286 = tpu.concatenate %282, %283, %284, %285 in 0 : vector<24x8xf32>, vector<24x8xf32>, vector<24x8xf32>, vector<24x8xf32> -> vector<96x8xf32>
    %287 = vector.extract_strided_slice %273 {offsets = [0, 0], sizes = [24, 8], strides = [1, 1]} : vector<24x32xf32> to vector<24x8xf32>
    %288 = vector.extract_strided_slice %273 {offsets = [0, 8], sizes = [24, 8], strides = [1, 1]} : vector<24x32xf32> to vector<24x8xf32>
    %289 = vector.extract_strided_slice %273 {offsets = [0, 16], sizes = [24, 8], strides = [1, 1]} : vector<24x32xf32> to vector<24x8xf32>
    %290 = vector.extract_strided_slice %273 {offsets = [0, 24], sizes = [24, 8], strides = [1, 1]} : vector<24x32xf32> to vector<24x8xf32>
    %291 = tpu.concatenate %287, %288, %289, %290 in 0 : vector<24x8xf32>, vector<24x8xf32>, vector<24x8xf32>, vector<24x8xf32> -> vector<96x8xf32>
    %cst_87 = arith.constant dense<0.000000e+00> : vector<48x96xf32>
    %292 = tpu.matmul %281, %286, %cst_87 {dimension_numbers = #tpu.dot_dimension_numbers<[1], [1], [0], [0], [0, 0, 1, 0], [], []>} : vector<48x8xf32>, vector<96x8xf32>, vector<48x96xf32> -> vector<48x96xf32>
    %cst_88 = arith.constant 0.353553385 : f32
    %293 = vector.broadcast %cst_88 : f32 to vector<48x96xf32>
    %294 = arith.mulf %292, %293 : vector<48x96xf32>
    %295 = arith.addf %294, %274 : vector<48x96xf32>
    %cst_89 = arith.constant dense<0xFF800000> : vector<48xf32>
    %296 = vector.multi_reduction <maximumf>, %295, %cst_89 [1] : vector<48x96xf32> to vector<48xf32>
    %297 = vector.shape_cast %296 : vector<48xf32> to vector<48x1xf32>
    %298 = vector.broadcast %297 : vector<48x1xf32> to vector<48x96xf32>
    %299 = arith.subf %295, %298 : vector<48x96xf32>
    %300 = math.exp %299 : vector<48x96xf32>
    %cst_90 = arith.constant dense<0.000000e+00> : vector<48xf32>
    %301 = vector.multi_reduction <add>, %300, %cst_90 [1] : vector<48x96xf32> to vector<48xf32>
    %302 = vector.shape_cast %301 : vector<48xf32> to vector<48x1xf32>
    %303 = tpu.reciprocal %302 {approx = true} : vector<48x1xf32> -> vector<48x1xf32>
    %304 = vector.broadcast %303 : vector<48x1xf32> to vector<48x96xf32>
    %305 = arith.mulf %300, %304 : vector<48x96xf32>
    %cst_91 = arith.constant dense<0.000000e+00> : vector<48x8xf32>
    %306 = tpu.matmul %305, %291, %cst_91 {dimension_numbers = #tpu.dot_dimension_numbers<[1], [0], [0], [1], [0, 0, 1, 1], [], []>} : vector<48x96xf32>, vector<96x8xf32>, vector<48x8xf32> -> vector<48x8xf32>
    %307 = vector.extract_strided_slice %306 {offsets = [0, 0], sizes = [12, 8], strides = [1, 1]} : vector<48x8xf32> to vector<12x8xf32>
    %308 = vector.extract_strided_slice %306 {offsets = [12, 0], sizes = [12, 8], strides = [1, 1]} : vector<48x8xf32> to vector<12x8xf32>
    %309 = vector.extract_strided_slice %306 {offsets = [24, 0], sizes = [12, 8], strides = [1, 1]} : vector<48x8xf32> to vector<12x8xf32>
    %310 = vector.extract_strided_slice %306 {offsets = [36, 0], sizes = [12, 8], strides = [1, 1]} : vector<48x8xf32> to vector<12x8xf32>
    %311 = tpu.concatenate %307, %308, %309, %310 in 1 : vector<12x8xf32>, vector<12x8xf32>, vector<12x8xf32>, vector<12x8xf32> -> vector<12x32xf32>
    %cst_92 = arith.constant dense<0.000000e+00> : vector<12x32xf32>
    %312 = tpu.matmul %311, %275, %cst_92 {dimension_numbers = #tpu.dot_dimension_numbers<[1], [0], [0], [1], [0, 0, 1, 1], [], []>} : vector<12x32xf32>, vector<32x32xf32>, vector<12x32xf32> -> vector<12x32xf32>
    %313 = vector.broadcast %276 : vector<1x32xf32> to vector<12x32xf32>
    %314 = arith.addf %312, %313 : vector<12x32xf32>
    %315 = arith.addf %261, %314 : vector<12x32xf32>
    %c395 = arith.constant 395 : index
    %c0_93 = arith.constant 0 : index
    %316 = vector.load %arg3[%c395, %c0_93] : memref<760x128xf32, #tpu.memory_space<vmem>>, vector<2x32xf32>
    %317 = vector.extract_strided_slice %316 {offsets = [0, 0], sizes = [1, 32], strides = [1, 1]} : vector<2x32xf32> to vector<1x32xf32>
    %318 = vector.extract_strided_slice %316 {offsets = [1, 0], sizes = [1, 32], strides = [1, 1]} : vector<2x32xf32> to vector<1x32xf32>
    %cst_94 = arith.constant dense<0.000000e+00> : vector<12xf32>
    %319 = vector.multi_reduction <add>, %315, %cst_94 [1] : vector<12x32xf32> to vector<12xf32>
    %320 = vector.shape_cast %319 : vector<12xf32> to vector<12x1xf32>
    %cst_95 = arith.constant 3.200000e+01 : f32
    %321 = vector.broadcast %cst_95 : f32 to vector<12x1xf32>
    %322 = arith.divf %320, %321 : vector<12x1xf32>
    %323 = vector.broadcast %322 : vector<12x1xf32> to vector<12x32xf32>
    %324 = arith.subf %315, %323 : vector<12x32xf32>
    %325 = arith.mulf %324, %324 : vector<12x32xf32>
    %cst_96 = arith.constant dense<0.000000e+00> : vector<12xf32>
    %326 = vector.multi_reduction <add>, %325, %cst_96 [1] : vector<12x32xf32> to vector<12xf32>
    %327 = vector.shape_cast %326 : vector<12xf32> to vector<12x1xf32>
    %cst_97 = arith.constant 3.200000e+01 : f32
    %328 = vector.broadcast %cst_97 : f32 to vector<12x1xf32>
    %329 = arith.divf %327, %328 : vector<12x1xf32>
    %330 = vector.broadcast %322 : vector<12x1xf32> to vector<12x32xf32>
    %331 = arith.subf %315, %330 : vector<12x32xf32>
    %cst_98 = arith.constant 9.99999974E-6 : f32
    %332 = vector.broadcast %cst_98 : f32 to vector<12x1xf32>
    %333 = arith.addf %329, %332 : vector<12x1xf32>
    %334 = math.rsqrt %333 : vector<12x1xf32>
    %335 = vector.broadcast %334 : vector<12x1xf32> to vector<12x32xf32>
    %336 = arith.mulf %331, %335 : vector<12x32xf32>
    %337 = vector.broadcast %317 : vector<1x32xf32> to vector<12x32xf32>
    %338 = arith.mulf %336, %337 : vector<12x32xf32>
    %339 = vector.broadcast %318 : vector<1x32xf32> to vector<12x32xf32>
    %340 = arith.addf %338, %339 : vector<12x32xf32>
    %c397 = arith.constant 397 : index
    %c0_99 = arith.constant 0 : index
    %341 = vector.load %arg3[%c397, %c0_99] : memref<760x128xf32, #tpu.memory_space<vmem>>, vector<32x64xf32>
    %cst_100 = arith.constant dense<0.000000e+00> : vector<12x64xf32>
    %342 = tpu.matmul %340, %341, %cst_100 {dimension_numbers = #tpu.dot_dimension_numbers<[1], [0], [0], [1], [0, 0, 1, 1], [], []>} : vector<12x32xf32>, vector<32x64xf32>, vector<12x64xf32> -> vector<12x64xf32>
    %c429 = arith.constant 429 : index
    %c0_101 = arith.constant 0 : index
    %343 = vector.load %arg3[%c429, %c0_101] : memref<760x128xf32, #tpu.memory_space<vmem>>, vector<1x64xf32>
    %344 = vector.broadcast %343 : vector<1x64xf32> to vector<12x64xf32>
    %345 = arith.addf %342, %344 : vector<12x64xf32>
    %346 = arith.mulf %345, %345 : vector<12x64xf32>
    %347 = arith.mulf %345, %346 : vector<12x64xf32>
    %cst_102 = arith.constant 4.471500e-02 : f32
    %348 = vector.broadcast %cst_102 : f32 to vector<12x64xf32>
    %349 = arith.mulf %348, %347 : vector<12x64xf32>
    %350 = arith.addf %345, %349 : vector<12x64xf32>
    %cst_103 = arith.constant 0.797884583 : f32
    %351 = vector.broadcast %cst_103 : f32 to vector<12x64xf32>
    %352 = arith.mulf %351, %350 : vector<12x64xf32>
    %353 = math.tanh %352 : vector<12x64xf32>
    %cst_104 = arith.constant 1.000000e+00 : f32
    %354 = vector.broadcast %cst_104 : f32 to vector<12x64xf32>
    %355 = arith.addf %354, %353 : vector<12x64xf32>
    %cst_105 = arith.constant 5.000000e-01 : f32
    %356 = vector.broadcast %cst_105 : f32 to vector<12x64xf32>
    %357 = arith.mulf %356, %355 : vector<12x64xf32>
    %358 = arith.mulf %345, %357 : vector<12x64xf32>
    %c430 = arith.constant 430 : index
    %c0_106 = arith.constant 0 : index
    %359 = vector.load %arg3[%c430, %c0_106] : memref<760x128xf32, #tpu.memory_space<vmem>>, vector<64x32xf32>
    %cst_107 = arith.constant dense<0.000000e+00> : vector<12x32xf32>
    %360 = tpu.matmul %358, %359, %cst_107 {dimension_numbers = #tpu.dot_dimension_numbers<[1], [0], [0], [1], [0, 0, 1, 1], [], []>} : vector<12x64xf32>, vector<64x32xf32>, vector<12x32xf32> -> vector<12x32xf32>
    %c494 = arith.constant 494 : index
    %c0_108 = arith.constant 0 : index
    %361 = vector.load %arg3[%c494, %c0_108] : memref<760x128xf32, #tpu.memory_space<vmem>>, vector<1x32xf32>
    %362 = vector.broadcast %361 : vector<1x32xf32> to vector<12x32xf32>
    %363 = arith.addf %360, %362 : vector<12x32xf32>
    %364 = arith.addf %340, %363 : vector<12x32xf32>
    %c495 = arith.constant 495 : index
    %c0_109 = arith.constant 0 : index
    %365 = vector.load %arg3[%c495, %c0_109] : memref<760x128xf32, #tpu.memory_space<vmem>>, vector<2x32xf32>
    %366 = vector.extract_strided_slice %365 {offsets = [0, 0], sizes = [1, 32], strides = [1, 1]} : vector<2x32xf32> to vector<1x32xf32>
    %367 = vector.extract_strided_slice %365 {offsets = [1, 0], sizes = [1, 32], strides = [1, 1]} : vector<2x32xf32> to vector<1x32xf32>
    %cst_110 = arith.constant dense<0.000000e+00> : vector<12xf32>
    %368 = vector.multi_reduction <add>, %364, %cst_110 [1] : vector<12x32xf32> to vector<12xf32>
    %369 = vector.shape_cast %368 : vector<12xf32> to vector<12x1xf32>
    %cst_111 = arith.constant 3.200000e+01 : f32
    %370 = vector.broadcast %cst_111 : f32 to vector<12x1xf32>
    %371 = arith.divf %369, %370 : vector<12x1xf32>
    %372 = vector.broadcast %371 : vector<12x1xf32> to vector<12x32xf32>
    %373 = arith.subf %364, %372 : vector<12x32xf32>
    %374 = arith.mulf %373, %373 : vector<12x32xf32>
    %cst_112 = arith.constant dense<0.000000e+00> : vector<12xf32>
    %375 = vector.multi_reduction <add>, %374, %cst_112 [1] : vector<12x32xf32> to vector<12xf32>
    %376 = vector.shape_cast %375 : vector<12xf32> to vector<12x1xf32>
    %cst_113 = arith.constant 3.200000e+01 : f32
    %377 = vector.broadcast %cst_113 : f32 to vector<12x1xf32>
    %378 = arith.divf %376, %377 : vector<12x1xf32>
    %379 = vector.broadcast %371 : vector<12x1xf32> to vector<12x32xf32>
    %380 = arith.subf %364, %379 : vector<12x32xf32>
    %cst_114 = arith.constant 9.99999974E-6 : f32
    %381 = vector.broadcast %cst_114 : f32 to vector<12x1xf32>
    %382 = arith.addf %378, %381 : vector<12x1xf32>
    %383 = math.rsqrt %382 : vector<12x1xf32>
    %384 = vector.broadcast %383 : vector<12x1xf32> to vector<12x32xf32>
    %385 = arith.mulf %380, %384 : vector<12x32xf32>
    %386 = vector.broadcast %366 : vector<1x32xf32> to vector<12x32xf32>
    %387 = arith.mulf %385, %386 : vector<12x32xf32>
    %388 = vector.broadcast %367 : vector<1x32xf32> to vector<12x32xf32>
    %389 = arith.addf %387, %388 : vector<12x32xf32>
    %c497_115 = arith.constant 497 : index
    %c0_116 = arith.constant 0 : index
    %390 = vector.load %arg3[%c497_115, %c0_116] : memref<760x128xf32, #tpu.memory_space<vmem>>, vector<2x32xf32>
    %391 = vector.extract_strided_slice %390 {offsets = [0, 0], sizes = [1, 32], strides = [1, 1]} : vector<2x32xf32> to vector<1x32xf32>
    %392 = vector.extract_strided_slice %390 {offsets = [1, 0], sizes = [1, 32], strides = [1, 1]} : vector<2x32xf32> to vector<1x32xf32>
    %cst_117 = arith.constant dense<0.000000e+00> : vector<12xf32>
    %393 = vector.multi_reduction <add>, %389, %cst_117 [1] : vector<12x32xf32> to vector<12xf32>
    %394 = vector.shape_cast %393 : vector<12xf32> to vector<12x1xf32>
    %cst_118 = arith.constant 3.200000e+01 : f32
    %395 = vector.broadcast %cst_118 : f32 to vector<12x1xf32>
    %396 = arith.divf %394, %395 : vector<12x1xf32>
    %397 = vector.broadcast %396 : vector<12x1xf32> to vector<12x32xf32>
    %398 = arith.subf %389, %397 : vector<12x32xf32>
    %399 = arith.mulf %398, %398 : vector<12x32xf32>
    %cst_119 = arith.constant dense<0.000000e+00> : vector<12xf32>
    %400 = vector.multi_reduction <add>, %399, %cst_119 [1] : vector<12x32xf32> to vector<12xf32>
    %401 = vector.shape_cast %400 : vector<12xf32> to vector<12x1xf32>
    %cst_120 = arith.constant 3.200000e+01 : f32
    %402 = vector.broadcast %cst_120 : f32 to vector<12x1xf32>
    %403 = arith.divf %401, %402 : vector<12x1xf32>
    %404 = vector.broadcast %396 : vector<12x1xf32> to vector<12x32xf32>
    %405 = arith.subf %389, %404 : vector<12x32xf32>
    %cst_121 = arith.constant 9.99999974E-6 : f32
    %406 = vector.broadcast %cst_121 : f32 to vector<12x1xf32>
    %407 = arith.addf %403, %406 : vector<12x1xf32>
    %408 = math.rsqrt %407 : vector<12x1xf32>
    %409 = vector.broadcast %408 : vector<12x1xf32> to vector<12x32xf32>
    %410 = arith.mulf %405, %409 : vector<12x32xf32>
    %411 = vector.broadcast %391 : vector<1x32xf32> to vector<12x32xf32>
    %412 = arith.mulf %410, %411 : vector<12x32xf32>
    %413 = vector.broadcast %392 : vector<1x32xf32> to vector<12x32xf32>
    %414 = arith.addf %412, %413 : vector<12x32xf32>
    %c499 = arith.constant 499 : index
    %c0_122 = arith.constant 0 : index
    %415 = vector.load %arg3[%c499, %c0_122] : memref<760x128xf32, #tpu.memory_space<vmem>>, vector<32x4xf32>
    %cst_123 = arith.constant dense<0.000000e+00> : vector<12x4xf32>
    %416 = tpu.matmul %414, %415, %cst_123 {dimension_numbers = #tpu.dot_dimension_numbers<[1], [0], [0], [1], [0, 0, 1, 1], [], []>} : vector<12x32xf32>, vector<32x4xf32>, vector<12x4xf32> -> vector<12x4xf32>
    %c531 = arith.constant 531 : index
    %c0_124 = arith.constant 0 : index
    %417 = vector.load %arg3[%c531, %c0_124] : memref<760x128xf32, #tpu.memory_space<vmem>>, vector<1x4xf32>
    %418 = vector.broadcast %417 : vector<1x4xf32> to vector<12x4xf32>
    %419 = arith.addf %416, %418 : vector<12x4xf32>
    %420 = vector.broadcast %29 : vector<12x1xf32> to vector<12x4xf32>
    %421 = arith.mulf %419, %420 : vector<12x4xf32>
    %422 = vector.broadcast %28 : vector<12x1xf32> to vector<12x4xf32>
    %423 = arith.addf %421, %422 : vector<12x4xf32>
    %c0_125 = arith.constant 0 : index
    %c0_126 = arith.constant 0 : index
    %c0_127 = arith.constant 0 : index
    %424 = vector.load %arg4[%c0_125, %c0_126, %c0_127] : memref<1x12x4xf32, #tpu.memory_space<vmem>>, vector<1x12x4xf32>
    %425 = vector.shape_cast %424 : vector<1x12x4xf32> to vector<12x4xf32>
    %426 = vector.shape_cast %423 : vector<12x4xf32> to vector<1x12x4xf32>
    tpu.vector_store %arg4[%c0_125, %c0_126, %c0_127], %426 {strides = array<i32>} : memref<1x12x4xf32, #tpu.memory_space<vmem>>, vector<1x12x4xf32>,
    return
  }
  func.func @transform_0(%arg0: i32) -> (i32, i32, i32) {
    %c0_i32 = arith.constant 0 : i32
    %c0_i32_0 = arith.constant 0 : i32
    %c0_i32_1 = arith.constant 0 : i32
    return %arg0, %c0_i32, %c0_i32_0 : i32, i32, i32
  }
  func.func @transform_1(%arg0: i32) -> (i32, i32, i32) {
    %c0_i32 = arith.constant 0 : i32
    %c0_i32_0 = arith.constant 0 : i32
    %c0_i32_1 = arith.constant 0 : i32
    return %arg0, %c0_i32, %c0_i32_0 : i32, i32, i32
  }
  func.func @transform_2(%arg0: i32) -> (i32, i32) {
    %c0_i32 = arith.constant 0 : i32
    %c0_i32_0 = arith.constant 0 : i32
    %c0_i32_1 = arith.constant 0 : i32
    return %c0_i32, %c0_i32_0 : i32, i32
  }
  func.func @transform_3(%arg0: i32) -> (i32, i32, i32) {
    %c0_i32 = arith.constant 0 : i32
    %c0_i32_0 = arith.constant 0 : i32
    %c0_i32_1 = arith.constant 0 : i32
    return %arg0, %c0_i32, %c0_i32_0 : i32, i32, i32
  }
}

</mosaic_0001>

<bundles_post_ra>
// kernel: forward.1
= control target key start
LH: loop header
LB: loop body
LE: loop exit
PB: predicated region body
PF: predicated region fallthrough
CT: control target
= control target key end

     0   :  { %8 = vsyncpa [#allocation3], 0  ;;  %s4956_s12 = smov [#allocation2]   ;;  %s5784_s0 = inlined_call_operand.vmem [shape: f32[1,24,12], index: 0, kind: input, shape index: {}]   ;;  %s5785_s1 = inlined_call_operand.vmem [shape: f32[1,12,12], index: 1, kind: input, shape index: {}]   ;;  %s5786_s2 = inlined_call_operand.hbm [shape: f32[760,128], index: 2, kind: input, shape index: {}]   ;;  %s5787_s3 = inlined_call_operand.vmem [shape: f32[1,12,4], index: 3, kind: output, shape index: {}]  }
   0x1   :  { %s18_s13 = sshll.u32 %s4956_s12, 4  ;;  %s4932_s16 = scalar_lea.hbm %s5786_s2, 12160  ;;  %s19_s13 = int_to_ptr.vmem [resolvable:$true] %s18_s13 }
   0x2   :  { %p4933_p0 = scmp.ne.s32.totalorder %s5786_s2, %s4932_s16  ;;  %p4936_p1 = scmp.lt.u32.totalorder %s4932_s16, %s5786_s2 }
   0x4   :  { %p4938_p2 = pnand %p4936_p1, %p4933_p0 }
   0x6   :  { %4941 = shalt.err (!%p4938_p2)
}
   0x7   :  { %s4942_s21 = scalar_lea.vmem %s19_s13, 12160  ;;  %p4947_p4 = scmp.lt.s32.totalorder %s19_s13, %s19_s13 }
   0x8   :  { %p4943_p3 = scmp.ne.s32.totalorder %s19_s13, %s4942_s21  ;;  %p4948_p5 = scmp.lt.s32.totalorder %s4942_s21, %s4942_s21 }
   0xa   :  { %p4949_p6 = por %p4948_p5, %p4947_p4 }
   0xc   :  { %p4950_p7 = pnand %p4949_p6, %p4943_p3 }
   0xe   :  { %4953 = shalt.err (!%p4950_p7)
}
   0xf   :  { %s4957_s22 = smov 128   ;;  %s4958_s23 = smov 8  }
  0x10   :  { %24 = dma.hbm_to_vmem [thread:$0]  %s5786_s2, 12160, %s19_s13, [#allocation3], %s4957_s22, %s4957_s22, %s4958_s23  }
  0x11   :  { %4954 = dma.done.wait [#allocation3], 12160  }
  0x12   :  { %4955 = vsyncadd [#allocation3], 4294955136  ;;  %v4959_v0 = vmov 0.0|0.0   ;;  %vm4960_vm0 = vmmov 0   ;;  %v4961_v1 = vmov 0.0   ;;  %v28_v2 = vld [vmem:[%s5784_s0] sm:$0xff] }
  0x13   :  { %4350 = vmatprep.subr.bf16.mxu0 %v4959_v0  ;;  %4353 = vmatprep.subr.bf16.mxu1 %v4959_v0  ;;  %v29_v3 = vld [vmem:[%s5784_s0 + $0x8] sm:$0xff]  ;;  %s4962_s29 = smov 124   ;;  %v30_v5 = vld [vmem:[%s5784_s0 + $0x10] sm:$0xff]  ;;  %vm48_vm1 = vcmask 195584   ;;  %v34_v12 = vld [vmem:[#allocation2 + $0x21c] sm:$0xff]  ;;  %vm138_vm2 = vcmask 31744  }
  0x14   :  { %3927 = vmatprep.mubr.msk.f32.mxu0 %vm4960_vm0, %v4961_v1  ;;  %3942 = vmatprep.mubr.msk.f32.mxu1 %vm4960_vm0, %v4961_v1  ;;  %v4637_v4 = vpack.i.bf16 %v29_v3, %v28_v2  ;;  %v33_v11 = vld [vmem:[#allocation2 + $0x214] sm:$0xff]  ;;  %v35_v13 = vld [vmem:[#allocation2 + $0x224] sm:$0xff]  ;;  %vm387_vm3 = vcmask 1043456   ;;  %vm4963_vm4 = vmmov 1   ;;  %v285_v51 = vld [vmem:[#allocation2 + $0x22c] sm:$0xff]  ;;  %vm377_vm6 = vcmask 97280  }
  0x15   :  { %v372_v47 = vld [vmem:[#allocation2] sm:$0xff]  ;;  %v373_v48 = vld [vmem:[#allocation2 + $0x8] sm:$0xf]  ;;  %vm5068_vm5 = vmpackc.low %vm387_vm3, %vm4963_vm4  ;;  %vm287_vm10 = vcmask 7168   ;;  %vm568_vm14 = vcmask 261120   ;;  %vm720_vm15 = vcmask 64512  }
  0x16   :  { %4638 = vrot.lane.b32.xlu0 %v4637_v4, %s4962_s29  ;;  %v4361_v49 = vpack.c.bf16 %v373_v48, %v372_v47  ;;  %s4965_s8 = smov 104   ;;  %s4966_s9 = smov 112   ;;  %vm5179_vm4 = vmpackc.low %vm720_vm15, %vm720_vm15 }
  0x17   :  { %s4967_s10 = smov 96   ;;  %s4968_s11 = smov 64  }
  0x18   :  { %s4969_s12 = smov 16   ;;  %s4970_s13 = smov 24  }
  0x1a   :  { %43 = vrot.lane.b32.xlu0 %v30_v5, %s4962_s29 }
  0x88   :  { %v4639_v6 = vpop.permute.xlu0 %4638 }
  0x89   :  { %v4641_v7 = vunpack.i.h.bf16 %v4639_v6  ;;  %v4640_v8 = vunpack.i.l.bf16 %v4639_v6 }
  0x8b   :  { %v4351_v9 = vpack.c.bf16 %v4641_v7, %v4640_v8 }
  0x8c   :  { %v44_v10 = vpop.permute.xlu0 %43 }
  0x8d   :  { %4352 = vmatpush3.bf16.msra.mxu0 %v4351_v9 }
  0x8e   :  { %3925 = vmatprep.subr.mxu0 %v4961_v1 }
  0x91   :  { %3926 = vmatpush3.msra.mxu0 %v44_v10 }
  0x92   :  { %3928 = vmatmul.mubr.msk.f32.vlgmr.msra.gmra.mrb[0].mxu0 %vm48_vm1, %v33_v11 }
  0x93   :  { %3930 = vmatprep.mubr.msk.f32.mxu0 %vm4960_vm0, %v4961_v1 }
  0x96   :  { %3931 = vmatmul.mubr.msk.f32.gmra.mrb[2].mxu0 %vm48_vm1, %v34_v12 }
  0x97   :  { %3933 = vmatprep.mubr.msk.f32.mxu0 %vm4960_vm0, %v4961_v1 }
  0x9a   :  { %3934 = vmatmul.mubr.msk.f32.gmra.mrb[4].mxu0 %vm48_vm1, %v35_v13 }
  0x9b   :  { %3957 = vmatprep.mubr.msk.f32.mxu0 %vm48_vm1, %v285_v51 }
 0x165   :  { %v124_v14 = vpop.f32.mrb[0].mxu0 }
 0x166   :  { %v3929_v15 = vpop.f32.mrb[1].mxu0  ;;  %v139_v16 = vsel %vm138_vm2, %v124_v14, 0.0 }
 0x167   :  { %140 = vadd.xlane.f32.xlu1 %v139_v16  ;;  %v471_v16 = vld [vmem:[#allocation2 + $0xc] sm:$0xff] }
 0x169   :  { %v129_v17 = vpop.f32.mrb[2].mxu0 }
 0x16a   :  { %v3932_v18 = vpop.f32.mrb[3].mxu0  ;;  %v142_v19 = vsel %vm138_vm2, %v129_v17, 0.0  ;;  %v472_v17 = vld [vmem:[#allocation2 + $0x14] sm:$0xf] }
 0x16b   :  { %143 = vadd.xlane.f32.xlu1 %v142_v19 }
 0x16d   :  { %v134_v20 = vpop.f32.mrb[4].mxu0 }
 0x16e   :  { %v3935_v21 = vpop.f32.mrb[5].mxu0  ;;  %v145_v22 = vsel %vm138_vm2, %v134_v20, 0.0  ;;  %v4364_v20 = vpack.c.bf16 %v472_v17, %v471_v16 }
 0x16f   :  { %146 = vadd.xlane.f32.xlu0 %v145_v22  ;;  %v286_v21 = vld [vmem:[#allocation2 + $0x234] sm:$0xf]  ;;  %v31_v22 = vld [vmem:[%s5785_s1] sm:$0xff] }
 0x1f4   :  { %v5034_v23 = vpop.xlane.xlu1 %140 }
 0x1f5   :  { %v148_v24 = vsub.f32 %v28_v2, %v5034_v23 }
 0x1f7   :  { %v151_v27 = vmul.f32 %v148_v24, %v148_v24 }
 0x1f8   :  { %v5037_v25 = vpop.xlane.xlu1 %143 }
 0x1f9   :  { %v5040_v26 = vsub.f32 %v29_v3, %v5037_v25 }
 0x1fb   :  { %v152_v28 = vmul.f32 %v5040_v26, %v5040_v26 }
 0x1fc   :  { %v5044_v29 = vpop.xlane.xlu0 %146 }
 0x1fd   :  { %v4642_v30 = vpack.i.bf16 %v152_v28, %v151_v27  ;;  %v5047_v31 = vsub.f32 %v30_v5, %v5044_v29  ;;  %v561_v27 = vld [vmem:[#allocation2 + $0x4c] sm:$0xff]  ;;  %v562_v28 = vld [vmem:[#allocation2 + $0x54] sm:$0xff] }
 0x1ff   :  { %4643 = vrot.lane.b32.xlu1 %v4642_v30, %s4962_s29  ;;  %v153_v32 = vmul.f32 %v5047_v31, %v5047_v31  ;;  %v374_v30 = vld [vmem:[#allocation2 + $0x18] sm:$0xff] }
 0x203   :  { %161 = vrot.lane.b32.xlu1 %v153_v32, %s4962_s29 }
 0x271   :  { %v4644_v33 = vpop.permute.xlu1 %4643 }
 0x272   :  { %v4646_v34 = vunpack.i.h.bf16 %v4644_v33  ;;  %v4645_v35 = vunpack.i.l.bf16 %v4644_v33 }
 0x274   :  { %v4354_v36 = vpack.c.bf16 %v4646_v34, %v4645_v35  ;;  %v375_v34 = vld [vmem:[#allocation2 + $0x20] sm:$0xff] }
 0x275   :  { %v162_v37 = vpop.permute.xlu1 %161 }
 0x276   :  { %4355 = vmatpush3.bf16.msra.mxu1 %v4354_v36 }
 0x277   :  { %3940 = vmatprep.subr.mxu1 %v4961_v1 }
 0x27a   :  { %3941 = vmatpush3.msra.mxu1 %v162_v37 }
 0x27b   :  { %3943 = vmatmul.mubr.msk.f32.vlgmr.msra.gmra.mrb[0].mxu1 %vm48_vm1, %v33_v11  ;;  %4360 = vmatprep.subr.bf16.mxu1 %v4959_v0 }
 0x27c   :  { %3945 = vmatprep.mubr.msk.f32.mxu1 %vm4960_vm0, %v4961_v1  ;;  %4363 = vmatpush3.bf16.msk.msra.mxu1 %vm5068_vm5, %v4361_v49 }
 0x27f   :  { %3946 = vmatmul.mubr.msk.f32.gmra.mrb[2].mxu1 %vm48_vm1, %v34_v12 }
 0x280   :  { %3948 = vmatprep.mubr.msk.f32.mxu1 %vm4960_vm0, %v4961_v1 }
 0x283   :  { %3949 = vmatmul.mubr.msk.f32.gmra.mrb[4].mxu1 %vm48_vm1, %v35_v13 }
 0x284   :  { %3964 = vmatprep.mubr.msk.f32.mxu1 %vm4960_vm0, %v4961_v1 }
 0x34e   :  { %v232_v38 = vpop.f32.mrb[0].mxu1 }
 0x34f   :  { %v3944_v39 = vpop.f32.mrb[1].mxu1  ;;  %v246_v40 = vsel %vm138_vm2, %v232_v38, 0.0  ;;  %v376_v38 = vld [vmem:[#allocation2 + $0x28] sm:$0xff] }
 0x350   :  { %247 = vadd.xlane.f32.xlu1 %v246_v40 }
 0x352   :  { %v237_v41 = vpop.f32.mrb[2].mxu1 }
 0x353   :  { %v3947_v42 = vpop.f32.mrb[3].mxu1  ;;  %v249_v43 = vsel %vm138_vm2, %v237_v41, 0.0 }
 0x354   :  { %250 = vadd.xlane.f32.xlu0 %v249_v43 }
 0x356   :  { %v242_v44 = vpop.f32.mrb[4].mxu1 }
 0x357   :  { %v3950_v45 = vpop.f32.mrb[5].mxu1  ;;  %v252_v46 = vsel %vm138_vm2, %v242_v44, 0.0 }
 0x358   :  { %253 = vadd.xlane.f32.xlu0 %v252_v46  ;;  %v3583_v46 = vld [vmem:[#allocation2 + $0x5c] ss:$0 sm:$0xff] }
 0x3dd   :  { %v248_v52 = vpop.xlane.xlu1 %247 }
 0x3de   :  { %v255_v53 = vadd.f32 1e-05, %v248_v52 }
 0x3e0   :  { %4786 = vrsqrt.f32 %v255_v53  ;;  %vm260_vm7 = vcmp.eq.f32.partialorder %v255_v53, inf  ;;  %v263_v63 = vand.u32 2147483648, %v255_v53  ;;  %vm262_vm8 = vcmp.eq.f32.partialorder %v255_v53, 0.0 }
 0x3e1   :  { %v251_v54 = vpop.xlane.xlu0 %250 }
 0x3e2   :  { %v256_v55 = vadd.f32 1e-05, %v251_v54 }
 0x3e4   :  { %4788 = vrsqrt.f32 %v256_v55  ;;  %vm267_vm9 = vcmp.eq.f32.partialorder %v256_v55, inf  ;;  %v270_v5 = vand.u32 2147483648, %v256_v55  ;;  %vm269_vm11 = vcmp.eq.f32.partialorder %v256_v55, 0.0 }
 0x3e5   :  { %v254_v56 = vpop.xlane.xlu0 %253 }
 0x3e6   :  { %v257_v57 = vadd.f32 1e-05, %v254_v56 }
 0x3e8   :  { %4790 = vrsqrt.f32 %v257_v57  ;;  %vm274_vm12 = vcmp.eq.f32.partialorder %v257_v57, inf  ;;  %v277_v14 = vand.u32 2147483648, %v257_v57  ;;  %vm276_vm13 = vcmp.eq.f32.partialorder %v257_v57, 0.0 }
 0x3ea   :  { %v4787_v58 = vpop.eup %4786 }
 0x3eb   :  { %v282_v59 = vmul.f32 %v4787_v58, %v148_v24  ;;  %v259_v60 = vmul.f32 %v4787_v58, %v255_v53  ;;  %v560_v24 = vld [vmem:[#allocation2 + $0x44] sm:$0xff] }
 0x3ed   :  { %3965 = vmatmul.mubr.msk.f32.vlgmr.msra.gmra.mrb[6].mxu1 %vm377_vm6, %v282_v59  ;;  %v261_v61 = vsel %vm260_vm7, %v255_v53, %v259_v60  ;;  %vm1583_vm7 = vcmask 523264  }
 0x3ee   :  { %v4789_v62 = vpop.eup %4788  ;;  %3967 = vmatprep.mubr.msk.f32.mxu1 %vm4960_vm0, %v4961_v1  ;;  %v264_v4 = vsel %vm262_vm8, %v263_v63, %v261_v61  ;;  %vm2052_vm8 = vcmask 392192  }
 0x3ef   :  { %v283_v2 = vmul.f32 %v4789_v62, %v5040_v26  ;;  %v266_v3 = vmul.f32 %v4789_v62, %v256_v55  ;;  %v288_v10 = vsel %vm287_vm10, %v5034_v23, %v264_v4  ;;  %v559_v23 = vld [vmem:[#allocation2 + $0x3c] sm:$0xff] }
 0x3f0   :  { %v4371_v26 = vpack.c.bf16 %v560_v24, %v559_v23 }
 0x3f1   :  { %3968 = vmatmul.mubr.msk.f32.gmra.mrb[8].mxu1 %vm377_vm6, %v283_v2  ;;  %v268_v6 = vsel %vm267_vm9, %v256_v55, %v266_v3  ;;  %vm2376_vm9 = vcmask 257024  }
 0x3f2   :  { %v4791_v7 = vpop.eup %4790  ;;  %3970 = vmatprep.mubr.msk.f32.mxu1 %vm4960_vm0, %v4961_v1  ;;  %v271_v8 = vsel %vm269_vm11, %v270_v5, %v268_v6 }
 0x3f3   :  { %v284_v9 = vmul.f32 %v4791_v7, %v5047_v31  ;;  %v289_v11 = vsel %vm287_vm10, %v5037_v25, %v271_v8  ;;  %v273_v12 = vmul.f32 %v4791_v7, %v257_v57  ;;  %v32_v25 = vld [vmem:[%s5785_s1 + $0x8] sm:$0xf]  ;;  %s4964_s1 = smov 120  }
 0x3f4   :  { %v4356_v13 = vpack.c.bf16 %v289_v11, %v288_v10 }
 0x3f5   :  { %3971 = vmatmul.mubr.msk.f32.gmra.mrb[10].mxu1 %vm377_vm6, %v284_v9  ;;  %v275_v15 = vsel %vm274_vm12, %v257_v57, %v273_v12 }
 0x3f6   :  { %4357 = vmatprep.subr.bf16.mxu0 %v4356_v13  ;;  %v278_v18 = vsel %vm276_vm13, %v277_v14, %v275_v15 }
 0x3f7   :  { %4359 = vmatpush3.bf16.msra.mxu0 %v4356_v13  ;;  %v290_v19 = vsel %vm287_vm10, %v5044_v29, %v278_v18  ;;  %v4374_v29 = vpack.c.bf16 %v562_v28, %v561_v27 }
 0x3f8   :  { %3955 = vmatprep.subr.mxu0 %v290_v19 }
 0x3fb   :  { %3956 = vmatpush3.msra.mxu0 %v290_v19 }
 0x3fc   :  { %3958 = vmatmul.mubr.msk.f32.vlgmr.msra.gmra.mrb[6].mxu0 %vm48_vm1, %v286_v21  ;;  %4366 = vmatprep.subr.msk.bf16.mxu0 %vm5068_vm5, %v4364_v20 }
 0x3fd   :  { %4369 = vmatpush3.bf16.msk.msra.mxu0 %vm5068_vm5, %v4364_v20  ;;  %3977 = vmatprep.mubr.msk.f32.mxu0 %vm377_vm6, %v31_v22  ;;  %vm918_vm5 = vcmask 785408  }
 0x3fe   :  { %4370 = vmatprep.subr.bf16.mxu0 %v4959_v0 }
 0x400   :  { %3978 = vmatmul.mubr.msk.f32.vlgmr.msra.gmra.mrb[8].mxu0 %vm377_vm6, %v32_v25  ;;  %vm1287_vm6 = vcmask 130048  }
 0x401   :  { %4372 = vmatpush3.bf16.msra.mxu0 %v4371_v26  ;;  %3988 = vmatprep.mubr.msk.f32.mxu0 %vm4960_vm0, %v4961_v1 }
 0x402   :  { %4373 = vmatprep.subr.bf16.mxu0 %v4959_v0 }
 0x405   :  { %4375 = vmatpush3.bf16.msra.mxu0 %v4374_v29 }
 0x4c0   :  { %v457_v31 = vpop.f32.mrb[6].mxu1 }
 0x4c1   :  { %v5107_v32 = vadd.f32 %v457_v31, %v374_v30  ;;  %v3966_v33 = vpop.f32.mrb[7].mxu1 }
 0x4c3   :  { %3989 = vmatmul.mubr.msk.f32.vlgmr.msra.gmra.mrb[10].mxu0 %vm568_vm14, %v5107_v32 }
 0x4c4   :  { %v462_v35 = vpop.f32.mrb[8].mxu1  ;;  %3991 = vmatprep.mubr.msk.f32.mxu0 %vm4960_vm0, %v4961_v1 }
 0x4c5   :  { %v5113_v36 = vadd.f32 %v462_v35, %v375_v34  ;;  %v3969_v37 = vpop.f32.mrb[9].mxu1 }
 0x4c6   :  { %v659_v37 = vld [vmem:[#allocation2 + $0x240] sm:$0xff] }
 0x4c7   :  { %3992 = vmatmul.mubr.msk.f32.gmra.mrb[12].mxu0 %vm568_vm14, %v5113_v36 }
 0x4c8   :  { %v467_v39 = vpop.f32.mrb[10].mxu1  ;;  %3994 = vmatprep.mubr.msk.f32.mxu0 %vm4960_vm0, %v4961_v1 }
 0x4c9   :  { %v5119_v40 = vadd.f32 %v467_v39, %v376_v38  ;;  %v3972_v41 = vpop.f32.mrb[11].mxu1 }
 0x4ca   :  { %v658_v41 = vld [vmem:[#allocation2 + $0x238] sm:$0xff] }
 0x4cb   :  { %3995 = vmatmul.mubr.msk.f32.gmra.mrb[14].mxu0 %vm568_vm14, %v5119_v40 }
 0x4cf   :  { %v5123_v42 = vpop.f32.mrb[6].mxu0 }
 0x4d0   :  { %v5125_v43 = vpop.f32.mrb[7].mxu0 }
 0x4d3   :  { %v5127_v44 = vpop.f32.mrb[8].mxu0 }
 0x4d4   :  { %v5129_v45 = vpop.f32.mrb[9].mxu0 }
 0x596   :  { %v644_v47 = vpop.f32.mrb[10].mxu0 }
 0x597   :  { %v645_v48 = vadd.f32 %v3583_v46, %v644_v47  ;;  %v3990_v49 = vpop.f32.mrb[11].mxu0 }
 0x599   :  { %678 = vrot.lane.b32.xlu0 %v645_v48, %s4964_s1  ;;  %4021 = vmatprep.mubr.msk.f32.mxu1 %vm720_vm15, %v645_v48 }
 0x59a   :  { %v649_v50 = vpop.f32.mrb[12].mxu0 }
 0x59b   :  { %v5133_v51 = vadd.f32 %v3583_v46, %v649_v50  ;;  %v3993_v52 = vpop.f32.mrb[13].mxu0 }
 0x59c   :  { %v660_v52 = vld [vmem:[#allocation2 + $0x248] sm:$0xff] }
 0x59d   :  { %680 = vrot.lane.b32.xlu1 %v5133_v51, %s4964_s1  ;;  %v5152_v56 = vpack.i.bf16 %v5133_v51, %v645_v48 }
 0x59e   :  { %v654_v53 = vpop.f32.mrb[14].mxu0 }
 0x59f   :  { %v5137_v54 = vadd.f32 %v3583_v46, %v654_v53  ;;  %v3996_v55 = vpop.f32.mrb[15].mxu0 }
 0x5a1   :  { %690 = vrot.lane.b32.xlu1 %v645_v48, %s4965_s8  ;;  %682 = vrot.lane.b32.xlu0 %v5137_v54, %s4964_s1 }
 0x5a5   :  { %694 = vrot.lane.b32.xlu1 %v5137_v54, %s4965_s8  ;;  %684 = vrot.lane.b32.xlu0 %v645_v48, %s4966_s9 }
 0x5a9   :  { %686 = vrot.lane.b32.xlu0 %v5133_v51, %s4966_s9 }
 0x5ad   :  { %688 = vrot.lane.b32.xlu0 %v5137_v54, %s4966_s9 }
 0x5b1   :  { %692 = vrot.lane.b32.xlu0 %v5133_v51, %s4965_s8 }
 0x5b5   :  { %4648 = vrot.lane.b32.xlu0 %v5152_v56, %s4967_s10 }
 0x60b   :  { %v679_v57 = vpop.permute.xlu0 %678 }
 0x60c   :  { %v5157_v58 = vpack.i.bf16 %v679_v57, %v5137_v54 }
 0x60e   :  { %4653 = vrot.lane.b32.xlu1 %v5157_v58, %s4967_s10 }
 0x60f   :  { %v681_v59 = vpop.permute.xlu1 %680 }
 0x613   :  { %v683_v60 = vpop.permute.xlu0 %682  ;;  %v691_v3 = vpop.permute.xlu1 %690 }
 0x614   :  { %v5161_v61 = vpack.i.bf16 %v683_v60, %v681_v59 }
 0x616   :  { %4658 = vrot.lane.b32.xlu0 %v5161_v61, %s4967_s10 }
 0x617   :  { %v685_v62 = vpop.permute.xlu0 %684  ;;  %v695_v6 = vpop.permute.xlu1 %694 }
 0x61b   :  { %v687_v63 = vpop.permute.xlu0 %686 }
 0x61c   :  { %v5165_v2 = vpack.i.bf16 %v687_v63, %v685_v62 }
 0x61e   :  { %4663 = vrot.lane.b32.xlu1 %v5165_v2, %s4967_s10 }
 0x61f   :  { %v689_v4 = vpop.permute.xlu0 %688 }
 0x620   :  { %v5169_v5 = vpack.i.bf16 %v691_v3, %v689_v4 }
 0x622   :  { %4668 = vrot.lane.b32.xlu0 %v5169_v5, %s4967_s10 }
 0x623   :  { %v693_v7 = vpop.permute.xlu0 %692 }
 0x624   :  { %v5173_v8 = vpack.i.bf16 %v695_v6, %v693_v7 }
 0x626   :  { %4673 = vrot.lane.b32.xlu1 %v5173_v8, %s4967_s10 }
 0x627   :  { %v4649_v9 = vpop.permute.xlu0 %4648 }
 0x628   :  { %v4651_v10 = vunpack.i.h.bf16 %v4649_v9  ;;  %v4650_v11 = vunpack.i.l.bf16 %v4649_v9  ;;  %v663_v9 = vld [vmem:[#allocation2 + $0x260] sm:$0xff] }
 0x62a   :  { %v4376_v13 = vpack.c.bf16 %v4651_v10, %v4650_v11 }
 0x62c   :  { %4378 = vmatprep.subr.msk.bf16.mxu1 %vm5179_vm4, %v4376_v13 }
 0x62d   :  { %4381 = vmatpush3.bf16.xpose.msk.msra.mxu1 %vm5179_vm4, %v4376_v13 }
 0x680   :  { %v4654_v14 = vpop.permute.xlu1 %4653 }
 0x681   :  { %v4656_v15 = vunpack.i.h.bf16 %v4654_v14  ;;  %v4655_v16 = vunpack.i.l.bf16 %v4654_v14 }
 0x683   :  { %v4382_v17 = vpack.c.bf16 %v4656_v15, %v4655_v16  ;;  %v664_v15 = vld [vmem:[#allocation2 + $0x268] sm:$0xff] }
 0x685   :  { %4384 = vmatprep.subr.msk.bf16.mxu1 %vm5179_vm4, %v4382_v17 }
 0x686   :  { %4387 = vmatpush3.bf16.xpose.msk.msra.mxu1 %vm5179_vm4, %v4382_v17 }
 0x688   :  { %v4659_v18 = vpop.permute.xlu0 %4658 }
 0x689   :  { %v4661_v19 = vunpack.i.h.bf16 %v4659_v18  ;;  %v4660_v20 = vunpack.i.l.bf16 %v4659_v18 }
 0x68b   :  { %v4388_v21 = vpack.c.bf16 %v4661_v19, %v4660_v20  ;;  %v665_v20 = vld [vmem:[#allocation2 + $0x270] sm:$0xff] }
 0x68d   :  { %4390 = vmatprep.subr.msk.bf16.mxu1 %vm5179_vm4, %v4388_v21 }
 0x68e   :  { %4393 = vmatpush3.bf16.xpose.msk.msra.mxu1 %vm5179_vm4, %v4388_v21 }
 0x690   :  { %v4664_v22 = vpop.permute.xlu1 %4663 }
 0x691   :  { %v4666_v23 = vunpack.i.h.bf16 %v4664_v22  ;;  %v4665_v24 = vunpack.i.l.bf16 %v4664_v22 }
 0x693   :  { %v4394_v25 = vpack.c.bf16 %v4666_v23, %v4665_v24 }
 0x694   :  { %v4669_v26 = vpop.permute.xlu0 %4668 }
 0x695   :  { %v4671_v27 = vunpack.i.h.bf16 %v4669_v26  ;;  %v4670_v28 = vunpack.i.l.bf16 %v4669_v26  ;;  %4396 = vmatprep.subr.msk.bf16.mxu1 %vm5179_vm4, %v4394_v25 }
 0x696   :  { %4399 = vmatpush3.bf16.xpose.msk.msra.mxu1 %vm5179_vm4, %v4394_v25  ;;  %v666_v25 = vld [vmem:[#allocation2 + $0x278] sm:$0xff] }
 0x697   :  { %v4400_v29 = vpack.c.bf16 %v4671_v27, %v4670_v28 }
 0x698   :  { %v4674_v30 = vpop.permute.xlu1 %4673 }
 0x699   :  { %v4676_v31 = vunpack.i.h.bf16 %v4674_v30  ;;  %v4675_v33 = vunpack.i.l.bf16 %v4674_v30  ;;  %4402 = vmatprep.subr.msk.bf16.mxu1 %vm5179_vm4, %v4400_v29  ;;  %v667_v30 = vld [vmem:[#allocation2 + $0x280] sm:$0xff] }
 0x69b   :  { %v4406_v34 = vpack.c.bf16 %v4676_v31, %v4675_v33 }
 0x69e   :  { %4405 = vmatpush3.bf16.xpose.msk.msra.mxu1 %vm5179_vm4, %v4400_v29 }
 0x69f   :  { %4408 = vmatprep.subr.msk.bf16.mxu1 %vm5179_vm4, %v4406_v34 }
 0x6a6   :  { %4411 = vmatpush3.bf16.xpose.msk.msra.mxu1 %vm5179_vm4, %v4406_v34 }
 0x6a7   :  { %4448 = vmatprep.subr.bf16.mxu1 %v4959_v0 }
 0x6ad   :  { %4022 = vmatmul.mubr.msk.f32.vlgmr.msra.gmra.mrb[12].mxu1 %vm720_vm15, %v5133_v51 }
 0x6ae   :  { %4024 = vmatprep.mubr.msk.f32.mxu1 %vm720_vm15, %v5137_v54 }
 0x6b1   :  { %4025 = vmatmul.mubr.msk.f32.gmra.mrb[14].mxu1 %vm720_vm15, %v679_v57  ;;  %v661_v57 = vld [vmem:[#allocation2 + $0x250] sm:$0xff] }
 0x6b2   :  { %4027 = vmatprep.mubr.msk.f32.mxu1 %vm720_vm15, %v681_v59 }
 0x6b5   :  { %4028 = vmatmul.mubr.msk.f32.gmra.mrb[16].mxu1 %vm720_vm15, %v683_v60 }
 0x6b6   :  { %4030 = vmatprep.mubr.msk.f32.mxu1 %vm720_vm15, %v685_v62 }
 0x6b9   :  { %4031 = vmatmul.mubr.msk.f32.gmra.mrb[18].mxu1 %vm720_vm15, %v687_v63 }
 0x6ba   :  { %4033 = vmatprep.mubr.msk.f32.mxu1 %vm720_vm15, %v689_v4 }
 0x6bd   :  { %4034 = vmatmul.mubr.msk.f32.gmra.mrb[20].mxu1 %vm720_vm15, %v691_v3  ;;  %v662_v3 = vld [vmem:[#allocation2 + $0x258] sm:$0xff] }
 0x6be   :  { %4036 = vmatprep.mubr.msk.f32.mxu1 %vm720_vm15, %v693_v7 }
 0x6c1   :  { %4037 = vmatmul.mubr.msk.f32.gmra.mrb[22].mxu1 %vm720_vm15, %v695_v6 }
 0x6c2   :  { %4131 = vmatprep.mubr.msk.f32.mxu1 %vm4960_vm0, %v4961_v1 }
 0x780   :  { %v4023_v35 = vpop.f32.mrb[12].mxu1 }
 0x781   :  { %v895_v38 = vmul.f32 0.35355338, %v4023_v35  ;;  %v835_v39 = vpop.f32.mrb[13].mxu1 }
 0x782   :  { %v894_v46 = vmul.f32 0.35355338, %v835_v39 }
 0x783   :  { %v5223_v47 = vadd.f32 %v895_v38, %v659_v37 }
 0x784   :  { %v4026_v48 = vpop.f32.mrb[14].mxu1  ;;  %v5225_v49 = vadd.f32 %v894_v46, %v658_v41  ;;  %v669_v41 = vld [vmem:[#allocation2 + $0x290] sm:$0xff] }
 0x785   :  { %v845_v50 = vpop.f32.mrb[15].mxu1  ;;  %v922_v51 = vsel %vm918_vm5, %v5223_v47, -inf  ;;  %v897_v53 = vmul.f32 0.35355338, %v4026_v48 }
 0x786   :  { %v896_v54 = vmul.f32 0.35355338, %v845_v50  ;;  %923 = vmax.xlane.f32.xlu1 %v922_v51  ;;  %v919_v55 = vsel %vm918_vm5, %v5225_v49, -inf }
 0x787   :  { %920 = vmax.xlane.f32.xlu0 %v919_v55  ;;  %v5235_v7 = vadd.f32 %v897_v53, %v661_v57 }
 0x788   :  { %v4029_v59 = vpop.f32.mrb[16].mxu1  ;;  %v5231_v60 = vadd.f32 %v896_v54, %v660_v52  ;;  %v668_v52 = vld [vmem:[#allocation2 + $0x288] sm:$0xff] }
 0x789   :  { %v899_v62 = vmul.f32 0.35355338, %v4029_v59  ;;  %v855_v63 = vpop.f32.mrb[17].mxu1  ;;  %v928_v18 = vsel %vm918_vm5, %v5235_v7, -inf }
 0x78a   :  { %v898_v4 = vmul.f32 0.35355338, %v855_v63  ;;  %v925_v6 = vsel %vm918_vm5, %v5231_v60, -inf }
 0x78b   :  { %926 = vmax.xlane.f32.xlu0 %v925_v6  ;;  %v5239_v14 = vadd.f32 %v899_v62, %v663_v9 }
 0x78c   :  { %v4032_v10 = vpop.f32.mrb[18].mxu1  ;;  %v5237_v11 = vadd.f32 %v898_v4, %v662_v3 }
 0x78d   :  { %v865_v13 = vpop.f32.mrb[19].mxu1  ;;  %v901_v16 = vmul.f32 0.35355338, %v4032_v10  ;;  %v934_v24 = vsel %vm918_vm5, %v5239_v14, -inf }
 0x78e   :  { %v900_v17 = vmul.f32 0.35355338, %v865_v13  ;;  %v931_v19 = vsel %vm918_vm5, %v5237_v11, -inf }
 0x78f   :  { %929 = vmax.xlane.f32.xlu0 %v928_v18  ;;  %932 = vmax.xlane.f32.xlu1 %v931_v19  ;;  %v5251_v29 = vadd.f32 %v901_v16, %v665_v20 }
 0x790   :  { %v4035_v21 = vpop.f32.mrb[20].mxu1  ;;  %v5245_v22 = vadd.f32 %v900_v17, %v664_v15 }
 0x791   :  { %v875_v23 = vpop.f32.mrb[21].mxu1  ;;  %v903_v26 = vmul.f32 0.35355338, %v4035_v21  ;;  %v940_v37 = vsel %vm918_vm5, %v5251_v29, -inf }
 0x792   :  { %v902_v27 = vmul.f32 0.35355338, %v875_v23  ;;  %v937_v28 = vsel %vm918_vm5, %v5245_v22, -inf }
 0x793   :  { %935 = vmax.xlane.f32.xlu0 %v934_v24  ;;  %938 = vmax.xlane.f32.xlu1 %v937_v28  ;;  %v5259_v39 = vadd.f32 %v903_v26, %v667_v30 }
 0x794   :  { %v4038_v31 = vpop.f32.mrb[22].mxu1  ;;  %v5253_v33 = vadd.f32 %v902_v27, %v666_v25 }
 0x795   :  { %v885_v34 = vpop.f32.mrb[23].mxu1  ;;  %v905_v35 = vmul.f32 0.35355338, %v4038_v31  ;;  %v946_v46 = vsel %vm918_vm5, %v5259_v39, -inf }
 0x796   :  { %v943_v38 = vsel %vm918_vm5, %v5253_v33, -inf  ;;  %v904_v51 = vmul.f32 0.35355338, %v885_v34 }
 0x797   :  { %941 = vmax.xlane.f32.xlu0 %v940_v37  ;;  %944 = vmax.xlane.f32.xlu1 %v943_v38  ;;  %v5263_v48 = vadd.f32 %v905_v35, %v669_v41 }
 0x798   :  { %v5275_v53 = vadd.f32 %v904_v51, %v668_v52 }
 0x799   :  { %v952_v50 = vsel %vm918_vm5, %v5263_v48, -inf }
 0x79a   :  { %v949_v54 = vsel %vm918_vm5, %v5275_v53, -inf }
 0x79b   :  { %947 = vmax.xlane.f32.xlu0 %v946_v46 }
 0x79f   :  { %953 = vmax.xlane.f32.xlu0 %v952_v50 }
 0x7a8   :  { %4678 = vrot.lane.b32.xlu1 %v5152_v56, %s4968_s11 }
 0x7ac   :  { %4688 = vrot.lane.b32.xlu1 %v5161_v61, %s4968_s11 }
 0x7b5   :  { %4683 = vrot.lane.b32.xlu0 %v5157_v58, %s4968_s11 }
 0x7b9   :  { %4698 = vrot.lane.b32.xlu0 %v5169_v5, %s4968_s11 }
 0x7d0   :  { %950 = vmax.xlane.f32.xlu1 %v949_v54 }
 0x7e1   :  { %4693 = vrot.lane.b32.xlu1 %v5165_v2, %s4968_s11 }
 0x813   :  { %v924_v56 = vpop.xlane.xlu1 %923 }
 0x814   :  { %v956_v61 = vsub.f32 %v5223_v47, %v924_v56  ;;  %v921_v55 = vpop.xlane.xlu0 %920 }
 0x815   :  { %v955_v58 = vsub.f32 %v5225_v49, %v921_v55 }
 0x816   :  { %v969_v57 = vmul.f32 1.442695, %v956_v61 }
 0x817   :  { %v967_v59 = vmul.f32 1.442695, %v955_v58 }
 0x818   :  { %4792 = vpow2.f32 %v969_v57  ;;  %v927_v5 = vpop.xlane.xlu0 %926 }
 0x819   :  { %4794 = vpow2.f32 %v967_v59  ;;  %v957_v62 = vsub.f32 %v5231_v60, %v927_v5 }
 0x81b   :  { %v971_v2 = vmul.f32 1.442695, %v957_v62 }
 0x81c   :  { %v930_v63 = vpop.xlane.xlu0 %929  ;;  %v933_v3 = vpop.xlane.xlu1 %932 }
 0x81d   :  { %v958_v4 = vsub.f32 %v5235_v7, %v930_v63  ;;  %v959_v6 = vsub.f32 %v5237_v11, %v933_v3 }
 0x81f   :  { %v973_v9 = vmul.f32 1.442695, %v958_v4  ;;  %v975_v10 = vmul.f32 1.442695, %v959_v6 }
 0x820   :  { %v936_v47 = vpop.xlane.xlu0 %935  ;;  %v939_v13 = vpop.xlane.xlu1 %938 }
 0x821   :  { %4796 = vpow2.f32 %v973_v9  ;;  %v960_v49 = vsub.f32 %v5239_v14, %v936_v47  ;;  %v961_v14 = vsub.f32 %v5245_v22, %v939_v13 }
 0x822   :  { %v5287_v15 = vpop.eup %4792  ;;  %4798 = vpow2.f32 %v975_v10 }
 0x823   :  { %v5289_v16 = vpop.eup %4794  ;;  %4800 = vpow2.f32 %v971_v2  ;;  %v977_v60 = vmul.f32 1.442695, %v960_v49  ;;  %v994_v7 = vsel %vm918_vm5, %v5287_v15, 0.0  ;;  %v979_v27 = vmul.f32 1.442695, %v961_v14 }
 0x824   :  { %v942_v17 = vpop.xlane.xlu0 %941  ;;  %v945_v11 = vpop.xlane.xlu1 %944  ;;  %995 = vadd.xlane.f32.xlu0 %v994_v7  ;;  %v991_v18 = vsel %vm918_vm5, %v5289_v16, 0.0 }
 0x825   :  { %v962_v19 = vsub.f32 %v5251_v29, %v942_v17  ;;  %992 = vadd.xlane.f32.xlu1 %v991_v18  ;;  %4802 = vpow2.f32 %v977_v60  ;;  %v963_v30 = vsub.f32 %v5253_v33, %v945_v11 }
 0x827   :  { %v981_v20 = vmul.f32 1.442695, %v962_v19  ;;  %v983_v33 = vmul.f32 1.442695, %v963_v30 }
 0x828   :  { %v948_v21 = vpop.xlane.xlu0 %947  ;;  %v4679_v23 = vpop.permute.xlu1 %4678 }
 0x829   :  { %v964_v24 = vsub.f32 %v5259_v39, %v948_v21  ;;  %v4681_v25 = vunpack.i.h.bf16 %v4679_v23  ;;  %v4680_v26 = vunpack.i.l.bf16 %v4679_v23  ;;  %4804 = vpow2.f32 %v981_v20 }
 0x82b   :  { %v5298_v28 = vpop.eup %4796  ;;  %v985_v31 = vmul.f32 1.442695, %v964_v24  ;;  %v4412_v34 = vpack.c.bf16 %v4681_v25, %v4680_v26 }
 0x82c   :  { %v5301_v29 = vpop.eup %4798  ;;  %v954_v35 = vpop.xlane.xlu0 %953  ;;  %v1000_v22 = vsel %vm918_vm5, %v5298_v28, 0.0 }
 0x82d   :  { %v5305_v37 = vpop.eup %4800  ;;  %4806 = vpow2.f32 %v985_v31  ;;  %v4689_v38 = vpop.permute.xlu1 %4688  ;;  %v966_v39 = vsub.f32 %v5263_v48, %v954_v35  ;;  %4413 = vmatprep.subr.bf16.mxu0 %v4412_v34  ;;  %1001 = vadd.xlane.f32.xlu0 %v1000_v22  ;;  %v1003_v41 = vsel %vm918_vm5, %v5301_v29, 0.0 }
 0x82e   :  { %4415 = vmatpush3.bf16.msra.mxu0 %v4412_v34  ;;  %4808 = vpow2.f32 %v979_v27  ;;  %1004 = vadd.xlane.f32.xlu1 %v1003_v41  ;;  %v4691_v50 = vunpack.i.h.bf16 %v4689_v38  ;;  %v997_v52 = vsel %vm918_vm5, %v5305_v37, 0.0  ;;  %v4690_v56 = vunpack.i.l.bf16 %v4689_v38 }
 0x82f   :  { %v989_v46 = vmul.f32 1.442695, %v966_v39  ;;  %v5312_v54 = vpop.eup %4802 }
 0x830   :  { %v4684_v51 = vpop.permute.xlu0 %4683  ;;  %v1006_v58 = vsel %vm918_vm5, %v5312_v54, 0.0  ;;  %v4420_v59 = vpack.c.bf16 %v4691_v50, %v4690_v56 }
 0x831   :  { %4810 = vpow2.f32 %v989_v46  ;;  %v4686_v48 = vunpack.i.h.bf16 %v4684_v51  ;;  %v4685_v61 = vunpack.i.l.bf16 %v4684_v51  ;;  %998 = vadd.xlane.f32.xlu0 %v997_v52 }
 0x832   :  { %4812 = vpow2.f32 %v983_v33 }
 0x833   :  { %v4416_v55 = vpack.c.bf16 %v4686_v48, %v4685_v61  ;;  %v5316_v57 = vpop.eup %4804 }
 0x834   :  { %v1012_v62 = vsel %vm918_vm5, %v5316_v57, 0.0  ;;  %v4699_v13 = vpop.permute.xlu0 %4698 }
 0x835   :  { %1007 = vadd.xlane.f32.xlu0 %v1006_v58  ;;  %4417 = vmatprep.subr.bf16.mxu0 %v4416_v55  ;;  %v4701_v7 = vunpack.i.h.bf16 %v4699_v13  ;;  %v4700_v11 = vunpack.i.l.bf16 %v4699_v13 }
 0x836   :  { %4419 = vmatpush3.bf16.msra.mxu0 %v4416_v55 }
 0x837   :  { %v5318_v5 = vpop.eup %4806  ;;  %4421 = vmatprep.subr.bf16.mxu0 %v4420_v59  ;;  %v4428_v20 = vpack.c.bf16 %v4701_v7, %v4700_v11 }
 0x838   :  { %v1018_v63 = vsel %vm918_vm5, %v5318_v5, 0.0  ;;  %v5324_v3 = vpop.eup %4808 }
 0x839   :  { %1013 = vadd.xlane.f32.xlu0 %v1012_v62  ;;  %1019 = vadd.xlane.f32.xlu1 %v1018_v63  ;;  %v1009_v6 = vsel %vm918_vm5, %v5324_v3, 0.0 }
 0x83a   :  { %4423 = vmatpush3.bf16.msra.mxu0 %v4420_v59 }
 0x83b   :  { %v5326_v4 = vpop.eup %4810 }
 0x83c   :  { %v1024_v2 = vsel %vm918_vm5, %v5326_v4, 0.0  ;;  %v5332_v9 = vpop.eup %4812 }
 0x83d   :  { %1010 = vadd.xlane.f32.xlu0 %v1009_v6  ;;  %1025 = vadd.xlane.f32.xlu1 %v1024_v2  ;;  %v1015_v10 = vsel %vm918_vm5, %v5332_v9, 0.0 }
 0x841   :  { %1016 = vadd.xlane.f32.xlu0 %v1015_v10 }
 0x84e   :  { %4703 = vrot.lane.b32.xlu1 %v5173_v8, %s4968_s11 }
 0x85d   :  { %v951_v47 = vpop.xlane.xlu1 %950 }
 0x85e   :  { %v965_v49 = vsub.f32 %v5275_v53, %v951_v47 }
 0x860   :  { %v987_v60 = vmul.f32 1.442695, %v965_v49  ;;  %v670_v49 = vld [vmem:[#allocation2 + $0x5d] sm:$0xff] }
 0x861   :  { %v4694_v17 = vpop.permute.xlu1 %4693 }
 0x862   :  { %4814 = vpow2.f32 %v987_v60  ;;  %v4696_v18 = vunpack.i.h.bf16 %v4694_v17  ;;  %v4695_v19 = vunpack.i.l.bf16 %v4694_v17  ;;  %v671_v60 = vld [vmem:[#allocation2 + $0x65] sm:$0xff] }
 0x863   :  { %v4437_v7 = vpack.c.bf16 %v671_v60, %v670_v49 }
 0x864   :  { %v4424_v14 = vpack.c.bf16 %v4696_v18, %v4695_v19  ;;  %v673_v18 = vld [vmem:[#allocation2 + $0x75] sm:$0xff] }
 0x866   :  { %4425 = vmatprep.subr.bf16.mxu0 %v4424_v14 }
 0x867   :  { %4427 = vmatpush3.bf16.msra.mxu0 %v4424_v14 }
 0x868   :  { %4429 = vmatprep.subr.bf16.mxu0 %v4428_v20 }
 0x86b   :  { %4431 = vmatpush3.bf16.msra.mxu0 %v4428_v20 }
 0x86c   :  { %v5339_v21 = vpop.eup %4814 }
 0x86d   :  { %v1021_v8 = vsel %vm918_vm5, %v5339_v21, 0.0 }
 0x86e   :  { %1022 = vadd.xlane.f32.xlu0 %v1021_v8 }
 0x8b1   :  { %v996_v23 = vpop.xlane.xlu0 %995 }
 0x8b2   :  { %v993_v53 = vpop.xlane.xlu1 %992 }
 0x8b3   :  { %4816 = vrcp.f32 %v993_v53 }
 0x8b4   :  { %4818 = vrcp.f32 %v996_v23 }
 0x8ba   :  { %v1002_v24 = vpop.xlane.xlu0 %1001 }
 0x8bb   :  { %v1005_v30 = vpop.xlane.xlu1 %1004 }
 0x8bd   :  { %v4817_v25 = vpop.eup %4816 }
 0x8be   :  { %v999_v26 = vpop.xlane.xlu0 %998  ;;  %v1039_v27 = vmul.f32 %v4817_v25, %v5289_v16  ;;  %v4819_v50 = vpop.eup %4818 }
 0x8bf   :  { %4820 = vrcp.f32 %v999_v26  ;;  %v1040_v52 = vmul.f32 %v4819_v50, %v5287_v15 }
 0x8c0   :  { %4063 = vmatprep.mubr.msk.f32.mxu0 %vm918_vm5, %v1039_v27  ;;  %4822 = vrcp.f32 %v1002_v24 }
 0x8c1   :  { %4824 = vrcp.f32 %v1005_v30 }
 0x8c2   :  { %v1008_v31 = vpop.xlane.xlu0 %1007 }
 0x8c3   :  { %4826 = vrcp.f32 %v1008_v31 }
 0x8c6   :  { %v1014_v34 = vpop.xlane.xlu0 %1013  ;;  %v1020_v35 = vpop.xlane.xlu1 %1019 }
 0x8c9   :  { %v4821_v51 = vpop.eup %4820 }
 0x8ca   :  { %v1026_v22 = vpop.xlane.xlu1 %1025  ;;  %v1011_v38 = vpop.xlane.xlu0 %1010  ;;  %v1041_v48 = vmul.f32 %v4821_v51, %v5305_v37 }
 0x8cb   :  { %4828 = vrcp.f32 %v1011_v38  ;;  %v4823_v56 = vpop.eup %4822 }
 0x8cc   :  { %4830 = vrcp.f32 %v1014_v34  ;;  %v4825_v61 = vpop.eup %4824  ;;  %v1042_v55 = vmul.f32 %v4823_v56, %v5298_v28 }
 0x8cd   :  { %v4827_v58 = vpop.eup %4826  ;;  %v1043_v59 = vmul.f32 %v4825_v61, %v5301_v29  ;;  %v3623_v61 = vld [vmem:[#allocation2 + $0x7d] ss:$0 sm:$0xff] }
 0x8ce   :  { %v4704_v39 = vpop.permute.xlu1 %4703  ;;  %v1017_v16 = vpop.xlane.xlu0 %1016  ;;  %v1044_v15 = vmul.f32 %v4827_v58, %v5312_v54 }
 0x8cf   :  { %v4706_v41 = vunpack.i.h.bf16 %v4704_v39  ;;  %v4705_v33 = vunpack.i.l.bf16 %v4704_v39  ;;  %4832 = vrcp.f32 %v1017_v16 }
 0x8d0   :  { %4834 = vrcp.f32 %v1020_v35 }
 0x8d1   :  { %v4432_v46 = vpack.c.bf16 %v4706_v41, %v4705_v33  ;;  %4836 = vrcp.f32 %v1026_v22 }
 0x8d3   :  { %4433 = vmatprep.subr.bf16.mxu0 %v4432_v46 }
 0x8d4   :  { %4435 = vmatpush3.bf16.msra.mxu0 %v4432_v46 }
 0x8d5   :  { %4436 = vmatprep.subr.bf16.mxu0 %v4959_v0  ;;  %v4829_v62 = vpop.eup %4828 }
 0x8d6   :  { %v4831_v63 = vpop.eup %4830  ;;  %v1045_v37 = vmul.f32 %v4829_v62, %v5324_v3 }
 0x8d7   :  { %4064 = vmatmul.mubr.msk.f32.vlgmr.msra.gmra.mrb[16].mxu0 %vm918_vm5, %v1040_v52  ;;  %v1046_v28 = vmul.f32 %v4831_v63, %v5316_v57 }
 0x8d8   :  { %4066 = vmatprep.mubr.msk.f32.mxu0 %vm918_vm5, %v1041_v48  ;;  %4438 = vmatpush3.bf16.msra.mxu0 %v4437_v7  ;;  %v1445_v7 = vld [vmem:[#allocation2 + $0x80] sm:$0xff] }
 0x8d9   :  { %v4833_v6 = vpop.eup %4832  ;;  %4439 = vmatprep.subr.bf16.mxu0 %v4959_v0 }
 0x8da   :  { %v4835_v2 = vpop.eup %4834  ;;  %v1047_v29 = vmul.f32 %v4833_v6, %v5332_v9 }
 0x8db   :  { %4067 = vmatmul.mubr.msk.f32.gmra.mrb[18].mxu0 %vm918_vm5, %v1042_v55  ;;  %v1048_v10 = vmul.f32 %v4835_v2, %v5318_v5  ;;  %v4837_v3 = vpop.eup %4836 }
 0x8dc   :  { %4069 = vmatprep.mubr.msk.f32.mxu0 %vm918_vm5, %v1043_v59  ;;  %v1050_v57 = vmul.f32 %v4837_v3, %v5326_v4  ;;  %v672_v4 = vld [vmem:[#allocation2 + $0x6d] sm:$0xff] }
 0x8dd   :  { %v4440_v19 = vpack.c.bf16 %v673_v18, %v672_v4 }
 0x8df   :  { %4070 = vmatmul.mubr.msk.f32.gmra.mrb[20].mxu0 %vm918_vm5, %v1044_v15 }
 0x8e0   :  { %4072 = vmatprep.mubr.msk.f32.mxu0 %vm918_vm5, %v1045_v37  ;;  %4441 = vmatpush3.bf16.msra.mxu0 %v4440_v19 }
 0x8e1   :  { %4442 = vmatprep.subr.bf16.mxu0 %v4959_v0 }
 0x8e3   :  { %4073 = vmatmul.mubr.msk.f32.gmra.mrb[22].mxu0 %vm918_vm5, %v1046_v28 }
 0x8e4   :  { %4075 = vmatprep.mubr.msk.f32.mxu0 %vm918_vm5, %v1047_v29 }
 0x8e7   :  { %4076 = vmatmul.mubr.msk.f32.gmra.mrb[24].mxu0 %vm918_vm5, %v1048_v10 }
 0x8fb   :  { %v1023_v54 = vpop.xlane.xlu0 %1022 }
 0x8fc   :  { %4838 = vrcp.f32 %v1023_v54 }
 0x906   :  { %v4839_v47 = vpop.eup %4838 }
 0x907   :  { %v1049_v13 = vmul.f32 %v4839_v47, %v5339_v21 }
 0x909   :  { %4078 = vmatprep.mubr.msk.f32.mxu0 %vm918_vm5, %v1049_v13 }
 0x90a   :  { %4079 = vmatmul.mubr.msk.f32.gmra.mrb[26].mxu0 %vm918_vm5, %v1050_v57 }
 0x90b   :  { %4089 = vmatprep.mubr.msk.f32.mxu0 %vm4960_vm0, %v4961_v1 }
 0x9aa   :  { %v4065_v9 = vpop.f32.mrb[16].mxu0 }
 0x9ab   :  { %v1189_v5 = vpop.f32.mrb[17].mxu0 }
 0x9ae   :  { %v4068_v17 = vpop.f32.mrb[18].mxu0 }
 0x9af   :  { %1251 = vrot.lane.b32.xlu0 %v4068_v17, %s4958_s23  ;;  %v1199_v11 = vpop.f32.mrb[19].mxu0  ;;  %v1446_v17 = vld [vmem:[#allocation2 + $0x88] sm:$0xff] }
 0x9b0   :  { %v4443_v18 = vpack.c.bf16 %v1446_v17, %v1445_v7  ;;  %v1575_v7 = vld [vmem:[#allocation2 + $0xc9] sm:$0xff] }
 0x9b2   :  { %v4071_v14 = vpop.f32.mrb[20].mxu0 }
 0x9b3   :  { %1255 = vrot.lane.b32.xlu0 %v4071_v14, %s4958_s23  ;;  %v1209_v20 = vpop.f32.mrb[21].mxu0 }
 0x9b4   :  { %1253 = vrot.lane.b32.xlu1 %v1209_v20, %s4958_s23  ;;  %v1447_v20 = vld [vmem:[#allocation2 + $0x90] sm:$0xff] }
 0x9b6   :  { %v4074_v21 = vpop.f32.mrb[22].mxu0 }
 0x9b7   :  { %v1219_v8 = vpop.f32.mrb[23].mxu0 }
 0x9b8   :  { %1265 = vrot.lane.b32.xlu1 %v4074_v21, %s4969_s12  ;;  %v1448_v21 = vld [vmem:[#allocation2 + $0x98] sm:$0xff] }
 0x9ba   :  { %v4077_v53 = vpop.f32.mrb[24].mxu0 }
 0x9bb   :  { %v1229_v23 = vpop.f32.mrb[25].mxu0 }
 0x9bc   :  { %1263 = vrot.lane.b32.xlu1 %v1219_v8, %s4969_s12  ;;  %v4446_v8 = vpack.c.bf16 %v1448_v21, %v1447_v20 }
 0x9c0   :  { %1275 = vrot.lane.b32.xlu1 %v4077_v53, %s4970_s13 }
 0x9dd   :  { %v4080_v24 = vpop.f32.mrb[26].mxu0 }
 0x9de   :  { %1279 = vrot.lane.b32.xlu0 %v4080_v24, %s4970_s13  ;;  %v1239_v25 = vpop.f32.mrb[27].mxu0  ;;  %v1784_v24 = vld [vmem:[#allocation2 + $0xe4] sm:$0xff] }
 0x9df   :  { %1277 = vrot.lane.b32.xlu1 %v1239_v25, %s4970_s13  ;;  %v1785_v25 = vld [vmem:[#allocation2 + $0xec] sm:$0xff] }
 0x9e3   :  { %1267 = vrot.lane.b32.xlu1 %v1229_v23, %s4969_s12 }
 0xa21   :  { %v1252_v30 = vpop.permute.xlu0 %1251 }
 0xa22   :  { %v1284_v34 = vsel %vm720_vm15, %v1189_v5, %v1252_v30 }
 0xa25   :  { %v1256_v46 = vpop.permute.xlu0 %1255 }
 0xa26   :  { %v1254_v26 = vpop.permute.xlu1 %1253  ;;  %v1286_v16 = vsel %vm720_vm15, %v1199_v11, %v1256_v46 }
 0xa27   :  { %v1285_v39 = vsel %vm720_vm15, %v4065_v9, %v1254_v26  ;;  %v4460_v26 = vpack.c.bf16 %v1785_v25, %v1784_v24 }
 0xa2a   :  { %v1266_v27 = vpop.permute.xlu1 %1265 }
 0xa2b   :  { %v1289_v41 = vsel %vm1287_vm6, %v1285_v39, %v1266_v27 }
 0xa2e   :  { %v1264_v31 = vpop.permute.xlu1 %1263 }
 0xa2f   :  { %v1288_v35 = vsel %vm1287_vm6, %v1284_v34, %v1264_v31  ;;  %v1431_v31 = vlaneseq }
 0xa32   :  { %v1276_v22 = vpop.permute.xlu1 %1275 }
 0xa33   :  { %v1291_v38 = vsel %vm48_vm1, %v1288_v35, %v1276_v22  ;;  %v1432_v35 = vshrl.u32 %v1431_v31, 7 }
 0xa34   :  { %4090 = vmatmul.mubr.msk.f32.vlgmr.msra.gmra.mrb[28].mxu0 %vm568_vm14, %v1291_v38  ;;  %v1390_v38 = vld [vmem:[#allocation2 + $0x7e] sm:$0x3] }
 0xa35   :  { %4092 = vmatprep.mubr.msk.f32.mxu0 %vm4960_vm0, %v4961_v1  ;;  %4444 = vmatpush3.bf16.msra.mxu0 %v4443_v18  ;;  %v5409_v22 = vsub.s32 0, %v1432_v35  ;;  %v5411_v39 = vsub.s32 1, %v1432_v35  ;;  %v3627_v18 = vld [vmem:[#allocation2 + $0xa0] ss:$0 sm:$0xff] }
 0xa36   :  { %4445 = vmatprep.subr.bf16.mxu0 %v4959_v0 }
 0xa39   :  { %4447 = vmatpush3.bf16.msra.mxu0 %v4446_v8 }
 0xa3a   :  { %4461 = vmatprep.subr.bf16.mxu0 %v4460_v26 }
 0xa50   :  { %v1280_v52 = vpop.permute.xlu0 %1279 }
 0xa51   :  { %v1278_v33 = vpop.permute.xlu1 %1277 }
 0xa52   :  { %v1292_v50 = vsel %vm48_vm1, %v1289_v41, %v1278_v33  ;;  %v1434_v41 = vrot.slane %v1390_v38, %v5409_v22 }
 0xa53   :  { %4093 = vmatmul.mubr.msk.f32.gmra.mrb[30].mxu0 %vm568_vm14, %v1292_v50  ;;  %v1441_v50 = vrot.slane %v1390_v38, %v5411_v39 }
 0xa54   :  { %4095 = vmatprep.mubr.msk.f32.mxu0 %vm4960_vm0, %v4961_v1 }
 0xa55   :  { %v1268_v51 = vpop.permute.xlu1 %1267 }
 0xa56   :  { %v1290_v56 = vsel %vm1287_vm6, %v1286_v16, %v1268_v51  ;;  %v1786_v16 = vld [vmem:[#allocation2 + $0xf4] sm:$0xff]  ;;  %v1787_v51 = vld [vmem:[#allocation2 + $0xfc] sm:$0xff] }
 0xa57   :  { %v1293_v48 = vsel %vm48_vm1, %v1290_v56, %v1280_v52 }
 0xa58   :  { %4096 = vmatmul.mubr.msk.f32.gmra.mrb[32].mxu0 %vm568_vm14, %v1293_v48  ;;  %v4464_v48 = vpack.c.bf16 %v1787_v51, %v1786_v16  ;;  %v3635_v16 = vld [vmem:[#allocation2 + $0x104] ss:$0 sm:$0xff] }
 0xa59   :  { %4106 = vmatprep.mubr.msk.f32.mxu0 %vm4960_vm0, %v4961_v1 }
 0xb07   :  { %v1373_v55 = vpop.f32.mrb[28].mxu0 }
 0xb08   :  { %v1374_v58 = vadd.f32 %v3623_v61, %v1373_v55  ;;  %v4091_v59 = vpop.f32.mrb[29].mxu0 }
 0xb0a   :  { %v1387_v62 = vadd.f32 %v1374_v58, %v5107_v32 }
 0xb0c   :  { %v1391_v15 = vsel %vm568_vm14, %v1387_v62, 0.0 }
 0xb0d   :  { %1392 = vadd.xlane.f32.xlu1 %v1391_v15 }
 0xb26   :  { %v1378_v63 = vpop.f32.mrb[30].mxu0 }
 0xb27   :  { %v1379_v37 = vadd.f32 %v3623_v61, %v1378_v63  ;;  %v4094_v6 = vpop.f32.mrb[31].mxu0 }
 0xb29   :  { %v1388_v28 = vadd.f32 %v1379_v37, %v5113_v36 }
 0xb2b   :  { %v1383_v2 = vpop.f32.mrb[32].mxu0  ;;  %v1394_v29 = vsel %vm568_vm14, %v1388_v28, 0.0 }
 0xb2c   :  { %v1384_v10 = vadd.f32 %v3623_v61, %v1383_v2  ;;  %1395 = vadd.xlane.f32.xlu0 %v1394_v29  ;;  %v4097_v54 = vpop.f32.mrb[33].mxu0 }
 0xb2e   :  { %v1389_v3 = vadd.f32 %v1384_v10, %v5119_v40  ;;  %v473_v10 = vld [vmem:[#allocation2 + $0x30] sm:$0xff] }
 0xb30   :  { %v1397_v47 = vsel %vm568_vm14, %v1389_v3, 0.0 }
 0xb31   :  { %1398 = vadd.xlane.f32.xlu0 %v1397_v47  ;;  %v474_v47 = vld [vmem:[#allocation2 + $0x38] sm:$0xf] }
 0xb9a   :  { %v1393_v32 = vpop.xlane.xlu1 %1392 }
 0xb9b   :  { %v1401_v13 = vmul.f32 0.03125, %v1393_v32  ;;  %v5430_v32 = vadd.f32 %v5129_v45, %v473_v10  ;;  %v1572_v45 = vld [vmem:[#allocation2 + $0xb1] sm:$0xff] }
 0xb9d   :  { %v1404_v57 = vsub.f32 %v1387_v62, %v1401_v13  ;;  %v5437_v13 = vadd.f32 %v5127_v44, %v474_v47  ;;  %v1576_v44 = vld [vmem:[#allocation2 + $0xd1] sm:$0xff] }
 0xb9f   :  { %v1407_v9 = vmul.f32 %v1404_v57, %v1404_v57 }
 0xba1   :  { %v1410_v5 = vsel %vm568_vm14, %v1407_v9, 0.0  ;;  %v1571_v9 = vld [vmem:[#allocation2 + $0xa9] sm:$0xff] }
 0xba2   :  { %1411 = vadd.xlane.f32.xlu1 %v1410_v5 }
 0xbb9   :  { %v1396_v49 = vpop.xlane.xlu0 %1395 }
 0xbba   :  { %v1402_v36 = vmul.f32 0.03125, %v1396_v49  ;;  %v1573_v49 = vld [vmem:[#allocation2 + $0xb9] sm:$0xff] }
 0xbbc   :  { %v1405_v60 = vsub.f32 %v1388_v28, %v1402_v36  ;;  %v4452_v36 = vpack.c.bf16 %v1573_v49, %v1572_v45 }
 0xbbe   :  { %v1399_v11 = vpop.xlane.xlu0 %1398  ;;  %v1408_v4 = vmul.f32 %v1405_v60, %v1405_v60 }
 0xbbf   :  { %v1403_v19 = vmul.f32 0.03125, %v1399_v11  ;;  %v1577_v11 = vld [vmem:[#allocation2 + $0xd9] sm:$0xff] }
 0xbc0   :  { %v1413_v40 = vsel %vm568_vm14, %v1408_v4, 0.0  ;;  %v4458_v4 = vpack.c.bf16 %v1577_v11, %v1576_v44 }
 0xbc1   :  { %v1406_v14 = vsub.f32 %v1389_v3, %v1403_v19  ;;  %1414 = vadd.xlane.f32.xlu0 %v1413_v40 }
 0xbc3   :  { %v1409_v53 = vmul.f32 %v1406_v14, %v1406_v14 }
 0xbc5   :  { %v1416_v23 = vsel %vm568_vm14, %v1409_v53, 0.0 }
 0xbc6   :  { %1417 = vadd.xlane.f32.xlu1 %v1416_v23 }
 0xc2f   :  { %v1412_v27 = vpop.xlane.xlu1 %1411 }
 0xc30   :  { %v1419_v30 = vmul.f32 0.03125, %v1412_v27 }
 0xc32   :  { %v1422_v34 = vadd.f32 1e-05, %v1419_v30 }
 0xc34   :  { %4840 = vrsqrt.f32 %v1422_v34 }
 0xc3e   :  { %v4841_v33 = vpop.eup %4840 }
 0xc3f   :  { %v1428_v46 = vmul.f32 %v4841_v33, %v1404_v57  ;;  %v1570_v57 = vld [vmem:[#allocation2 + $0xa1] sm:$0xff] }
 0xc40   :  { %v4449_v5 = vpack.c.bf16 %v1571_v9, %v1570_v57 }
 0xc41   :  { %v1435_v52 = vmul.f32 %v1434_v41, %v1428_v46 }
 0xc42   :  { %4450 = vmatpush3.bf16.msra.mxu1 %v4449_v5 }
 0xc43   :  { %v5415_v56 = vadd.f32 %v1441_v50, %v1435_v52  ;;  %4451 = vmatprep.subr.bf16.mxu1 %v4959_v0 }
 0xc45   :  { %4107 = vmatmul.mubr.msk.f32.vlgmr.msra.gmra.mrb[34].mxu0 %vm568_vm14, %v5415_v56 }
 0xc46   :  { %4463 = vmatpush3.bf16.msra.mxu0 %v4460_v26  ;;  %4109 = vmatprep.mubr.msk.f32.mxu0 %vm4960_vm0, %v4961_v1 }
 0xc47   :  { %4465 = vmatprep.subr.bf16.mxu0 %v4464_v48  ;;  %4453 = vmatpush3.bf16.msra.mxu1 %v4452_v36 }
 0xc48   :  { %4454 = vmatprep.subr.bf16.mxu1 %v4959_v0 }
 0xc4a   :  { %4467 = vmatpush3.bf16.msra.mxu0 %v4464_v48 }
 0xc4e   :  { %v1415_v61 = vpop.xlane.xlu0 %1414 }
 0xc4f   :  { %v1420_v55 = vmul.f32 0.03125, %v1415_v61 }
 0xc51   :  { %v1423_v58 = vadd.f32 1e-05, %v1420_v55 }
 0xc53   :  { %4842 = vrsqrt.f32 %v1423_v58  ;;  %v1418_v59 = vpop.xlane.xlu1 %1417 }
 0xc54   :  { %v1421_v62 = vmul.f32 0.03125, %v1418_v59 }
 0xc56   :  { %v1424_v15 = vadd.f32 1e-05, %v1421_v62 }
 0xc58   :  { %4844 = vrsqrt.f32 %v1424_v15 }
 0xc5d   :  { %v4843_v63 = vpop.eup %4842 }
 0xc5e   :  { %v1429_v37 = vmul.f32 %v4843_v63, %v1405_v60  ;;  %v1574_v60 = vld [vmem:[#allocation2 + $0xc1] sm:$0xff] }
 0xc5f   :  { %v4455_v17 = vpack.c.bf16 %v1575_v7, %v1574_v60 }
 0xc60   :  { %v1436_v6 = vmul.f32 %v1434_v41, %v1429_v37 }
 0xc61   :  { %4456 = vmatpush3.bf16.msra.mxu1 %v4455_v17 }
 0xc62   :  { %v4845_v28 = vpop.eup %4844  ;;  %v5421_v2 = vadd.f32 %v1441_v50, %v1436_v6  ;;  %4457 = vmatprep.subr.bf16.mxu1 %v4959_v0 }
 0xc63   :  { %v1430_v29 = vmul.f32 %v4845_v28, %v1406_v14 }
 0xc64   :  { %4110 = vmatmul.mubr.msk.f32.gmra.mrb[36].mxu0 %vm568_vm14, %v5421_v2 }
 0xc65   :  { %4112 = vmatprep.mubr.msk.f32.mxu0 %vm4960_vm0, %v4961_v1  ;;  %v1437_v54 = vmul.f32 %v1434_v41, %v1430_v29  ;;  %4459 = vmatpush3.bf16.msra.mxu1 %v4458_v4 }
 0xc67   :  { %v5427_v3 = vadd.f32 %v1441_v50, %v1437_v54 }
 0xc69   :  { %4113 = vmatmul.mubr.msk.f32.gmra.mrb[38].mxu0 %vm568_vm14, %v5427_v3 }
 0xc6a   :  { %4148 = vmatprep.mubr.msk.f32.mxu0 %vm568_vm14, %v5430_v32 }
 0xc6d   :  { %4149 = vmatmul.mubr.msk.f32.vlgmr.msra.gmra.mrb[40].mxu0 %vm568_vm14, %v5437_v13 }
 0xd18   :  { %v1529_v19 = vpop.f32.mrb[34].mxu0 }
 0xd19   :  { %v1530_v40 = vadd.f32 %v3627_v18, %v1529_v19  ;;  %v4108_v14 = vpop.f32.mrb[35].mxu0 }
 0xd1b   :  { %v1543_v20 = vmul.f32 %v1530_v40, %v1530_v40 }
 0xd1d   :  { %v1546_v21 = vmul.f32 %v1543_v20, %v1530_v40 }
 0xd1f   :  { %v1549_v8 = vmul.f32 0.044715, %v1546_v21 }
 0xd21   :  { %v1552_v53 = vadd.f32 %v1549_v8, %v1530_v40 }
 0xd23   :  { %v1555_v23 = vmul.f32 0.7978846, %v1552_v53 }
 0xd25   :  { %4846 = vtanh.f32 %v1555_v23 }
 0xd2f   :  { %v4847_v24 = vpop.eup %4846 }
 0xd30   :  { %v1561_v25 = vadd.f32 1.0, %v4847_v24 }
 0xd32   :  { %v1564_v26 = vmul.f32 0.5, %v1561_v25 }
 0xd34   :  { %v1567_v27 = vmul.f32 %v1564_v26, %v1530_v40 }
 0xd36   :  { %4132 = vmatmul.mubr.msk.f32.vlgmr.msra.gmra.mrb[24].mxu1 %vm1583_vm7, %v1567_v27 }
 0xd37   :  { %v1534_v30 = vpop.f32.mrb[36].mxu0  ;;  %4134 = vmatprep.mubr.msk.f32.mxu1 %vm4960_vm0, %v4961_v1 }
 0xd38   :  { %v1535_v31 = vadd.f32 %v3627_v18, %v1534_v30  ;;  %v4111_v34 = vpop.f32.mrb[37].mxu0 }
 0xd3a   :  { %v1544_v35 = vmul.f32 %v1535_v31, %v1535_v31 }
 0xd3c   :  { %v1547_v38 = vmul.f32 %v1544_v35, %v1535_v31  ;;  %v1539_v41 = vpop.f32.mrb[38].mxu0 }
 0xd3d   :  { %v1540_v33 = vadd.f32 %v3627_v18, %v1539_v41  ;;  %v4114_v46 = vpop.f32.mrb[39].mxu0 }
 0xd3e   :  { %v1550_v50 = vmul.f32 0.044715, %v1547_v38 }
 0xd3f   :  { %v1545_v51 = vmul.f32 %v1540_v33, %v1540_v33 }
 0xd40   :  { %v1553_v52 = vadd.f32 %v1550_v50, %v1535_v31  ;;  %v4150_v48 = vpop.f32.mrb[40].mxu0 }
 0xd41   :  { %v1548_v61 = vmul.f32 %v1545_v51, %v1540_v33  ;;  %v1871_v55 = vadd.f32 %v4150_v48, %v3635_v16  ;;  %v1865_v58 = vpop.f32.mrb[41].mxu0  ;;  %v1875_v51 = vld [vmem:[#allocation2 + $0x2a0] sm:$0xff] }
 0xd42   :  { %v1556_v59 = vmul.f32 0.7978846, %v1553_v52  ;;  %v1866_v62 = vadd.f32 %v3635_v16, %v1865_v58 }
 0xd43   :  { %v1551_v15 = vmul.f32 0.044715, %v1548_v61  ;;  %v1888_v63 = vrot.slane %v1871_v55, 4  ;;  %v1874_v61 = vld [vmem:[#allocation2 + $0x298] sm:$0xff] }
 0xd44   :  { %4848 = vtanh.f32 %v1556_v59  ;;  %v1887_v37 = vrot.slane %v1866_v62, 4 }
 0xd45   :  { %v1554_v6 = vadd.f32 %v1551_v15, %v1540_v33 }
 0xd46   :  { %1890 = vrot.lane.b32.xlu0 %v1887_v37, %s4964_s1  ;;  %v1889_v28 = vsel %vm387_vm3, %v1887_v37, %v1888_v63 }
 0xd47   :  { %v1557_v29 = vmul.f32 0.7978846, %v1554_v6  ;;  %1892 = vrot.lane.b32.xlu1 %v1889_v28, %s4964_s1 }
 0xd49   :  { %4850 = vtanh.f32 %v1557_v29 }
 0xd4a   :  { %1897 = vrot.lane.b32.xlu0 %v1871_v55, %s4966_s9 }
 0xd4b   :  { %1895 = vrot.lane.b32.xlu1 %v1866_v62, %s4966_s9 }
 0xd4e   :  { %v4849_v10 = vpop.eup %4848  ;;  %1902 = vrot.lane.b32.xlu0 %v1889_v28, %s4965_s8 }
 0xd4f   :  { %1900 = vrot.lane.b32.xlu1 %v1887_v37, %s4965_s8  ;;  %v1562_v54 = vadd.f32 1.0, %v4849_v10  ;;  %v1876_v37 = vld [vmem:[#allocation2 + $0x2a8] sm:$0xff]  ;;  %v1877_v10 = vld [vmem:[#allocation2 + $0x2b0] sm:$0xff] }
 0xd51   :  { %v1565_v47 = vmul.f32 0.5, %v1562_v54 }
 0xd53   :  { %v4851_v57 = vpop.eup %4850  ;;  %v1568_v9 = vmul.f32 %v1565_v47, %v1535_v31 }
 0xd54   :  { %v1563_v5 = vadd.f32 1.0, %v4851_v57 }
 0xd55   :  { %4135 = vmatmul.mubr.msk.f32.gmra.mrb[26].mxu1 %vm1583_vm7, %v1568_v9  ;;  %v1878_v9 = vld [vmem:[#allocation2 + $0x2b8] sm:$0xff] }
 0xd56   :  { %4137 = vmatprep.mubr.msk.f32.mxu1 %vm4960_vm0, %v4961_v1  ;;  %v1566_v45 = vmul.f32 0.5, %v1563_v5 }
 0xd58   :  { %v1569_v49 = vmul.f32 %v1566_v45, %v1540_v33 }
 0xd5a   :  { %4138 = vmatmul.mubr.msk.f32.gmra.mrb[28].mxu1 %vm1583_vm7, %v1569_v49 }
 0xd5b   :  { %4163 = vmatprep.mubr.msk.f32.mxu1 %vm720_vm15, %v1866_v62 }
 0xdb8   :  { %v1891_v36 = vpop.permute.xlu0 %1890 }
 0xdb9   :  { %v1905_v60 = vsel %vm387_vm3, %v1871_v55, %v1891_v36  ;;  %v1893_v7 = vpop.permute.xlu1 %1892 }
 0xdba   :  { %v5460_v17 = vpack.i.bf16 %v1905_v60, %v1866_v62 }
 0xdbc   :  { %v1898_v44 = vpop.permute.xlu0 %1897  ;;  %4708 = vrot.lane.b32.xlu1 %v5460_v17, %s4967_s10 }
 0xdbd   :  { %v1896_v11 = vpop.permute.xlu1 %1895 }
 0xdbe   :  { %v5464_v4 = vpack.i.bf16 %v1896_v11, %v1893_v7 }
 0xdc0   :  { %4713 = vrot.lane.b32.xlu0 %v5464_v4, %s4967_s10  ;;  %v1903_v19 = vpop.permute.xlu0 %1902 }
 0xdc1   :  { %v1901_v18 = vpop.permute.xlu1 %1900 }
 0xdc2   :  { %v1906_v40 = vsel %vm387_vm3, %v1898_v44, %v1901_v18 }
 0xdc3   :  { %v5469_v14 = vpack.i.bf16 %v1903_v19, %v1906_v40 }
 0xdc5   :  { %4718 = vrot.lane.b32.xlu1 %v5469_v14, %s4967_s10 }
 0xe09   :  { %v5473_v20 = vpop.f32.mrb[24].mxu1 }
 0xe0a   :  { %v4133_v21 = vpop.f32.mrb[25].mxu1 }
 0xe28   :  { %v5475_v8 = vpop.f32.mrb[26].mxu1 }
 0xe29   :  { %v4136_v53 = vpop.f32.mrb[27].mxu1 }
 0xe2d   :  { %v5477_v23 = vpop.f32.mrb[28].mxu1 }
 0xe2e   :  { %v4139_v24 = vpop.f32.mrb[29].mxu1  ;;  %v4709_v25 = vpop.permute.xlu1 %4708 }
 0xe2f   :  { %v4711_v26 = vunpack.i.h.bf16 %v4709_v25  ;;  %v4710_v27 = vunpack.i.l.bf16 %v4709_v25 }
 0xe31   :  { %v4468_v30 = vpack.c.bf16 %v4711_v26, %v4710_v27 }
 0xe32   :  { %v4714_v31 = vpop.permute.xlu0 %4713 }
 0xe33   :  { %v4716_v34 = vunpack.i.h.bf16 %v4714_v31  ;;  %v4715_v35 = vunpack.i.l.bf16 %v4714_v31  ;;  %4470 = vmatprep.subr.msk.bf16.mxu1 %vm5179_vm4, %v4468_v30 }
 0xe34   :  { %4473 = vmatpush3.bf16.xpose.msk.msra.mxu1 %vm5179_vm4, %v4468_v30 }
 0xe35   :  { %v4474_v38 = vpack.c.bf16 %v4716_v34, %v4715_v35 }
 0xe37   :  { %v4719_v41 = vpop.permute.xlu1 %4718  ;;  %4476 = vmatprep.subr.msk.bf16.mxu1 %vm5179_vm4, %v4474_v38 }
 0xe38   :  { %v4721_v33 = vunpack.i.h.bf16 %v4719_v41  ;;  %v4720_v46 = vunpack.i.l.bf16 %v4719_v41 }
 0xe3a   :  { %v4480_v50 = vpack.c.bf16 %v4721_v33, %v4720_v46 }
 0xe3c   :  { %4479 = vmatpush3.bf16.xpose.msk.msra.mxu1 %vm5179_vm4, %v4474_v38 }
 0xe3d   :  { %4482 = vmatprep.subr.msk.bf16.mxu1 %vm5179_vm4, %v4480_v50 }
 0xe44   :  { %4485 = vmatpush3.bf16.xpose.msk.msra.mxu1 %vm5179_vm4, %v4480_v50 }
 0xe4b   :  { %4164 = vmatmul.mubr.msk.f32.vlgmr.msra.gmra.mrb[30].mxu1 %vm720_vm15, %v1905_v60  ;;  %v1879_v60 = vld [vmem:[#allocation2 + $0x2c0] sm:$0xff] }
 0xe4c   :  { %4166 = vmatprep.mubr.msk.f32.mxu1 %vm720_vm15, %v1893_v7 }
 0xe4f   :  { %4167 = vmatmul.mubr.msk.f32.gmra.mrb[32].mxu1 %vm720_vm15, %v1896_v11 }
 0xe50   :  { %4169 = vmatprep.mubr.msk.f32.mxu1 %vm720_vm15, %v1906_v40 }
 0xe53   :  { %4170 = vmatmul.mubr.msk.f32.gmra.mrb[34].mxu1 %vm720_vm15, %v1903_v19 }
 0xf1e   :  { %v4165_v16 = vpop.f32.mrb[30].mxu1 }
 0xf1f   :  { %v2041_v52 = vmul.f32 0.35355338, %v4165_v16  ;;  %v2011_v48 = vpop.f32.mrb[31].mxu1 }
 0xf20   :  { %v2040_v55 = vmul.f32 0.35355338, %v2011_v48 }
 0xf21   :  { %v2047_v58 = vadd.f32 %v2041_v52, %v1875_v51 }
 0xf22   :  { %v4168_v59 = vpop.f32.mrb[32].mxu1  ;;  %v2046_v62 = vadd.f32 %v2040_v55, %v1874_v61 }
 0xf23   :  { %v2021_v15 = vpop.f32.mrb[33].mxu1  ;;  %v2056_v63 = vsel %vm2052_vm8, %v2047_v58, -inf  ;;  %v2043_v6 = vmul.f32 0.35355338, %v4168_v59 }
 0xf24   :  { %v2042_v28 = vmul.f32 0.35355338, %v2021_v15  ;;  %2057 = vmax.xlane.f32.xlu1 %v2056_v63  ;;  %v2053_v29 = vsel %vm2052_vm8, %v2046_v62, -inf }
 0xf25   :  { %2054 = vmax.xlane.f32.xlu0 %v2053_v29  ;;  %v2049_v36 = vadd.f32 %v2043_v6, %v1877_v10 }
 0xf26   :  { %v4171_v54 = vpop.f32.mrb[34].mxu1  ;;  %v2048_v47 = vadd.f32 %v2042_v28, %v1876_v37 }
 0xf27   :  { %v2031_v57 = vpop.f32.mrb[35].mxu1  ;;  %v2045_v5 = vmul.f32 0.35355338, %v4171_v54  ;;  %v2062_v44 = vsel %vm2052_vm8, %v2049_v36, -inf }
 0xf28   :  { %v2044_v45 = vmul.f32 0.35355338, %v2031_v57  ;;  %v2059_v49 = vsel %vm2052_vm8, %v2048_v47, -inf }
 0xf29   :  { %2060 = vmax.xlane.f32.xlu0 %v2059_v49  ;;  %v2051_v18 = vadd.f32 %v2045_v5, %v1879_v60 }
 0xf2a   :  { %v2050_v7 = vadd.f32 %v2044_v45, %v1878_v9 }
 0xf2b   :  { %v2068_v19 = vsel %vm2052_vm8, %v2051_v18, -inf }
 0xf2c   :  { %v2065_v11 = vsel %vm2052_vm8, %v2050_v7, -inf }
 0xf2d   :  { %2063 = vmax.xlane.f32.xlu0 %v2062_v44  ;;  %2066 = vmax.xlane.f32.xlu1 %v2065_v11 }
 0xf31   :  { %2069 = vmax.xlane.f32.xlu0 %v2068_v19 }
 0xf3e   :  { %4723 = vrot.lane.b32.xlu1 %v5460_v17, %s4968_s11 }
 0xfb1   :  { %v2058_v40 = vpop.xlane.xlu1 %2057 }
 0xfb2   :  { %v2072_v21 = vsub.f32 %v2047_v58, %v2058_v40  ;;  %v2055_v53 = vpop.xlane.xlu0 %2054 }
 0xfb3   :  { %v2071_v24 = vsub.f32 %v2046_v62, %v2055_v53 }
 0xfb4   :  { %v2079_v25 = vmul.f32 1.442695, %v2072_v21 }
 0xfb5   :  { %v2077_v26 = vmul.f32 1.442695, %v2071_v24 }
 0xfb6   :  { %4852 = vpow2.f32 %v2079_v25  ;;  %v2061_v27 = vpop.xlane.xlu0 %2060 }
 0xfb7   :  { %4854 = vpow2.f32 %v2077_v26  ;;  %v2073_v30 = vsub.f32 %v2048_v47, %v2061_v27 }
 0xfb9   :  { %v2081_v31 = vmul.f32 1.442695, %v2073_v30 }
 0xfba   :  { %v2064_v34 = vpop.xlane.xlu0 %2063  ;;  %v2067_v35 = vpop.xlane.xlu1 %2066 }
 0xfbb   :  { %4856 = vpow2.f32 %v2081_v31  ;;  %v2074_v38 = vsub.f32 %v2049_v36, %v2064_v34  ;;  %v2075_v41 = vsub.f32 %v2050_v7, %v2067_v35 }
 0xfbd   :  { %v2083_v33 = vmul.f32 1.442695, %v2074_v38  ;;  %v2085_v46 = vmul.f32 1.442695, %v2075_v41  ;;  %v1880_v38 = vld [vmem:[#allocation2 + $0x105] sm:$0xff]  ;;  %v1881_v41 = vld [vmem:[#allocation2 + $0x10d] sm:$0xff] }
 0xfbe   :  { %v2070_v50 = vpop.xlane.xlu0 %2069  ;;  %v4724_v17 = vpop.permute.xlu1 %4723 }
 0xfbf   :  { %4858 = vpow2.f32 %v2083_v33  ;;  %v2076_v16 = vsub.f32 %v2051_v18, %v2070_v50  ;;  %v4726_v51 = vunpack.i.h.bf16 %v4724_v17  ;;  %v4725_v52 = vunpack.i.l.bf16 %v4724_v17  ;;  %v1883_v50 = vld [vmem:[#allocation2 + $0x11d] sm:$0xff] }
 0xfc0   :  { %v4853_v48 = vpop.eup %4852  ;;  %4860 = vpow2.f32 %v2085_v46  ;;  %v4498_v33 = vpack.c.bf16 %v1881_v41, %v1880_v38  ;;  %v1882_v46 = vld [vmem:[#allocation2 + $0x115] sm:$0xff] }
 0xfc1   :  { %v4855_v61 = vpop.eup %4854  ;;  %v2087_v55 = vmul.f32 1.442695, %v2076_v16  ;;  %v4486_v58 = vpack.c.bf16 %v4726_v51, %v4725_v52  ;;  %v2092_v59 = vsel %vm2052_vm8, %v4853_v48, 0.0  ;;  %v4502_v16 = vpack.c.bf16 %v1883_v50, %v1882_v46 }
 0xfc2   :  { %2093 = vadd.xlane.f32.xlu0 %v2092_v59  ;;  %v2089_v62 = vsel %vm2052_vm8, %v4855_v61, 0.0 }
 0xfc3   :  { %4862 = vpow2.f32 %v2087_v55  ;;  %2090 = vadd.xlane.f32.xlu1 %v2089_v62  ;;  %4487 = vmatprep.subr.bf16.mxu0 %v4486_v58 }
 0xfc4   :  { %4489 = vmatpush3.bf16.msra.mxu0 %v4486_v58 }
 0xfc5   :  { %v4857_v15 = vpop.eup %4856 }
 0xfc6   :  { %v2095_v63 = vsel %vm2052_vm8, %v4857_v15, 0.0 }
 0xfc7   :  { %2096 = vadd.xlane.f32.xlu1 %v2095_v63 }
 0xfc9   :  { %v4859_v37 = vpop.eup %4858 }
 0xfca   :  { %v4861_v6 = vpop.eup %4860  ;;  %v2098_v28 = vsel %vm2052_vm8, %v4859_v37, 0.0 }
 0xfcb   :  { %2099 = vadd.xlane.f32.xlu0 %v2098_v28  ;;  %v2101_v29 = vsel %vm2052_vm8, %v4861_v6, 0.0 }
 0xfcc   :  { %2102 = vadd.xlane.f32.xlu1 %v2101_v29 }
 0xfcd   :  { %v4863_v10 = vpop.eup %4862 }
 0xfce   :  { %v2104_v54 = vsel %vm2052_vm8, %v4863_v10, 0.0 }
 0xfcf   :  { %2105 = vadd.xlane.f32.xlu0 %v2104_v54 }
 0xfdd   :  { %4733 = vrot.lane.b32.xlu1 %v5469_v14, %s4968_s11 }
 0xfe5   :  { %4728 = vrot.lane.b32.xlu0 %v5464_v4, %s4968_s11 }
0x104f   :  { %v2094_v57 = vpop.xlane.xlu0 %2093 }
0x1050   :  { %v2091_v47 = vpop.xlane.xlu1 %2090 }
0x1051   :  { %4864 = vrcp.f32 %v2091_v47 }
0x1052   :  { %4866 = vrcp.f32 %v2094_v57 }
0x1054   :  { %v2097_v9 = vpop.xlane.xlu1 %2096 }
0x1055   :  { %4868 = vrcp.f32 %v2097_v9 }
0x1058   :  { %v2100_v5 = vpop.xlane.xlu0 %2099 }
0x1059   :  { %v2103_v45 = vpop.xlane.xlu1 %2102  ;;  %4870 = vrcp.f32 %v2100_v5 }
0x105a   :  { %4872 = vrcp.f32 %v2103_v45 }
0x105b   :  { %v4865_v49 = vpop.eup %4864 }
0x105c   :  { %v2106_v36 = vpop.xlane.xlu0 %2105  ;;  %v2113_v60 = vmul.f32 %v4865_v49, %v4855_v61  ;;  %v4867_v21 = vpop.eup %4866 }
0x105d   :  { %v4734_v7 = vpop.permute.xlu1 %4733  ;;  %4874 = vrcp.f32 %v2106_v36  ;;  %v2114_v24 = vmul.f32 %v4867_v21, %v4853_v48 }
0x105e   :  { %4184 = vmatprep.mubr.msk.f32.mxu0 %vm2052_vm8, %v2113_v60  ;;  %v4736_v11 = vunpack.i.h.bf16 %v4734_v7  ;;  %v4735_v14 = vunpack.i.l.bf16 %v4734_v7 }
0x105f   :  { %v4869_v53 = vpop.eup %4868 }
0x1060   :  { %v4729_v44 = vpop.permute.xlu0 %4728  ;;  %v4494_v40 = vpack.c.bf16 %v4736_v11, %v4735_v14  ;;  %v2115_v26 = vmul.f32 %v4869_v53, %v4857_v15 }
0x1061   :  { %v4731_v18 = vunpack.i.h.bf16 %v4729_v44  ;;  %v4730_v19 = vunpack.i.l.bf16 %v4729_v44 }
0x1063   :  { %v4490_v4 = vpack.c.bf16 %v4731_v18, %v4730_v19  ;;  %v4871_v25 = vpop.eup %4870 }
0x1064   :  { %v4873_v27 = vpop.eup %4872  ;;  %v2116_v30 = vmul.f32 %v4871_v25, %v4859_v37 }
0x1065   :  { %4491 = vmatprep.subr.bf16.mxu0 %v4490_v4  ;;  %v2117_v34 = vmul.f32 %v4873_v27, %v4861_v6  ;;  %v3631_v6 = vld [vmem:[#allocation2 + $0xe1] ss:$0 sm:$0xff] }
0x1066   :  { %4493 = vmatpush3.bf16.msra.mxu0 %v4490_v4  ;;  %v1665_v28 = vadd.f32 %v3631_v6, %v5475_v8  ;;  %v1660_v29 = vadd.f32 %v3631_v6, %v5473_v20  ;;  %v1670_v54 = vadd.f32 %v3631_v6, %v5477_v23 }
0x1067   :  { %4495 = vmatprep.subr.bf16.mxu0 %v4494_v40  ;;  %v4875_v31 = vpop.eup %4874 }
0x1068   :  { %v2118_v35 = vmul.f32 %v4875_v31, %v4863_v10  ;;  %v1674_v10 = vadd.f32 %v1665_v28, %v5421_v2  ;;  %v1673_v47 = vadd.f32 %v1660_v29, %v5415_v56  ;;  %v1675_v57 = vadd.f32 %v1670_v54, %v5427_v3 }
0x106a   :  { %4497 = vmatpush3.bf16.msra.mxu0 %v4494_v40  ;;  %v1680_v9 = vsel %vm568_vm14, %v1674_v10, 0.0  ;;  %v1677_v5 = vsel %vm568_vm14, %v1673_v47, 0.0  ;;  %v1683_v45 = vsel %vm568_vm14, %v1675_v57, 0.0 }
0x106b   :  { %4499 = vmatprep.subr.bf16.mxu0 %v4498_v33 }
0x106d   :  { %4185 = vmatmul.mubr.msk.f32.vlgmr.msra.gmra.mrb[42].mxu0 %vm2052_vm8, %v2114_v24 }
0x106e   :  { %4187 = vmatprep.mubr.msk.f32.mxu0 %vm2052_vm8, %v2115_v26  ;;  %4501 = vmatpush3.bf16.msra.mxu0 %v4498_v33 }
0x106f   :  { %4503 = vmatprep.subr.bf16.mxu0 %v4502_v16 }
0x1071   :  { %4188 = vmatmul.mubr.msk.f32.gmra.mrb[44].mxu0 %vm2052_vm8, %v2116_v30 }
0x1072   :  { %4190 = vmatprep.mubr.msk.f32.mxu0 %vm2052_vm8, %v2117_v34  ;;  %4505 = vmatpush3.bf16.msra.mxu0 %v4502_v16 }
0x1073   :  { %4514 = vmatprep.subr.bf16.mxu0 %v4959_v0 }
0x1075   :  { %4191 = vmatmul.mubr.msk.f32.gmra.mrb[46].mxu0 %vm2052_vm8, %v2118_v35 }
0x1140   :  { %v4186_v17 = vpop.f32.mrb[42].mxu0 }
0x1141   :  { %v2221_v51 = vpop.f32.mrb[43].mxu0  ;;  %v2252_v61 = vrot.slane %v4186_v17, 4 }
0x1144   :  { %v4189_v52 = vpop.f32.mrb[44].mxu0 }
0x1145   :  { %2263 = vrot.lane.b32.xlu1 %v4189_v52, %s4969_s12  ;;  %v2231_v48 = vpop.f32.mrb[45].mxu0 }
0x1146   :  { %v2253_v55 = vrot.slane %v2231_v48, 4 }
0x1148   :  { %2257 = vrot.lane.b32.xlu0 %v2253_v55, %s4958_s23  ;;  %v4192_v58 = vpop.f32.mrb[46].mxu0  ;;  %v2254_v59 = vsel %vm387_vm3, %v2252_v61, %v2253_v55  ;;  %v1676_v55 = vld [vmem:[#allocation2 + $0xe2] sm:$0x3] }
0x1149   :  { %v2271_v62 = vrot.slane %v4192_v58, 4  ;;  %2255 = vrot.lane.b32.xlu1 %v2254_v59, %s4958_s23  ;;  %v2241_v15 = vpop.f32.mrb[47].mxu0  ;;  %v1719_v58 = vrot.slane %v1676_v55, %v5409_v22 }
0x114a   :  { %v2270_v63 = vrot.slane %v2241_v15, 4 }
0x114c   :  { %2265 = vrot.lane.b32.xlu0 %v2241_v15, %s4969_s12  ;;  %v2272_v37 = vsel %vm387_vm3, %v2270_v63, %v2271_v62  ;;  %v1726_v63 = vrot.slane %v1676_v55, %v5411_v39  ;;  %v2413_v55 = vld [vmem:[#allocation2 + $0x130] sm:$0xff] }
0x114d   :  { %2273 = vrot.lane.b32.xlu1 %v2272_v37, %s4970_s13 }
0x1150   :  { %2275 = vrot.lane.b32.xlu0 %v2271_v62, %s4970_s13  ;;  %v3656_v62 = vld [vmem:[#allocation2 + $0x125] ss:$0 sm:$0xff] }
0x116f   :  { %1681 = vadd.xlane.f32.xlu0 %v1680_v9 }
0x1171   :  { %1678 = vadd.xlane.f32.xlu1 %v1677_v5 }
0x1173   :  { %1684 = vadd.xlane.f32.xlu0 %v1683_v45 }
0x11b7   :  { %v2264_v8 = vpop.permute.xlu1 %2263 }
0x11ba   :  { %v2258_v49 = vpop.permute.xlu0 %2257 }
0x11bb   :  { %v2256_v20 = vpop.permute.xlu1 %2255  ;;  %v2280_v60 = vsel %vm720_vm15, %v4186_v17, %v2258_v49 }
0x11bc   :  { %v2279_v2 = vsel %vm720_vm15, %v2221_v51, %v2256_v20 }
0x11bd   :  { %v2281_v23 = vsel %vm1287_vm6, %v2279_v2, %v2264_v8 }
0x11be   :  { %v2266_v36 = vpop.permute.xlu0 %2265 }
0x11bf   :  { %v2274_v56 = vpop.permute.xlu1 %2273  ;;  %v2282_v7 = vsel %vm1287_vm6, %v2280_v60, %v2266_v36 }
0x11c0   :  { %v2283_v3 = vsel %vm48_vm1, %v2281_v23, %v2274_v56 }
0x11c1   :  { %4201 = vmatprep.mubr.msk.f32.mxu0 %vm568_vm14, %v2283_v3 }
0x11c2   :  { %v2276_v44 = vpop.permute.xlu0 %2275 }
0x11c3   :  { %v2284_v11 = vsel %vm48_vm1, %v2282_v7, %v2276_v44 }
0x11c4   :  { %4202 = vmatmul.mubr.msk.f32.vlgmr.msra.gmra.mrb[48].mxu0 %vm568_vm14, %v2284_v11 }
0x11c5   :  { %4223 = vmatprep.mubr.msk.f32.mxu0 %vm4960_vm0, %v4961_v1 }
0x11fc   :  { %v1682_v14 = vpop.xlane.xlu0 %1681 }
0x11fd   :  { %v1687_v18 = vmul.f32 0.03125, %v1682_v14 }
0x11fe   :  { %v1679_v19 = vpop.xlane.xlu1 %1678 }
0x11ff   :  { %v1690_v4 = vsub.f32 %v1674_v10, %v1687_v18  ;;  %v1686_v40 = vmul.f32 0.03125, %v1679_v19 }
0x1200   :  { %v1685_v21 = vpop.xlane.xlu0 %1684 }
0x1201   :  { %v1689_v53 = vsub.f32 %v1673_v47, %v1686_v40  ;;  %v1688_v24 = vmul.f32 0.03125, %v1685_v21  ;;  %v1693_v25 = vmul.f32 %v1690_v4, %v1690_v4 }
0x1203   :  { %v1691_v26 = vsub.f32 %v1675_v57, %v1688_v24  ;;  %v1698_v27 = vsel %vm568_vm14, %v1693_v25, 0.0  ;;  %v1692_v30 = vmul.f32 %v1689_v53, %v1689_v53 }
0x1204   :  { %1699 = vadd.xlane.f32.xlu0 %v1698_v27 }
0x1205   :  { %v1695_v31 = vsel %vm568_vm14, %v1692_v30, 0.0  ;;  %v1694_v34 = vmul.f32 %v1691_v26, %v1691_v26 }
0x1206   :  { %1696 = vadd.xlane.f32.xlu1 %v1695_v31 }
0x1207   :  { %v1701_v35 = vsel %vm568_vm14, %v1694_v34, 0.0 }
0x120a   :  { %1702 = vadd.xlane.f32.xlu1 %v1701_v35 }
0x1291   :  { %v1700_v38 = vpop.xlane.xlu0 %1699 }
0x1292   :  { %v1705_v41 = vmul.f32 0.03125, %v1700_v38 }
0x1293   :  { %v1697_v33 = vpop.xlane.xlu1 %1696 }
0x1294   :  { %v1708_v46 = vadd.f32 1e-05, %v1705_v41  ;;  %v1704_v50 = vmul.f32 0.03125, %v1697_v33 }
0x1296   :  { %4876 = vrsqrt.f32 %v1708_v46  ;;  %v1707_v17 = vadd.f32 1e-05, %v1704_v50  ;;  %v2502_v50 = vld [vmem:[#allocation2 + $0x149] sm:$0xff] }
0x1297   :  { %v4203_v16 = vpop.f32.mrb[48].mxu0  ;;  %v1703_v51 = vpop.xlane.xlu1 %1702 }
0x1298   :  { %4878 = vrsqrt.f32 %v1707_v17  ;;  %v1706_v52 = vmul.f32 0.03125, %v1703_v51  ;;  %v2361_v48 = vpop.f32.mrb[49].mxu0  ;;  %v2367_v8 = vadd.f32 %v4203_v16, %v3656_v62  ;;  %v2503_v17 = vld [vmem:[#allocation2 + $0x151] sm:$0xff]  ;;  %v2504_v51 = vld [vmem:[#allocation2 + $0x159] sm:$0xff] }
0x1299   :  { %v2362_v6 = vadd.f32 %v3656_v62, %v2361_v48  ;;  %v4515_v16 = vpack.c.bf16 %v2503_v17, %v2502_v50  ;;  %v2415_v62 = vld [vmem:[#allocation2 + $0x140] sm:$0xff] }
0x129a   :  { %v1709_v61 = vadd.f32 1e-05, %v1706_v52  ;;  %v2371_v23 = vadd.f32 %v2367_v8, %v5437_v13  ;;  %v2505_v52 = vld [vmem:[#allocation2 + $0x161] sm:$0xff] }
0x129b   :  { %v2370_v57 = vadd.f32 %v2362_v6, %v5430_v32  ;;  %4516 = vmatpush3.bf16.msra.mxu0 %v4515_v16  ;;  %v4518_v48 = vpack.c.bf16 %v2505_v52, %v2504_v51  ;;  %v3659_v16 = vld [vmem:[#allocation2 + $0x148] ss:$0 sm:$0xff] }
0x129c   :  { %4880 = vrsqrt.f32 %v1709_v61  ;;  %v2377_v32 = vsel %vm2376_vm9, %v2371_v23, 0.0  ;;  %4517 = vmatprep.subr.bf16.mxu0 %v4959_v0  ;;  %v2412_v61 = vld [vmem:[#allocation2 + $0x128] sm:$0xff] }
0x129d   :  { %v2373_v2 = vsel %vm568_vm14, %v2370_v57, 0.0 }
0x129f   :  { %4519 = vmatpush3.bf16.msra.mxu0 %v4518_v48 }
0x12a0   :  { %v4877_v59 = vpop.eup %4876 }
0x12a1   :  { %v1714_v15 = vmul.f32 %v4877_v59, %v1690_v4  ;;  %v2414_v59 = vld [vmem:[#allocation2 + $0x138] sm:$0xff] }
0x12a2   :  { %v4879_v37 = vpop.eup %4878 }
0x12a3   :  { %v1721_v28 = vmul.f32 %v1719_v58, %v1714_v15  ;;  %v1713_v29 = vmul.f32 %v4879_v37, %v1689_v53  ;;  %v4510_v15 = vpack.c.bf16 %v2415_v62, %v2414_v59 }
0x12a5   :  { %v1728_v10 = vadd.f32 %v1726_v63, %v1721_v28  ;;  %v1720_v54 = vmul.f32 %v1719_v58, %v1713_v29 }
0x12a6   :  { %v4881_v47 = vpop.eup %4880 }
0x12a7   :  { %v1734_v9 = vsel %vm568_vm14, %v1728_v10, 0.0  ;;  %v1727_v5 = vadd.f32 %v1726_v63, %v1720_v54  ;;  %v1715_v45 = vmul.f32 %v4881_v47, %v1691_v26 }
0x12a8   :  { %1735 = vadd.xlane.f32.xlu1 %v1734_v9 }
0x12a9   :  { %v1731_v49 = vsel %vm568_vm14, %v1727_v5, 0.0  ;;  %v1722_v20 = vmul.f32 %v1719_v58, %v1715_v45  ;;  %v4506_v58 = vpack.c.bf16 %v2413_v55, %v2412_v61 }
0x12aa   :  { %1732 = vadd.xlane.f32.xlu0 %v1731_v49 }
0x12ab   :  { %v1729_v36 = vadd.f32 %v1726_v63, %v1722_v20  ;;  %4507 = vmatprep.subr.bf16.mxu1 %v4506_v58 }
0x12ac   :  { %2374 = vadd.xlane.f32.xlu1 %v2373_v2  ;;  %4509 = vmatpush3.bf16.msra.mxu1 %v4506_v58  ;;  %v1730_v2 = vld [vmem:[#allocation2 + $0x1f1] sm:$0x3] }
0x12ad   :  { %v1737_v56 = vsel %vm568_vm14, %v1729_v36, 0.0  ;;  %4511 = vmatprep.subr.bf16.mxu1 %v4510_v15 }
0x12ae   :  { %1738 = vadd.xlane.f32.xlu0 %v1737_v56 }
0x12b0   :  { %4513 = vmatpush3.bf16.msra.mxu1 %v4510_v15 }
0x12b2   :  { %2378 = vadd.xlane.f32.xlu0 %v2377_v32  ;;  %v5588_v32 = vrot.slane %v1730_v2, %v5409_v22 }
0x1335   :  { %v1736_v3 = vpop.xlane.xlu1 %1735 }
0x1336   :  { %v1741_v60 = vmul.f32 0.03125, %v1736_v3 }
0x1337   :  { %v1733_v7 = vpop.xlane.xlu0 %1732 }
0x1338   :  { %v5560_v44 = vsub.f32 %v1728_v10, %v1741_v60  ;;  %v1740_v11 = vmul.f32 0.03125, %v1733_v7 }
0x1339   :  { %v2375_v14 = vpop.xlane.xlu1 %2374 }
0x133a   :  { %v5562_v18 = vsub.f32 %v1727_v5, %v1740_v11  ;;  %v2380_v19 = vmul.f32 0.03125, %v2375_v14  ;;  %v1747_v13 = vmul.f32 %v5560_v44, %v5560_v44  ;;  %v5594_v14 = vrot.slane %v1730_v2, %v5411_v39 }
0x133b   :  { %v1739_v4 = vpop.xlane.xlu0 %1738 }
0x133c   :  { %v5566_v40 = vsub.f32 %v2370_v57, %v2380_v19  ;;  %v1742_v21 = vmul.f32 0.03125, %v1739_v4  ;;  %v1752_v53 = vsel %vm568_vm14, %v1747_v13, 0.0  ;;  %v1746_v24 = vmul.f32 %v5562_v18, %v5562_v18 }
0x133d   :  { %1753 = vadd.xlane.f32.xlu0 %v1752_v53 }
0x133e   :  { %v5571_v25 = vsub.f32 %v1729_v36, %v1742_v21  ;;  %v1749_v26 = vsel %vm568_vm14, %v1746_v24, 0.0  ;;  %v2384_v27 = vmul.f32 %v5566_v40, %v5566_v40  ;;  %v2372_v36 = vld [vmem:[#allocation2 + $0x126] sm:$0x3] }
0x133f   :  { %1750 = vadd.xlane.f32.xlu1 %v1749_v26  ;;  %v2379_v30 = vpop.xlane.xlu0 %2378  ;;  %v2403_v3 = vrot.slane %v2372_v36, %v5409_v22  ;;  %v2409_v13 = vrot.slane %v2372_v36, %v5411_v39 }
0x1340   :  { %v2381_v31 = vmul.f32 0.03125, %v2379_v30  ;;  %v2386_v34 = vsel %vm568_vm14, %v2384_v27, 0.0  ;;  %v1748_v35 = vmul.f32 %v5571_v25, %v5571_v25 }
0x1341   :  { %2387 = vadd.xlane.f32.xlu0 %v2386_v34 }
0x1342   :  { %v5579_v38 = vsub.f32 %v2371_v23, %v2381_v31  ;;  %v1755_v41 = vsel %vm568_vm14, %v1748_v35, 0.0  ;;  %v3662_v35 = vld [vmem:[#allocation2 + $0x169] ss:$0 sm:$0xff] }
0x1343   :  { %1756 = vadd.xlane.f32.xlu1 %v1755_v41 }
0x1344   :  { %v2385_v33 = vmul.f32 %v5579_v38, %v5579_v38 }
0x1346   :  { %v2389_v46 = vsel %vm2376_vm9, %v2385_v33, 0.0 }
0x1347   :  { %2390 = vadd.xlane.f32.xlu1 %v2389_v46 }
0x13ca   :  { %v1754_v63 = vpop.xlane.xlu0 %1753 }
0x13cb   :  { %v1759_v37 = vmul.f32 0.03125, %v1754_v63 }
0x13cc   :  { %v1751_v6 = vpop.xlane.xlu1 %1750 }
0x13cd   :  { %v1762_v28 = vadd.f32 1e-05, %v1759_v37  ;;  %v1758_v29 = vmul.f32 0.03125, %v1751_v6 }
0x13ce   :  { %v2388_v0 = vpop.xlane.xlu0 %2387 }
0x13cf   :  { %4882 = vrsqrt.f32 %v1762_v28  ;;  %v1761_v10 = vadd.f32 1e-05, %v1758_v29  ;;  %v2392_v54 = vmul.f32 0.03125, %v2388_v0 }
0x13d0   :  { %v1757_v47 = vpop.xlane.xlu1 %1756 }
0x13d1   :  { %4884 = vrsqrt.f32 %v1761_v10  ;;  %v2394_v57 = vadd.f32 1e-05, %v2392_v54  ;;  %v1760_v9 = vmul.f32 0.03125, %v1757_v47 }
0x13d3   :  { %4886 = vrsqrt.f32 %v2394_v57  ;;  %v1763_v5 = vadd.f32 1e-05, %v1760_v9 }
0x13d4   :  { %v2391_v45 = vpop.xlane.xlu1 %2390 }
0x13d5   :  { %4888 = vrsqrt.f32 %v1763_v5  ;;  %v2393_v8 = vmul.f32 0.03125, %v2391_v45 }
0x13d7   :  { %v2395_v49 = vadd.f32 1e-05, %v2393_v8 }
0x13d9   :  { %v4883_v20 = vpop.eup %4882  ;;  %4890 = vrsqrt.f32 %v2395_v49 }
0x13da   :  { %v1768_v60 = vmul.f32 %v4883_v20, %v5560_v44 }
0x13db   :  { %v4885_v23 = vpop.eup %4884 }
0x13dc   :  { %v1767_v56 = vmul.f32 %v4885_v23, %v5562_v18  ;;  %v1775_v53 = vmul.f32 %v5588_v32, %v1768_v60 }
0x13dd   :  { %v4887_v7 = vpop.eup %4886 }
0x13de   :  { %v1774_v11 = vmul.f32 %v5588_v32, %v1767_v56  ;;  %v2398_v19 = vmul.f32 %v4887_v7, %v5566_v40  ;;  %v1782_v27 = vadd.f32 %v5594_v14, %v1775_v53 }
0x13df   :  { %v4889_v4 = vpop.eup %4888 }
0x13e0   :  { %v1781_v18 = vadd.f32 %v5594_v14, %v1774_v11  ;;  %v2404_v21 = vmul.f32 %v2403_v3, %v2398_v19  ;;  %v1769_v24 = vmul.f32 %v4889_v4, %v5571_v25 }
0x13e2   :  { %4224 = vmatmul.mubr.msk.f32.vlgmr.msra.gmra.mrb[50].mxu0 %vm568_vm14, %v1781_v18  ;;  %v5602_v44 = vadd.f32 %v2409_v13, %v2404_v21  ;;  %v1776_v30 = vmul.f32 %v5588_v32, %v1769_v24 }
0x13e3   :  { %v4891_v26 = vpop.eup %4890  ;;  %4226 = vmatprep.mubr.msk.f32.mxu0 %vm4960_vm0, %v4961_v1 }
0x13e4   :  { %v2399_v40 = vmul.f32 %v4891_v26, %v5579_v38  ;;  %4212 = vmatprep.mubr.msk.f32.mxu1 %vm568_vm14, %v5602_v44  ;;  %v1783_v34 = vadd.f32 %v5594_v14, %v1776_v30 }
0x13e6   :  { %v2405_v31 = vmul.f32 %v2403_v3, %v2399_v40  ;;  %4227 = vmatmul.mubr.msk.f32.gmra.mrb[52].mxu0 %vm568_vm14, %v1782_v27  ;;  %v2601_v27 = vld [vmem:[#allocation2 + $0x2d0] sm:$0xff] }
0x13e7   :  { %4229 = vmatprep.mubr.msk.f32.mxu0 %vm4960_vm0, %v4961_v1  ;;  %vm3561_vm0 = vcmask 27648  }
0x13e8   :  { %v5614_v25 = vadd.f32 %v2409_v13, %v2405_v31  ;;  %v2600_v31 = vld [vmem:[#allocation2 + $0x2c8] sm:$0xff] }
0x13ea   :  { %4213 = vmatmul.mubr.msk.f32.vlgmr.msra.gmra.mrb[36].mxu1 %vm568_vm14, %v5614_v25  ;;  %4230 = vmatmul.mubr.msk.f32.gmra.mrb[54].mxu0 %vm568_vm14, %v1783_v34 }
0x14b5   :  { %v2586_v38 = vpop.f32.mrb[50].mxu0 }
0x14b6   :  { %v2587_v41 = vadd.f32 %v3662_v35, %v2586_v38  ;;  %v4225_v33 = vpop.f32.mrb[51].mxu0 }
0x14b7   :  { %v2603_v33 = vld [vmem:[#allocation2 + $0x2e0] sm:$0xff] }
0x14b8   :  { %2636 = vrot.lane.b32.xlu0 %v2587_v41, %s4964_s1 }
0x14b9   :  { %v2591_v46 = vpop.f32.mrb[52].mxu0 }
0x14ba   :  { %v2592_v50 = vadd.f32 %v3662_v35, %v2591_v46  ;;  %v4228_v17 = vpop.f32.mrb[53].mxu0 }
0x14bb   :  { %v2602_v17 = vld [vmem:[#allocation2 + $0x2d8] sm:$0xff] }
0x14bc   :  { %v4520_v1 = vpack.c.bf16 %v2592_v50, %v2587_v41  ;;  %v4742_v51 = vpack.i.bf16 %v2592_v50, %v2587_v41 }
0x14bd   :  { %v4214_v52 = vpop.f32.mrb[36].mxu1  ;;  %v2596_v48 = vpop.f32.mrb[54].mxu0 }
0x14be   :  { %v5621_v61 = vadd.f32 %v3662_v35, %v2596_v48  ;;  %v2493_v55 = vpop.f32.mrb[37].mxu1  ;;  %v4231_v58 = vpop.f32.mrb[55].mxu0  ;;  %4522 = vmatprep.subr.msk.bf16.mxu1 %vm5179_vm4, %v4520_v1  ;;  %v2499_v59 = vadd.f32 %v4214_v52, %v3659_v16 }
0x14bf   :  { %v2494_v62 = vadd.f32 %v3659_v16, %v2493_v55  ;;  %4525 = vmatpush3.bf16.xpose.msk.msra.mxu1 %vm5179_vm4, %v4520_v1  ;;  %v2605_v58 = vld [vmem:[#allocation2 + $0x2f0] sm:$0xff] }
0x14c0   :  { %2646 = vrot.lane.b32.xlu0 %v5621_v61, %s4966_s9  ;;  %v4737_v15 = vpack.i.bf16 %v5621_v61, %v2592_v50  ;;  %v2614_v63 = vrot.slane %v2499_v59, 4 }
0x14c1   :  { %4256 = vmatprep.mubr.msk.f32.mxu1 %vm720_vm15, %v2494_v62  ;;  %v2613_v37 = vrot.slane %v2494_v62, 4 }
0x14c2   :  { %4738 = vrot.lane.b32.xlu1 %v4737_v15, %s4964_s1 }
0x14c3   :  { %v2615_v6 = vsel %vm387_vm3, %v2613_v37, %v2614_v63 }
0x14c4   :  { %4748 = vrot.lane.b32.xlu0 %v4737_v15, %s4965_s8  ;;  %v2604_v15 = vld [vmem:[#allocation2 + $0x2e8] sm:$0xff] }
0x14c6   :  { %4743 = vrot.lane.b32.xlu1 %v4742_v51, %s4966_s9 }
0x14c8   :  { %2618 = vrot.lane.b32.xlu0 %v2615_v6, %s4964_s1 }
0x14ca   :  { %2648 = vrot.lane.b32.xlu1 %v2587_v41, %s4965_s8 }
0x14cc   :  { %2623 = vrot.lane.b32.xlu0 %v2499_v59, %s4966_s9 }
0x14ce   :  { %2616 = vrot.lane.b32.xlu1 %v2613_v37, %s4964_s1 }
0x14d0   :  { %2628 = vrot.lane.b32.xlu0 %v2615_v6, %s4965_s8 }
0x14d2   :  { %2621 = vrot.lane.b32.xlu1 %v2494_v62, %s4966_s9 }
0x14d4   :  { %4753 = vrot.lane.b32.xlu0 %v4742_v51, %s4967_s10 }
0x14d6   :  { %2626 = vrot.lane.b32.xlu1 %v2613_v37, %s4965_s8 }
0x152a   :  { %v5643_v28 = vpop.permute.xlu0 %2636 }
0x152b   :  { %v4526_v29 = vpack.c.bf16 %v5643_v28, %v5621_v61 }
0x152d   :  { %4528 = vmatprep.subr.msk.bf16.mxu1 %vm5179_vm4, %v4526_v29 }
0x152e   :  { %4531 = vmatpush3.bf16.xpose.msk.msra.mxu1 %vm5179_vm4, %v4526_v29 }
0x1532   :  { %v5651_v0 = vpop.permute.xlu0 %2646 }
0x1534   :  { %v5653_v10 = vpop.permute.xlu1 %4738 }
0x1535   :  { %v4741_v54 = vunpack.i.h.bf16 %v5653_v10  ;;  %v4740_v47 = vunpack.i.l.bf16 %v5653_v10 }
0x1536   :  { %v5657_v57 = vpop.permute.xlu0 %4748 }
0x1537   :  { %v4532_v9 = vpack.c.bf16 %v4741_v54, %v4740_v47  ;;  %v4751_v5 = vunpack.i.h.bf16 %v5657_v57  ;;  %v4750_v45 = vunpack.i.l.bf16 %v5657_v57 }
0x1538   :  { %v5661_v8 = vpop.permute.xlu1 %4743 }
0x1539   :  { %v4746_v49 = vunpack.i.h.bf16 %v5661_v8  ;;  %v4745_v20 = vunpack.i.l.bf16 %v5661_v8  ;;  %4534 = vmatprep.subr.msk.bf16.mxu1 %vm5179_vm4, %v4532_v9  ;;  %v4550_v4 = vpack.c.bf16 %v4751_v5, %v4750_v45  ;;  %v4757_v45 = vpack.i.bf16 %v5643_v28, %v5621_v61 }
0x153a   :  { %v2619_v2 = vpop.permute.xlu0 %2618  ;;  %4537 = vmatpush3.bf16.xpose.msk.msra.mxu1 %vm5179_vm4, %v4532_v9 }
0x153b   :  { %v4538_v36 = vpack.c.bf16 %v4746_v49, %v4745_v20 }
0x153c   :  { %v5669_v23 = vpop.permute.xlu1 %2648 }
0x153d   :  { %v4772_v56 = vpack.i.bf16 %v5669_v23, %v5651_v0  ;;  %4540 = vmatprep.subr.msk.bf16.mxu1 %vm5179_vm4, %v4538_v36  ;;  %v4544_v60 = vpack.c.bf16 %v5669_v23, %v5651_v0 }
0x153e   :  { %v2624_v3 = vpop.permute.xlu0 %2623 }
0x1540   :  { %v2617_v21 = vpop.permute.xlu1 %2616 }
0x1541   :  { %v2631_v24 = vsel %vm387_vm3, %v2499_v59, %v2617_v21 }
0x1542   :  { %v2629_v7 = vpop.permute.xlu0 %2628  ;;  %4543 = vmatpush3.bf16.xpose.msk.msra.mxu1 %vm5179_vm4, %v4538_v36 }
0x1543   :  { %4546 = vmatprep.subr.msk.bf16.mxu1 %vm5179_vm4, %v4544_v60 }
0x1544   :  { %v2622_v53 = vpop.permute.xlu1 %2621 }
0x1546   :  { %v4754_v11 = vpop.permute.xlu0 %4753 }
0x1547   :  { %v4756_v19 = vunpack.i.h.bf16 %v4754_v11  ;;  %v4755_v13 = vunpack.i.l.bf16 %v4754_v11 }
0x1548   :  { %v2627_v26 = vpop.permute.xlu1 %2626 }
0x1549   :  { %v4556_v18 = vpack.c.bf16 %v4756_v19, %v4755_v13  ;;  %v2632_v40 = vsel %vm387_vm3, %v2624_v3, %v2627_v26 }
0x154a   :  { %4549 = vmatpush3.bf16.xpose.msk.msra.mxu1 %vm5179_vm4, %v4544_v60 }
0x154b   :  { %4552 = vmatprep.subr.msk.bf16.mxu1 %vm5179_vm4, %v4550_v4  ;;  %4557 = vmatprep.subr.bf16.mxu0 %v4556_v18 }
0x154c   :  { %4559 = vmatpush3.bf16.msra.mxu0 %v4556_v18 }
0x1552   :  { %4555 = vmatpush3.bf16.xpose.msk.msra.mxu1 %vm5179_vm4, %v4550_v4 }
0x1559   :  { %4257 = vmatmul.mubr.msk.f32.vlgmr.msra.gmra.mrb[38].mxu1 %vm720_vm15, %v2631_v24 }
0x155a   :  { %4259 = vmatprep.mubr.msk.f32.mxu1 %vm720_vm15, %v2619_v2 }
0x155d   :  { %4260 = vmatmul.mubr.msk.f32.gmra.mrb[40].mxu1 %vm720_vm15, %v2622_v53 }
0x155e   :  { %4262 = vmatprep.mubr.msk.f32.mxu1 %vm720_vm15, %v2632_v40 }
0x1561   :  { %4263 = vmatmul.mubr.msk.f32.gmra.mrb[42].mxu1 %vm720_vm15, %v2629_v7 }
0x162c   :  { %v4258_v30 = vpop.f32.mrb[38].mxu1 }
0x162d   :  { %v2788_v12 = vmul.f32 0.35355338, %v4258_v30  ;;  %v2758_v34 = vpop.f32.mrb[39].mxu1 }
0x162e   :  { %v2787_v35 = vmul.f32 0.35355338, %v2758_v34 }
0x162f   :  { %v2794_v38 = vadd.f32 %v2788_v12, %v2601_v27 }
0x1630   :  { %v2793_v41 = vadd.f32 %v2787_v35, %v2600_v31  ;;  %v4261_v46 = vpop.f32.mrb[40].mxu1 }
0x1631   :  { %v2790_v50 = vmul.f32 0.35355338, %v4261_v46  ;;  %v2768_v16 = vpop.f32.mrb[41].mxu1  ;;  %v2802_v1 = vsel %vm918_vm5, %v2794_v38, -inf }
0x1632   :  { %v2789_v51 = vmul.f32 0.35355338, %v2768_v16  ;;  %2803 = vmax.xlane.f32.xlu0 %v2802_v1  ;;  %v2799_v52 = vsel %vm918_vm5, %v2793_v41, -inf }
0x1633   :  { %v2796_v48 = vadd.f32 %v2790_v50, %v2603_v33  ;;  %2800 = vmax.xlane.f32.xlu1 %v2799_v52 }
0x1634   :  { %v2795_v55 = vadd.f32 %v2789_v51, %v2602_v17  ;;  %v4264_v59 = vpop.f32.mrb[42].mxu1 }
0x1635   :  { %v2792_v62 = vmul.f32 0.35355338, %v4264_v59  ;;  %v2778_v63 = vpop.f32.mrb[43].mxu1  ;;  %v2808_v37 = vsel %vm918_vm5, %v2796_v48, -inf }
0x1636   :  { %v2791_v6 = vmul.f32 0.35355338, %v2778_v63  ;;  %v2805_v29 = vsel %vm918_vm5, %v2795_v55, -inf }
0x1637   :  { %v2798_v54 = vadd.f32 %v2792_v62, %v2605_v58  ;;  %2809 = vmax.xlane.f32.xlu1 %v2808_v37  ;;  %2806 = vmax.xlane.f32.xlu0 %v2805_v29 }
0x1638   :  { %v2797_v47 = vadd.f32 %v2791_v6, %v2604_v15 }
0x1639   :  { %v2814_v9 = vsel %vm918_vm5, %v2798_v54, -inf }
0x163a   :  { %v2811_v5 = vsel %vm918_vm5, %v2797_v47, -inf }
0x163b   :  { %2815 = vmax.xlane.f32.xlu1 %v2814_v9  ;;  %2812 = vmax.xlane.f32.xlu0 %v2811_v5 }
0x164c   :  { %4758 = vrot.lane.b32.xlu1 %v4757_v45, %s4967_s10 }
0x1651   :  { %4763 = vrot.lane.b32.xlu0 %v5653_v10, %s4967_s10 }
0x16bf   :  { %v2804_v49 = vpop.xlane.xlu0 %2803 }
0x16c0   :  { %v2818_v20 = vsub.f32 %v2794_v38, %v2804_v49  ;;  %v2801_v2 = vpop.xlane.xlu1 %2800 }
0x16c1   :  { %v2817_v36 = vsub.f32 %v2793_v41, %v2801_v2 }
0x16c2   :  { %v2825_v3 = vmul.f32 1.442695, %v2818_v20 }
0x16c3   :  { %v2823_v60 = vmul.f32 1.442695, %v2817_v36 }
0x16c4   :  { %4892 = vpow2.f32 %v2825_v3  ;;  %v2810_v7 = vpop.xlane.xlu1 %2809  ;;  %v2807_v11 = vpop.xlane.xlu0 %2806 }
0x16c5   :  { %4894 = vpow2.f32 %v2823_v60  ;;  %v2820_v19 = vsub.f32 %v2796_v48, %v2810_v7  ;;  %v2819_v13 = vsub.f32 %v2795_v55, %v2807_v11 }
0x16c7   :  { %v2829_v4 = vmul.f32 1.442695, %v2820_v19  ;;  %v2827_v18 = vmul.f32 1.442695, %v2819_v13 }
0x16c8   :  { %v2816_v61 = vpop.xlane.xlu1 %2815  ;;  %v2813_v28 = vpop.xlane.xlu0 %2812 }
0x16c9   :  { %4896 = vpow2.f32 %v2829_v4  ;;  %v2822_v21 = vsub.f32 %v2798_v54, %v2816_v61  ;;  %v2821_v51 = vsub.f32 %v2797_v47, %v2813_v28  ;;  %v2606_v61 = vld [vmem:[#allocation2 + $0x16a] sm:$0xff]  ;;  %v2607_v28 = vld [vmem:[#allocation2 + $0x172] sm:$0xff] }
0x16ca   :  { %4898 = vpow2.f32 %v2827_v18 }
0x16cb   :  { %v2833_v10 = vmul.f32 1.442695, %v2822_v21  ;;  %v2831_v52 = vmul.f32 1.442695, %v2821_v51  ;;  %v4580_v21 = vpack.c.bf16 %v2607_v28, %v2606_v61 }
0x16cc   :  { %v4759_v53 = vpop.permute.xlu1 %4758  ;;  %v4764_v24 = vpop.permute.xlu0 %4763 }
0x16cd   :  { %v4761_v26 = vunpack.i.h.bf16 %v4759_v53  ;;  %v4760_v40 = vunpack.i.l.bf16 %v4759_v53  ;;  %v4766_v27 = vunpack.i.h.bf16 %v4764_v24  ;;  %v4765_v12 = vunpack.i.l.bf16 %v4764_v24  ;;  %v2609_v53 = vld [vmem:[#allocation2 + $0x182] sm:$0xff] }
0x16ce   :  { %v5705_v30 = vpop.eup %4892  ;;  %4900 = vpow2.f32 %v2833_v10  ;;  %v2608_v10 = vld [vmem:[#allocation2 + $0x17a] sm:$0xff] }
0x16cf   :  { %v4895_v31 = vpop.eup %4894  ;;  %v4560_v34 = vpack.c.bf16 %v4761_v26, %v4760_v40  ;;  %v2838_v35 = vsel %vm918_vm5, %v5705_v30, 0.0  ;;  %v4564_v41 = vpack.c.bf16 %v4766_v27, %v4765_v12  ;;  %4902 = vpow2.f32 %v2831_v52 }
0x16d0   :  { %2839 = vadd.xlane.f32.xlu1 %v2838_v35  ;;  %v2835_v38 = vsel %vm918_vm5, %v4895_v31, 0.0  ;;  %v4584_v24 = vpack.c.bf16 %v2609_v53, %v2608_v10  ;;  %v3136_v10 = vld [vmem:[#allocation2 + $0x18b] sm:$0x3] }
0x16d1   :  { %4561 = vmatprep.subr.bf16.mxu0 %v4560_v34  ;;  %2836 = vadd.xlane.f32.xlu0 %v2835_v38  ;;  %v3166_v53 = vrot.slane %v3136_v10, %v5409_v22 }
0x16d2   :  { %4563 = vmatpush3.bf16.msra.mxu0 %v4560_v34 }
0x16d3   :  { %v4897_v33 = vpop.eup %4896  ;;  %4565 = vmatprep.subr.bf16.mxu0 %v4564_v41 }
0x16d4   :  { %v2844_v46 = vsel %vm918_vm5, %v4897_v33, 0.0  ;;  %v4899_v50 = vpop.eup %4898 }
0x16d5   :  { %2845 = vadd.xlane.f32.xlu1 %v2844_v46  ;;  %v2841_v17 = vsel %vm918_vm5, %v4899_v50, 0.0 }
0x16d6   :  { %4567 = vmatpush3.bf16.msra.mxu0 %v4564_v41 }
0x16d8   :  { %v4901_v16 = vpop.eup %4900 }
0x16d9   :  { %2842 = vadd.xlane.f32.xlu1 %v2841_v17  ;;  %v2850_v1 = vsel %vm918_vm5, %v4901_v16, 0.0  ;;  %v4903_v48 = vpop.eup %4902 }
0x16da   :  { %v2847_v55 = vsel %vm918_vm5, %v4903_v48, 0.0 }
0x16dd   :  { %2851 = vadd.xlane.f32.xlu1 %v2850_v1 }
0x16e7   :  { %4773 = vrot.lane.b32.xlu0 %v4772_v56, %s4967_s10 }
0x16ee   :  { %4768 = vrot.lane.b32.xlu1 %v5661_v8, %s4967_s10 }
0x1706   :  { %2848 = vadd.xlane.f32.xlu0 %v2847_v55 }
0x171c   :  { %4778 = vrot.lane.b32.xlu0 %v5657_v57, %s4967_s10 }
0x175d   :  { %v2840_v58 = vpop.xlane.xlu1 %2839 }
0x175e   :  { %v2837_v59 = vpop.xlane.xlu0 %2836 }
0x175f   :  { %4904 = vrcp.f32 %v2837_v59 }
0x1760   :  { %4906 = vrcp.f32 %v2840_v58 }
0x1762   :  { %v2846_v62 = vpop.xlane.xlu1 %2845  ;;  %v4774_v63 = vpop.permute.xlu0 %4773 }
0x1763   :  { %v4776_v37 = vunpack.i.h.bf16 %v4774_v63  ;;  %v4775_v6 = vunpack.i.l.bf16 %v4774_v63 }
0x1765   :  { %v4572_v9 = vpack.c.bf16 %v4776_v37, %v4775_v6 }
0x1766   :  { %v2843_v15 = vpop.xlane.xlu1 %2842 }
0x1767   :  { %4908 = vrcp.f32 %v2843_v15 }
0x1768   :  { %4910 = vrcp.f32 %v2846_v62 }
0x1769   :  { %v4905_v0 = vpop.eup %4904 }
0x176a   :  { %v2852_v23 = vpop.xlane.xlu1 %2851  ;;  %v2859_v56 = vmul.f32 %v4905_v0, %v4895_v31  ;;  %v4907_v2 = vpop.eup %4906  ;;  %v3690_v0 = vld [vmem:[#allocation2 + $0x18a] ss:$0 sm:$0xff] }
0x176b   :  { %v2860_v3 = vmul.f32 %v4907_v2, %v5705_v30 }
0x176c   :  { %4289 = vmatprep.mubr.msk.f32.mxu0 %vm918_vm5, %v2859_v56 }
0x176e   :  { %v4769_v8 = vpop.permute.xlu1 %4768 }
0x176f   :  { %v4771_v29 = vunpack.i.h.bf16 %v4769_v8  ;;  %v4770_v54 = vunpack.i.l.bf16 %v4769_v8 }
0x1771   :  { %v4568_v47 = vpack.c.bf16 %v4771_v29, %v4770_v54  ;;  %v4909_v36 = vpop.eup %4908 }
0x1772   :  { %v4911_v60 = vpop.eup %4910  ;;  %v2861_v7 = vmul.f32 %v4909_v36, %v4899_v50 }
0x1773   :  { %4569 = vmatprep.subr.bf16.mxu0 %v4568_v47  ;;  %v2862_v19 = vmul.f32 %v4911_v60, %v4897_v33 }
0x1774   :  { %4571 = vmatpush3.bf16.msra.mxu0 %v4568_v47 }
0x1775   :  { %4573 = vmatprep.subr.bf16.mxu0 %v4572_v9 }
0x1778   :  { %4575 = vmatpush3.bf16.msra.mxu0 %v4572_v9 }
0x1793   :  { %v2849_v57 = vpop.xlane.xlu0 %2848 }
0x1794   :  { %4912 = vrcp.f32 %v2849_v57 }
0x1795   :  { %4914 = vrcp.f32 %v2852_v23 }
0x1797   :  { %v4779_v5 = vpop.permute.xlu0 %4778 }
0x1798   :  { %v4781_v45 = vunpack.i.h.bf16 %v4779_v5  ;;  %v4780_v49 = vunpack.i.l.bf16 %v4779_v5 }
0x179a   :  { %v4576_v20 = vpack.c.bf16 %v4781_v45, %v4780_v49 }
0x179c   :  { %4577 = vmatprep.subr.bf16.mxu0 %v4576_v20 }
0x179d   :  { %4579 = vmatpush3.bf16.msra.mxu0 %v4576_v20 }
0x179e   :  { %v4913_v11 = vpop.eup %4912  ;;  %4581 = vmatprep.subr.bf16.mxu0 %v4580_v21 }
0x179f   :  { %v4915_v13 = vpop.eup %4914  ;;  %v2863_v4 = vmul.f32 %v4913_v11, %v4903_v48  ;;  %v3178_v11 = vld [vmem:[#allocation2 + $0x1a5] sm:$0xff] }
0x17a0   :  { %4290 = vmatmul.mubr.msk.f32.vlgmr.msra.gmra.mrb[56].mxu0 %vm918_vm5, %v2860_v3  ;;  %v2864_v18 = vmul.f32 %v4915_v13, %v4901_v16  ;;  %v3176_v3 = vld [vmem:[#allocation2 + $0x195] sm:$0xff] }
0x17a1   :  { %4292 = vmatprep.mubr.msk.f32.mxu0 %vm918_vm5, %v2861_v7  ;;  %4583 = vmatpush3.bf16.msra.mxu0 %v4580_v21  ;;  %v3177_v7 = vld [vmem:[#allocation2 + $0x19d] sm:$0xff] }
0x17a2   :  { %4585 = vmatprep.subr.bf16.mxu0 %v4584_v24 }
0x17a4   :  { %4293 = vmatmul.mubr.msk.f32.gmra.mrb[58].mxu0 %vm918_vm5, %v2862_v19  ;;  %v4592_v19 = vpack.c.bf16 %v3178_v11, %v3177_v7 }
0x17a5   :  { %4295 = vmatprep.mubr.msk.f32.mxu0 %vm918_vm5, %v2863_v4  ;;  %4587 = vmatpush3.bf16.msra.mxu0 %v4584_v24 }
0x17a8   :  { %4296 = vmatmul.mubr.msk.f32.gmra.mrb[60].mxu0 %vm918_vm5, %v2864_v18 }
0x1873   :  { %v4291_v26 = vpop.f32.mrb[56].mxu0 }
0x1874   :  { %v2985_v40 = vpop.f32.mrb[57].mxu0  ;;  %v3016_v12 = vrot.slane %v4291_v26, 4 }
0x1877   :  { %v4294_v27 = vpop.f32.mrb[58].mxu0 }
0x1878   :  { %3027 = vrot.lane.b32.xlu1 %v4294_v27, %s4969_s12  ;;  %v2995_v30 = vpop.f32.mrb[59].mxu0 }
0x1879   :  { %v3017_v31 = vrot.slane %v2995_v30, 4  ;;  %v3172_v30 = vrot.slane %v3136_v10, %v5411_v39 }
0x187b   :  { %3021 = vrot.lane.b32.xlu0 %v3017_v31, %s4958_s23  ;;  %v4297_v34 = vpop.f32.mrb[60].mxu0  ;;  %v3018_v35 = vsel %vm387_vm3, %v3016_v12, %v3017_v31 }
0x187c   :  { %v3035_v38 = vrot.slane %v4297_v34, 4  ;;  %3019 = vrot.lane.b32.xlu1 %v3018_v35, %s4958_s23  ;;  %v3005_v41 = vpop.f32.mrb[61].mxu0 }
0x187d   :  { %v3034_v33 = vrot.slane %v3005_v41, 4 }
0x187f   :  { %3029 = vrot.lane.b32.xlu0 %v3005_v41, %s4969_s12  ;;  %v3036_v46 = vsel %vm387_vm3, %v3034_v33, %v3035_v38  ;;  %v3284_v41 = vld [vmem:[#allocation2 + $0x1b6] sm:$0xff] }
0x1880   :  { %3037 = vrot.lane.b32.xlu1 %v3036_v46, %s4970_s13  ;;  %v3285_v46 = vld [vmem:[#allocation2 + $0x1be] sm:$0xff] }
0x1883   :  { %3039 = vrot.lane.b32.xlu0 %v3035_v38, %s4970_s13  ;;  %v3283_v38 = vld [vmem:[#allocation2 + $0x1ae] sm:$0xff] }
0x1884   :  { %v4596_v33 = vpack.c.bf16 %v3284_v41, %v3283_v38 }
0x1886   :  { %4597 = vmatprep.subr.bf16.mxu1 %v4596_v33 }
0x1887   :  { %4599 = vmatpush3.bf16.msra.mxu1 %v4596_v33  ;;  %v3379_v33 = vld [vmem:[#allocation2 + $0x1ef] sm:$0x3] }
0x18ea   :  { %v3028_v50 = vpop.permute.xlu1 %3027 }
0x18ed   :  { %v3022_v17 = vpop.permute.xlu0 %3021 }
0x18ee   :  { %v3020_v16 = vpop.permute.xlu1 %3019  ;;  %v3044_v58 = vsel %vm720_vm15, %v4291_v26, %v3022_v17 }
0x18ef   :  { %v3043_v1 = vsel %vm720_vm15, %v2985_v40, %v3020_v16  ;;  %v3287_v16 = vld [vmem:[#allocation2 + $0x1ce] sm:$0xff] }
0x18f0   :  { %v3045_v52 = vsel %vm1287_vm6, %v3043_v1, %v3028_v50  ;;  %v3286_v50 = vld [vmem:[#allocation2 + $0x1c6] sm:$0xff]  ;;  %v3288_v1 = vld [vmem:[#allocation2 + $0x1d6] sm:$0xff] }
0x18f1   :  { %v3030_v51 = vpop.permute.xlu0 %3029  ;;  %v4600_v17 = vpack.c.bf16 %v3286_v50, %v3285_v46  ;;  %v3409_v46 = vrot.slane %v3379_v33, %v5409_v22 }
0x18f2   :  { %v3038_v48 = vpop.permute.xlu1 %3037  ;;  %v3046_v59 = vsel %vm1287_vm6, %v3044_v58, %v3030_v51  ;;  %v4604_v51 = vpack.c.bf16 %v3288_v1, %v3287_v16  ;;  %v3693_v58 = vld [vmem:[#allocation2 + $0x1ad] ss:$0 sm:$0xff]  ;;  %v3415_v1 = vrot.slane %v3379_v33, %v5411_v39 }
0x18f3   :  { %v3047_v55 = vsel %vm48_vm1, %v3045_v52, %v3038_v48  ;;  %4601 = vmatprep.subr.bf16.mxu1 %v4600_v17  ;;  %v3289_v52 = vld [vmem:[#allocation2 + $0x1de] sm:$0xff]  ;;  %v3290_v48 = vld [vmem:[#allocation2 + $0x1e6] sm:$0xff] }
0x18f4   :  { %4306 = vmatprep.mubr.msk.f32.mxu0 %vm568_vm14, %v3047_v55  ;;  %4603 = vmatpush3.bf16.msra.mxu1 %v4600_v17  ;;  %v4608_v55 = vpack.c.bf16 %v3290_v48, %v3289_v52 }
0x18f5   :  { %v3040_v62 = vpop.permute.xlu0 %3039  ;;  %4605 = vmatprep.subr.bf16.mxu1 %v4604_v51 }
0x18f6   :  { %v3048_v15 = vsel %vm48_vm1, %v3046_v59, %v3040_v62 }
0x18f7   :  { %4307 = vmatmul.mubr.msk.f32.vlgmr.msra.gmra.mrb[62].mxu0 %vm568_vm14, %v3048_v15 }
0x18f8   :  { %4607 = vmatpush3.bf16.msra.mxu1 %v4604_v51 }
0x18f9   :  { %4609 = vmatprep.subr.bf16.mxu1 %v4608_v55 }
0x18fc   :  { %4611 = vmatpush3.bf16.msra.mxu1 %v4608_v55 }
0x19ca   :  { %v4308_v23 = vpop.f32.mrb[62].mxu0 }
0x19cb   :  { %v3131_v56 = vadd.f32 %v4308_v23, %v3690_v0  ;;  %v3125_v63 = vpop.f32.mrb[63].mxu0 }
0x19cc   :  { %v3126_v8 = vadd.f32 %v3690_v0, %v3125_v63 }
0x19cd   :  { %v3135_v37 = vadd.f32 %v3131_v56, %v5614_v25 }
0x19ce   :  { %v3134_v6 = vadd.f32 %v3126_v8, %v5602_v44  ;;  %v3175_v44 = vld [vmem:[#allocation2 + $0x18d] sm:$0xff] }
0x19cf   :  { %v3140_v29 = vsel %vm2376_vm9, %v3135_v37, 0.0  ;;  %v4588_v60 = vpack.c.bf16 %v3176_v3, %v3175_v44  ;;  %v3696_v44 = vld [vmem:[#allocation2 + $0x1ee] ss:$0 sm:$0xff] }
0x19d0   :  { %3141 = vadd.xlane.f32.xlu0 %v3140_v29  ;;  %v3137_v54 = vsel %vm568_vm14, %v3134_v6, 0.0 }
0x19d1   :  { %3138 = vadd.xlane.f32.xlu1 %v3137_v54  ;;  %4589 = vmatprep.subr.bf16.mxu0 %v4588_v60 }
0x19d2   :  { %4591 = vmatpush3.bf16.msra.mxu0 %v4588_v60 }
0x19d3   :  { %4593 = vmatprep.subr.bf16.mxu0 %v4592_v19 }
0x19d6   :  { %4595 = vmatpush3.bf16.msra.mxu0 %v4592_v19 }
0x1a5d   :  { %v3142_v47 = vpop.xlane.xlu0 %3141 }
0x1a5e   :  { %v3144_v9 = vmul.f32 0.03125, %v3142_v47  ;;  %v3139_v57 = vpop.xlane.xlu1 %3138 }
0x1a5f   :  { %v3143_v5 = vmul.f32 0.03125, %v3139_v57 }
0x1a60   :  { %v3146_v45 = vsub.f32 %v3135_v37, %v3144_v9 }
0x1a61   :  { %v3145_v49 = vsub.f32 %v3134_v6, %v3143_v5 }
0x1a62   :  { %v3148_v20 = vmul.f32 %v3146_v45, %v3146_v45 }
0x1a63   :  { %v3147_v2 = vmul.f32 %v3145_v49, %v3145_v49 }
0x1a64   :  { %v3152_v36 = vsel %vm2376_vm9, %v3148_v20, 0.0 }
0x1a65   :  { %3153 = vadd.xlane.f32.xlu1 %v3152_v36  ;;  %v3149_v25 = vsel %vm568_vm14, %v3147_v2, 0.0 }
0x1a66   :  { %3150 = vadd.xlane.f32.xlu0 %v3149_v25 }
0x1af2   :  { %v3154_v13 = vpop.xlane.xlu1 %3153 }
0x1af3   :  { %v3156_v4 = vmul.f32 0.03125, %v3154_v13  ;;  %v3151_v18 = vpop.xlane.xlu0 %3150 }
0x1af4   :  { %v3155_v61 = vmul.f32 0.03125, %v3151_v18 }
0x1af5   :  { %v3158_v28 = vadd.f32 1e-05, %v3156_v4 }
0x1af6   :  { %v3157_v21 = vadd.f32 1e-05, %v3155_v61 }
0x1af7   :  { %4916 = vrsqrt.f32 %v3158_v28 }
0x1af8   :  { %4918 = vrsqrt.f32 %v3157_v21 }
0x1b01   :  { %v4917_v24 = vpop.eup %4916 }
0x1b02   :  { %v4919_v26 = vpop.eup %4918  ;;  %v3162_v40 = vmul.f32 %v4917_v24, %v3146_v45 }
0x1b03   :  { %v3161_v27 = vmul.f32 %v4919_v26, %v3145_v49 }
0x1b04   :  { %v3168_v12 = vmul.f32 %v3166_v53, %v3162_v40 }
0x1b05   :  { %v3167_v31 = vmul.f32 %v3166_v53, %v3161_v27 }
0x1b06   :  { %v3174_v35 = vadd.f32 %v3172_v30, %v3168_v12 }
0x1b07   :  { %v3173_v34 = vadd.f32 %v3172_v30, %v3167_v31 }
0x1b09   :  { %4317 = vmatprep.mubr.msk.f32.mxu0 %vm568_vm14, %v3173_v34 }
0x1b0a   :  { %4318 = vmatmul.mubr.msk.f32.vlgmr.msra.gmra.mrb[64].mxu0 %vm568_vm14, %v3174_v35 }
0x1bdd   :  { %v4319_v59 = vpop.f32.mrb[64].mxu0 }
0x1bde   :  { %v3262_v62 = vadd.f32 %v4319_v59, %v3693_v58  ;;  %v3256_v15 = vpop.f32.mrb[65].mxu0 }
0x1bdf   :  { %v3257_v0 = vadd.f32 %v3693_v58, %v3256_v15  ;;  %v4971_v15 = vmov 1  }
0x1be0   :  { %v3266_v23 = vmul.f32 %v3262_v62, %v3262_v62  ;;  %4783 = vset.pattern.permute.xlu1 %v4971_v15  ;;  %4782 = vset.pattern.permute.xlu0 %v4971_v15 }
0x1be1   :  { %v3265_v56 = vmul.f32 %v3257_v0, %v3257_v0 }
0x1be2   :  { %v3268_v63 = vmul.f32 %v3266_v23, %v3262_v62 }
0x1be3   :  { %v3267_v8 = vmul.f32 %v3265_v56, %v3257_v0 }
0x1be4   :  { %v3270_v37 = vmul.f32 0.044715, %v3268_v63 }
0x1be5   :  { %v3269_v6 = vmul.f32 0.044715, %v3267_v8 }
0x1be6   :  { %v3272_v29 = vadd.f32 %v3270_v37, %v3262_v62 }
0x1be7   :  { %v3271_v54 = vadd.f32 %v3269_v6, %v3257_v0 }
0x1be8   :  { %v3274_v47 = vmul.f32 0.7978846, %v3272_v29 }
0x1be9   :  { %v3273_v9 = vmul.f32 0.7978846, %v3271_v54  ;;  %v4972_v54 = vmov 0  }
0x1bea   :  { %4920 = vtanh.f32 %v3274_v47  ;;  %v3448_v47 = vld [vmem:[#allocation2 + $0x1f3] sm:$0xff] }
0x1beb   :  { %4922 = vtanh.f32 %v3273_v9  ;;  %v3449_v9 = vld [vmem:[#allocation2 + $0x1fb] sm:$0xff] }
0x1bf4   :  { %v4921_v57 = vpop.eup %4920 }
0x1bf5   :  { %v4923_v5 = vpop.eup %4922  ;;  %v3278_v45 = vadd.f32 1.0, %v4921_v57  ;;  %v4612_v57 = vpack.c.bf16 %v3449_v9, %v3448_v47 }
0x1bf6   :  { %v3277_v49 = vadd.f32 1.0, %v4923_v5  ;;  %v3450_v5 = vld [vmem:[#allocation2 + $0x203] sm:$0xff] }
0x1bf7   :  { %v3280_v20 = vmul.f32 0.5, %v3278_v45  ;;  %v3451_v45 = vld [vmem:[#allocation2 + $0x20b] sm:$0xff]  ;;  %4613 = vmatprep.subr.bf16.mxu0 %v4612_v57 }
0x1bf8   :  { %v3279_v2 = vmul.f32 0.5, %v3277_v49  ;;  %v4616_v49 = vpack.c.bf16 %v3451_v45, %v3450_v5  ;;  %4615 = vmatpush3.bf16.msra.mxu0 %v4612_v57 }
0x1bf9   :  { %v3282_v25 = vmul.f32 %v3280_v20, %v3262_v62 }
0x1bfa   :  { %v3281_v36 = vmul.f32 %v3279_v2, %v3257_v0  ;;  %4617 = vmatprep.subr.bf16.mxu0 %v4616_v49 }
0x1bfc   :  { %4336 = vmatprep.mubr.msk.f32.mxu1 %vm1583_vm7, %v3281_v36  ;;  %4619 = vmatpush3.bf16.msra.mxu0 %v4616_v49 }
0x1bfd   :  { %4337 = vmatmul.mubr.msk.f32.vlgmr.msra.gmra.mrb[44].mxu1 %vm1583_vm7, %v3282_v25 }
0x1cd0   :  { %v4338_v3 = vpop.f32.mrb[44].mxu1 }
0x1cd1   :  { %v3374_v60 = vadd.f32 %v4338_v3, %v3696_v44  ;;  %v3368_v7 = vpop.f32.mrb[45].mxu1 }
0x1cd2   :  { %v3369_v11 = vadd.f32 %v3696_v44, %v3368_v7 }
0x1cd3   :  { %v3378_v19 = vadd.f32 %v3374_v60, %v3174_v35 }
0x1cd4   :  { %v3377_v13 = vadd.f32 %v3369_v11, %v3173_v34 }
0x1cd5   :  { %v3383_v4 = vsel %vm2376_vm9, %v3378_v19, 0.0 }
0x1cd6   :  { %3384 = vadd.xlane.f32.xlu1 %v3383_v4  ;;  %v3380_v18 = vsel %vm568_vm14, %v3377_v13, 0.0 }
0x1cd7   :  { %3381 = vadd.xlane.f32.xlu0 %v3380_v18 }
0x1d63   :  { %v3385_v61 = vpop.xlane.xlu1 %3384 }
0x1d64   :  { %v3387_v28 = vmul.f32 0.03125, %v3385_v61  ;;  %v3382_v21 = vpop.xlane.xlu0 %3381 }
0x1d65   :  { %v3386_v10 = vmul.f32 0.03125, %v3382_v21 }
0x1d66   :  { %v3389_v53 = vsub.f32 %v3378_v19, %v3387_v28  ;;  %v3699_v28 = vld [vmem:[#allocation2 + $0x213] ss:$0 sm:$0xff] }
0x1d67   :  { %v3388_v24 = vsub.f32 %v3377_v13, %v3386_v10 }
0x1d68   :  { %v3391_v26 = vmul.f32 %v3389_v53, %v3389_v53 }
0x1d69   :  { %v3390_v40 = vmul.f32 %v3388_v24, %v3388_v24 }
0x1d6a   :  { %v3395_v27 = vsel %vm2376_vm9, %v3391_v26, 0.0 }
0x1d6b   :  { %3396 = vadd.xlane.f32.xlu1 %v3395_v27  ;;  %v3392_v30 = vsel %vm568_vm14, %v3390_v40, 0.0 }
0x1d6c   :  { %3393 = vadd.xlane.f32.xlu0 %v3392_v30 }
0x1df8   :  { %v3397_v12 = vpop.xlane.xlu1 %3396 }
0x1df9   :  { %v3399_v31 = vmul.f32 0.03125, %v3397_v12  ;;  %v3394_v34 = vpop.xlane.xlu0 %3393 }
0x1dfa   :  { %v3398_v35 = vmul.f32 0.03125, %v3394_v34 }
0x1dfb   :  { %v3401_v38 = vadd.f32 1e-05, %v3399_v31 }
0x1dfc   :  { %v3400_v41 = vadd.f32 1e-05, %v3398_v35 }
0x1dfd   :  { %4924 = vrsqrt.f32 %v3401_v38 }
0x1dfe   :  { %4926 = vrsqrt.f32 %v3400_v41 }
0x1e07   :  { %v4925_v50 = vpop.eup %4924 }
0x1e08   :  { %v4927_v17 = vpop.eup %4926  ;;  %v3405_v16 = vmul.f32 %v4925_v50, %v3389_v53 }
0x1e09   :  { %v3404_v51 = vmul.f32 %v4927_v17, %v3388_v24 }
0x1e0a   :  { %v3411_v52 = vmul.f32 %v3409_v46, %v3405_v16 }
0x1e0b   :  { %v3410_v48 = vmul.f32 %v3409_v46, %v3404_v51 }
0x1e0c   :  { %v3417_v55 = vadd.f32 %v3415_v1, %v3411_v52 }
0x1e0d   :  { %v3416_v58 = vadd.f32 %v3415_v1, %v3410_v48 }
0x1e0e   :  { %v3421_v59 = vsel %vm2376_vm9, %v3417_v55, 0.0 }
0x1e0f   :  { %3422 = vadd.xlane.f32.xlu1 %v3421_v59  ;;  %v3418_v62 = vsel %vm568_vm14, %v3416_v58, 0.0 }
0x1e10   :  { %3419 = vadd.xlane.f32.xlu0 %v3418_v62 }
0x1e9c   :  { %v3423_v22 = vpop.xlane.xlu1 %3422 }
0x1e9d   :  { %v3425_v0 = vmul.f32 0.03125, %v3423_v22  ;;  %v3420_v23 = vpop.xlane.xlu0 %3419 }
0x1e9e   :  { %v3424_v56 = vmul.f32 0.03125, %v3420_v23 }
0x1e9f   :  { %v3427_v63 = vsub.f32 %v3417_v55, %v3425_v0 }
0x1ea0   :  { %v3426_v39 = vsub.f32 %v3416_v58, %v3424_v56 }
0x1ea1   :  { %v3429_v8 = vmul.f32 %v3427_v63, %v3427_v63 }
0x1ea2   :  { %v3428_v37 = vmul.f32 %v3426_v39, %v3426_v39 }
0x1ea3   :  { %v3433_v6 = vsel %vm2376_vm9, %v3429_v8, 0.0 }
0x1ea4   :  { %3434 = vadd.xlane.f32.xlu1 %v3433_v6  ;;  %v3430_v29 = vsel %vm568_vm14, %v3428_v37, 0.0 }
0x1ea5   :  { %3431 = vadd.xlane.f32.xlu0 %v3430_v29 }
0x1eb5   :  { %3545 = vperm.xlu1 %4783, %v5123_v42  }
0x1eb9   :  { %4784 = vset.pattern.permute.xlu1 %v4972_v54 }
0x1eba   :  { %3551 = vperm.xlu1 %4784, %v5125_v43  }
0x1ebb   :  { %3540 = vperm.xlu0 %4782, %v5125_v43  }
0x1ebe   :  { %3555 = vperm.xlu1 %4784, %v5123_v42  }
0x1ebf   :  { %4785 = vset.pattern.permute.xlu0 %v4972_v54 }
0x1f31   :  { %v3435_v20 = vpop.xlane.xlu1 %3434 }
0x1f32   :  { %v3437_v2 = vmul.f32 0.03125, %v3435_v20  ;;  %v3432_v36 = vpop.xlane.xlu0 %3431 }
0x1f33   :  { %v3436_v25 = vmul.f32 0.03125, %v3432_v36 }
0x1f34   :  { %v3439_v44 = vadd.f32 1e-05, %v3437_v2 }
0x1f35   :  { %v3438_v3 = vadd.f32 1e-05, %v3436_v25  ;;  %v3546_v18 = vpop.permute.xlu1 %3545 }
0x1f36   :  { %4928 = vrsqrt.f32 %v3439_v44 }
0x1f37   :  { %4930 = vrsqrt.f32 %v3438_v3 }
0x1f39   :  { %v3552_v61 = vpop.permute.xlu1 %3551 }
0x1f3a   :  { %v3541_v26 = vpop.permute.xlu0 %3540 }
0x1f3d   :  { %v3556_v27 = vpop.permute.xlu1 %3555 }
0x1f40   :  { %v4929_v42 = vpop.eup %4928 }
0x1f41   :  { %v4931_v43 = vpop.eup %4930  ;;  %v3443_v60 = vmul.f32 %v4929_v42, %v3427_v63 }
0x1f42   :  { %v3442_v7 = vmul.f32 %v4931_v43, %v3426_v39 }
0x1f43   :  { %v3445_v11 = vmul.f32 %v3443_v60, %v5588_v32 }
0x1f44   :  { %v3444_v19 = vmul.f32 %v3442_v7, %v5588_v32 }
0x1f45   :  { %v3447_v4 = vadd.f32 %v3445_v11, %v5594_v14 }
0x1f46   :  { %v3446_v13 = vadd.f32 %v3444_v19, %v5594_v14 }
0x1f48   :  { %4347 = vmatprep.mubr.msk.f32.mxu0 %vm568_vm14, %v3446_v13 }
0x1f49   :  { %4348 = vmatmul.mubr.msk.f32.vlgmr.msra.gmra.mrb[66].mxu0 %vm568_vm14, %v3447_v4 }
0x201c   :  { %v4349_v21 = vpop.f32.mrb[66].mxu0 }
0x201d   :  { %v3535_v10 = vadd.f32 %v4349_v21, %v3699_v28  ;;  %v3529_v53 = vpop.f32.mrb[67].mxu0 }
0x201e   :  { %v3530_v24 = vadd.f32 %v3699_v28, %v3529_v53 }
0x201f   :  { %v3549_v40 = vmul.f32 %v3546_v18, %v3535_v10 }
0x2020   :  { %v3548_v32 = vmul.f32 %v3541_v26, %v3530_v24 }
0x2021   :  { %v3559_v30 = vadd.f32 %v3556_v27, %v3549_v40 }
0x2022   :  { %v3558_v12 = vadd.f32 %v3552_v61, %v3548_v32 }
0x2023   :  { %3562 = vst.msk [vmem:[%s5787_s3 + $0x8] sm:$0xf] %vm3561_vm0, %v3559_v30 }
0x2024   :  { %3560 = vst.msk [vmem:[%s5787_s3] sm:$0xff] %vm138_vm2, %v3558_v12 }
0x2025   :  { %3567 = vsyncpa [#allocation3], 1 }

</bundles_post_ra>
